<compile_context>
chip_gen: v6e
topology: v6e:2x2x1
jax: 0.10.0
libtpu: 0.0.40
codegen_flags: <defaults>
</compile_context>

<pallas_src>
import functools

import jax
import jax.numpy as jnp
from jax.experimental import pallas as pl
from jax.experimental.pallas import tpu as pltpu


def _round_up(x, m):
    return (x + m - 1) // m * m


# ---------------------------------------------------------------------------
# Fused stage kernel: pointwise MLP + global max + FC head.
# All BN scales are pre-folded into the weights; only biases remain in-kernel.
# ---------------------------------------------------------------------------
def _stage_kernel(x_ref, tw1_ref,
                  b1_ref, w2_ref, b2_ref, w3_ref, b3_ref,
                  hw1_ref, hb1_ref, hw2_ref, hb2_ref, hw3_ref, hb3_ref,
                  out_ref, acc_ref, *, relu3, log_softmax_out):
    n = pl.program_id(1)

    @pl.when(n == 0)
    def _():
        acc_ref[...] = jnp.full(acc_ref.shape, -jnp.inf, dtype=acc_ref.dtype)

    # ---- pointwise MLP on this tile of points -----------------------------
    x = x_ref[0]                                            # (tile_n, Cin) bf16
    t1 = tw1_ref[0]                                         # (Cin, 64)     bf16 (trans & bn1-scale folded)
    h = jnp.dot(x, t1, preferred_element_type=jnp.float32)  # single-pass bf16 MXU, f32 acc
    h = jnp.maximum(h + b1_ref[...], 0.0)                   # bn1 bias + relu

    h = jnp.dot(h.astype(jnp.bfloat16), w2_ref[...],        # 64 -> 128 (bf16, bn2-scale folded)
                preferred_element_type=jnp.float32)
    h = jnp.maximum(h + b2_ref[...], 0.0)                   # bn2 bias + relu

    h = jnp.dot(h.astype(jnp.bfloat16), w3_ref[...],        # 128 -> 1024 (bf16, bn3-scale folded)
                preferred_element_type=jnp.float32)
    # bn3 bias add (+ optional relu) is deferred past the max: per-channel
    # bias/relu commute with a per-point max, so this is exact.

    # ---- running max into an 8-row accumulator (pure VPU per step) --------
    tn, c = h.shape
    part = jnp.max(h.reshape(tn // 8, 8, c), axis=0)        # (8, C): max across vreg rows
    acc_ref[...] = jnp.maximum(acc_ref[...], part)

    # ---- FC head, only at the last point-tile of this batch element -------
    @pl.when(n == pl.num_programs(1) - 1)
    def _():
        g = jnp.max(acc_ref[...], axis=0, keepdims=True)    # (1, 1024): one XLU reduce / batch
        g = g + b3_ref[...]                                 # deferred bn3 bias
        if relu3:
            g = jnp.maximum(g, 0.0)                         # deferred relu3 (STN stage only)

        t = jnp.dot(g.astype(jnp.bfloat16), hw1_ref[...],   # fc1 (bn4-scale folded, bf16)
                    preferred_element_type=jnp.float32)
        t = jnp.maximum(t + hb1_ref[...], 0.0)
        # TODO(synk): nn.Dropout(p=0.3) is identity in eval mode; no stochastic path here.
        t = jnp.dot(t.astype(jnp.bfloat16), hw2_ref[...],   # fc2 (bn5-scale folded, bf16)
                    preferred_element_type=jnp.float32)
        t = jnp.maximum(t + hb2_ref[...], 0.0)
        o = jnp.dot(t, hw3_ref[...],                        # fc3 (tiny, f32)
                    preferred_element_type=jnp.float32) + hb3_ref[...]
        if log_softmax_out:
            m = jnp.max(o, axis=1, keepdims=True)
            z = o - m
            lse = jnp.log(jnp.sum(jnp.exp(z), axis=1, keepdims=True))
            o = z - lse                                     # log_softmax, dim=1
        out_ref[0] = o                                      # (1, out_dim)


def pointnet_stage(x_bnc, tw1, conv_params, head_params, out_dim,
                   *, relu3, log_softmax_out, tile_n=512):
    """Fused pointwise-MLP + max-pool + FC-head stage.

    x_bnc : (B, N, Cin) bf16 points.
    tw1   : (B, Cin, 64) bf16 — conv1 weight with bn1 scale AND the input
            transform pre-folded.
    """
    B, N, Cin = x_bnc.shape
    b1, w2, b2, w3, b3 = conv_params
    hw1, hb1, hw2, hb2, hw3, hb3 = head_params

    # tile_n: big enough to amortize per-step overhead, capped at (padded) N.
    tile_n = min(tile_n, _round_up(N, 8))
    n_pad = _round_up(N, tile_n)
    if n_pad != N:
        # Replicate the last point: duplicates cannot change the global max.
        x_bnc = jnp.pad(x_bnc, ((0, 0), (0, n_pad - N), (0, 0)), mode="edge")

    def full(a):  # constant (never re-indexed) whole-array block
        return pl.BlockSpec(a.shape, lambda b, n: (0,) * a.ndim)

    kernel = functools.partial(_stage_kernel, relu3=relu3,
                               log_softmax_out=log_softmax_out)

    out = pl.pallas_call(
        kernel,
        out_shape=jax.ShapeDtypeStruct((B, 1, out_dim), jnp.float32),
        grid=(B, n_pad // tile_n),
        in_specs=[
            pl.BlockSpec((1, tile_n, Cin), lambda b, n: (b, n, 0)),
            pl.BlockSpec((1, Cin, 64), lambda b, n: (b, 0, 0)),
            full(b1), full(w2), full(b2), full(w3), full(b3),
            full(hw1), full(hb1), full(hw2), full(hb2), full(hw3), full(hb3),
        ],
        out_specs=pl.BlockSpec((1, 1, out_dim), lambda b, n: (b, 0, 0)),
        scratch_shapes=[pltpu.VMEM((8, 1024), jnp.float32)],
        compiler_params=pltpu.CompilerParams(
            dimension_semantics=("parallel", "arbitrary"),
            vmem_limit_bytes=32 * 1024 * 1024),
    )(x_bnc, tw1,
      b1, w2, b2, w3, b3,
      hw1, hb1, hw2, hb2, hw3, hb3)
    return out.reshape(B, out_dim)


# ---------------------------------------------------------------------------
# Deterministic parameter construction (synthetic weights, BN folded)
# ---------------------------------------------------------------------------
def _fold_bn(key, cout, layer_bias):
    kg, kb, km, kv = jax.random.split(key, 4)
    gamma = jax.random.uniform(kg, (cout,), minval=0.5, maxval=1.5)
    beta = jax.random.normal(kb, (cout,)) * 0.1
    mean = jax.random.normal(km, (cout,)) * 0.1
    var = jax.random.uniform(kv, (cout,), minval=0.5, maxval=1.5)
    scale = gamma / jnp.sqrt(var + 1e-5)
    bias = beta - scale * mean + scale * layer_bias
    return (scale.reshape(1, cout).astype(jnp.float32),
            bias.reshape(1, cout).astype(jnp.float32))


def _linear(key, cin, cout):
    kw, kb = jax.random.split(key)
    w = (jax.random.normal(kw, (cin, cout)) / jnp.sqrt(cin)).astype(jnp.float32)
    b = (jax.random.normal(kb, (cout,)) * 0.05).astype(jnp.float32)
    return w, b


def _conv_stack(key, cin):
    """Pointwise convs cin->64->128->1024; BN scale folded into weights."""
    ks = jax.random.split(key, 6)
    w1, cb1 = _linear(ks[0], cin, 64)
    s1, b1 = _fold_bn(ks[1], 64, cb1)
    w2, cb2 = _linear(ks[2], 64, 128)
    s2, b2 = _fold_bn(ks[3], 128, cb2)
    w3, cb3 = _linear(ks[4], 128, 1024)
    s3, b3 = _fold_bn(ks[5], 1024, cb3)
    # Scale folding is exact per output channel (independent of sign).
    w1s = (w1 * s1)                              # kept f32; folded with `trans`, cast bf16 in wrapper
    w2s = (w2 * s2).astype(jnp.bfloat16)
    w3s = (w3 * s3).astype(jnp.bfloat16)
    return (w1s, b1, w2s, b2, w3s, b3)


def _head_stack(key, out_dim, extra_bias=None):
    """fc1(1024->512)/bn + fc2(512->256)/bn + fc3(256->out_dim).

    BN scales folded into fc1/fc2 weights (then cast to bf16); identity folded
    into the fc3 bias for the STN head.
    """
    ks = jax.random.split(key, 5)
    w1, fb1 = _linear(ks[0], 1024, 512)
    s1, b1 = _fold_bn(ks[1], 512, fb1)
    w2, fb2 = _linear(ks[2], 512, 256)
    s2, b2 = _fold_bn(ks[3], 256, fb2)
    w3, fb3 = _linear(ks[4], 256, out_dim)
    b3 = fb3.reshape(1, out_dim)
    if extra_bias is not None:
        b3 = b3 + extra_bias
    return ((w1 * s1).astype(jnp.bfloat16), b1,
            (w2 * s2).astype(jnp.bfloat16), b2,
            w3, b3.astype(jnp.float32))


def init_params(key, k_cls=2):
    k_stn_c, k_stn_h, k_enc_c, k_cls_h = jax.random.split(key, 4)
    stn_conv = _conv_stack(k_stn_c, 3)
    stn_head = _head_stack(k_stn_h, 9, extra_bias=jnp.eye(3, dtype=jnp.float32).reshape(1, 9))
    enc_conv = _conv_stack(k_enc_c, 3)
    cls_head = _head_stack(k_cls_h, k_cls)
    return {"stn_conv": stn_conv, "stn_head": stn_head,
            "enc_conv": enc_conv, "cls_head": cls_head}


# ---------------------------------------------------------------------------
# Full PointNetCls forward
# ---------------------------------------------------------------------------
def pointnet_cls_forward(x_b3n, params, k_cls=2, tile_n=512):
    B = x_b3n.shape[0]
    # PyTorch layout is (B, 3, N); transpose once and cast to bf16 so the
    # tile_n x 3 DMA is half-size and the 3->64 dot is single-pass bf16.
    x_bnc = jnp.transpose(x_b3n, (0, 2, 1)).astype(jnp.bfloat16)   # (B, N, 3)

    # --- STN3d: trans = identity for its own input, so tw1 is just w1*s1 ----
    w1_stn = params["stn_conv"][0]                                 # (3, 64) f32, bn1-scale folded
    tw1_stn = jnp.broadcast_to(w1_stn[None].astype(jnp.bfloat16), (B, 3, 64))
    trans9 = pointnet_stage(x_bnc, tw1_stn, params["stn_conv"][1:],
                            params["stn_head"], 9,
                            relu3=True, log_softmax_out=False, tile_n=tile_n)
    trans = trans9.reshape(B, 3, 3)                                # STN output (identity folded in)

    # --- Encoder + classifier: fold bmm(x, trans) into conv1 weight ---------
    w1_enc = params["enc_conv"][0]                                 # (3, 64) f32, bn1-scale folded
    tw1_enc = jnp.einsum("bij,jk->bik", trans, w1_enc).astype(jnp.bfloat16)  # (B, 3, 64), tiny
    log_probs = pointnet_stage(x_bnc, tw1_enc, params["enc_conv"][1:],
                               params["cls_head"], k_cls,
                               relu3=False, log_softmax_out=True, tile_n=tile_n)

    trans_feat = None                                              # feature_transform=False
    return log_probs, trans_feat


if __name__ == "__main__":
    key = jax.random.PRNGKey(0)
    k_par, k_x = jax.random.split(key)

    B, N, K_CLS = 2, 128, 2
    params = init_params(k_par, k_cls=K_CLS)
    x = jax.random.normal(k_x, (B, 3, N), dtype=jnp.float32)       # PyTorch layout (B, C=3, N)

    log_probs, trans_feat = pointnet_cls_forward(x, params, k_cls=K_CLS)
    log_probs = jax.block_until_ready(log_probs)

    assert log_probs.shape == (B, K_CLS)
    assert bool(jnp.all(jnp.isfinite(log_probs)))
    # log_softmax rows must exp-sum to 1
    assert bool(jnp.allclose(jnp.sum(jnp.exp(log_probs), axis=1), 1.0, atol=1e-5))
    print("KERNEL_OK")
</pallas_src>

<mosaic_0001>
module attributes {stable_mosaic.version = 11 : i64} {
  func.func @_stage_kernel(%arg0: i32, %arg1: i32, %arg2: memref<1x128x3xbf16, #tpu.memory_space<vmem>>, %arg3: memref<1x3x64xbf16, #tpu.memory_space<vmem>>, %arg4: memref<1x64xf32, #tpu.memory_space<vmem>>, %arg5: memref<64x128xbf16, #tpu.memory_space<vmem>>, %arg6: memref<1x128xf32, #tpu.memory_space<vmem>>, %arg7: memref<128x1024xbf16, #tpu.memory_space<vmem>>, %arg8: memref<1x1024xf32, #tpu.memory_space<vmem>>, %arg9: memref<1024x512xbf16, #tpu.memory_space<vmem>>, %arg10: memref<1x512xf32, #tpu.memory_space<vmem>>, %arg11: memref<512x256xbf16, #tpu.memory_space<vmem>>, %arg12: memref<1x256xf32, #tpu.memory_space<vmem>>, %arg13: memref<256x9xf32, #tpu.memory_space<vmem>>, %arg14: memref<1x9xf32, #tpu.memory_space<vmem>>, %arg15: memref<1x1x9xf32, #tpu.memory_space<vmem>>, %arg16: memref<8x1024xf32, #tpu.memory_space<vmem>>) attributes {dimension_semantics = [#tpu.dimension_semantics<parallel>, #tpu.dimension_semantics<arbitrary>], iteration_bounds = array<i64: 2, 1>, scalar_prefetch = 0 : i64, scratch_operands = 1 : i64, tpu.core_type = #tpu.core_type<tc>, window_params = [{transform_indices = @transform_0, window_bounds = array<i64: 1, 128, 3>}, {transform_indices = @transform_1, window_bounds = array<i64: 1, 3, 64>}, {pipeline_mode = #tpu.pipeline_mode<synchronous>, transform_indices = @transform_2, window_bounds = array<i64: 1, 64>}, {pipeline_mode = #tpu.pipeline_mode<synchronous>, transform_indices = @transform_3, window_bounds = array<i64: 64, 128>}, {pipeline_mode = #tpu.pipeline_mode<synchronous>, transform_indices = @transform_4, window_bounds = array<i64: 1, 128>}, {pipeline_mode = #tpu.pipeline_mode<synchronous>, transform_indices = @transform_5, window_bounds = array<i64: 128, 1024>}, {pipeline_mode = #tpu.pipeline_mode<synchronous>, transform_indices = @transform_6, window_bounds = array<i64: 1, 1024>}, {pipeline_mode = #tpu.pipeline_mode<synchronous>, transform_indices = @transform_7, window_bounds = array<i64: 1024, 512>}, {pipeline_mode = #tpu.pipeline_mode<synchronous>, transform_indices = @transform_8, window_bounds = array<i64: 1, 512>}, {pipeline_mode = #tpu.pipeline_mode<synchronous>, transform_indices = @transform_9, window_bounds = array<i64: 512, 256>}, {pipeline_mode = #tpu.pipeline_mode<synchronous>, transform_indices = @transform_10, window_bounds = array<i64: 1, 256>}, {pipeline_mode = #tpu.pipeline_mode<synchronous>, transform_indices = @transform_11, window_bounds = array<i64: 256, 9>}, {pipeline_mode = #tpu.pipeline_mode<synchronous>, transform_indices = @transform_12, window_bounds = array<i64: 1, 9>}, {transform_indices = @transform_13, window_bounds = array<i64: 1, 1, 9>}]} {
    %c0_i32 = arith.constant 0 : i32
    %0 = arith.cmpi eq, %arg1, %c0_i32 : i32
    %1 = arith.extui %0 : i1 to i32
    %c0_i32_0 = arith.constant 0 : i32
    %2 = arith.cmpi ne, %1, %c0_i32_0 : i32
    scf.if %2 {
      %cst_25 = arith.constant 0xFF800000 : f32
      %32 = vector.broadcast %cst_25 : f32 to vector<8x1024xf32>
      %c0_26 = arith.constant 0 : index
      %c0_27 = arith.constant 0 : index
      %33 = vector.load %arg16[%c0_26, %c0_27] : memref<8x1024xf32, #tpu.memory_space<vmem>>, vector<8x1024xf32>
      tpu.vector_store %arg16[%c0_26, %c0_27], %32 {strides = array<i32>} : memref<8x1024xf32, #tpu.memory_space<vmem>>, vector<8x1024xf32>,
    } else {
    }
    %c0 = arith.constant 0 : index
    %c0_1 = arith.constant 0 : index
    %c0_2 = arith.constant 0 : index
    %3 = vector.load %arg2[%c0, %c0_1, %c0_2] : memref<1x128x3xbf16, #tpu.memory_space<vmem>>, vector<1x128x3xbf16>
    %4 = vector.shape_cast %3 : vector<1x128x3xbf16> to vector<128x3xbf16>
    %c0_3 = arith.constant 0 : index
    %c0_4 = arith.constant 0 : index
    %c0_5 = arith.constant 0 : index
    %5 = vector.load %arg3[%c0_3, %c0_4, %c0_5] : memref<1x3x64xbf16, #tpu.memory_space<vmem>>, vector<1x3x64xbf16>
    %6 = vector.shape_cast %5 : vector<1x3x64xbf16> to vector<3x64xbf16>
    %cst = arith.constant dense<0.000000e+00> : vector<128x64xf32>
    %7 = tpu.matmul %4, %6, %cst {dimension_numbers = #tpu.dot_dimension_numbers<[1], [0], [0], [1], [0, 0, 1, 1], [], []>} : vector<128x3xbf16>, vector<3x64xbf16>, vector<128x64xf32> -> vector<128x64xf32>
    %c0_6 = arith.constant 0 : index
    %c0_7 = arith.constant 0 : index
    %8 = vector.load %arg4[%c0_6, %c0_7] : memref<1x64xf32, #tpu.memory_space<vmem>>, vector<1x64xf32>
    %9 = vector.broadcast %8 : vector<1x64xf32> to vector<128x64xf32>
    %10 = arith.addf %7, %9 : vector<128x64xf32>
    %cst_8 = arith.constant 0.000000e+00 : f32
    %11 = vector.broadcast %cst_8 : f32 to vector<128x64xf32>
    %12 = arith.maximumf %10, %11 : vector<128x64xf32>
    %13 = arith.truncf %12 : vector<128x64xf32> to vector<128x64xbf16>
    %c0_9 = arith.constant 0 : index
    %c0_10 = arith.constant 0 : index
    %14 = vector.load %arg5[%c0_9, %c0_10] : memref<64x128xbf16, #tpu.memory_space<vmem>>, vector<64x128xbf16>
    %cst_11 = arith.constant dense<0.000000e+00> : vector<128x128xf32>
    %15 = tpu.matmul %13, %14, %cst_11 {dimension_numbers = #tpu.dot_dimension_numbers<[1], [0], [0], [1], [0, 0, 1, 1], [], []>} : vector<128x64xbf16>, vector<64x128xbf16>, vector<128x128xf32> -> vector<128x128xf32>
    %c0_12 = arith.constant 0 : index
    %c0_13 = arith.constant 0 : index
    %16 = vector.load %arg6[%c0_12, %c0_13] : memref<1x128xf32, #tpu.memory_space<vmem>>, vector<1x128xf32>
    %17 = vector.broadcast %16 : vector<1x128xf32> to vector<128x128xf32>
    %18 = arith.addf %15, %17 : vector<128x128xf32>
    %cst_14 = arith.constant 0.000000e+00 : f32
    %19 = vector.broadcast %cst_14 : f32 to vector<128x128xf32>
    %20 = arith.maximumf %18, %19 : vector<128x128xf32>
    %21 = arith.truncf %20 : vector<128x128xf32> to vector<128x128xbf16>
    %c0_15 = arith.constant 0 : index
    %c0_16 = arith.constant 0 : index
    %22 = vector.load %arg7[%c0_15, %c0_16] : memref<128x1024xbf16, #tpu.memory_space<vmem>>, vector<128x1024xbf16>
    %cst_17 = arith.constant dense<0.000000e+00> : vector<128x1024xf32>
    %23 = tpu.matmul %21, %22, %cst_17 {dimension_numbers = #tpu.dot_dimension_numbers<[1], [0], [0], [1], [0, 0, 1, 1], [], []>} : vector<128x128xbf16>, vector<128x1024xbf16>, vector<128x1024xf32> -> vector<128x1024xf32>
    %24 = vector.shape_cast %23 : vector<128x1024xf32> to vector<16x8x1024xf32>
    %cst_18 = arith.constant dense<0xFF800000> : vector<8x1024xf32>
    %25 = vector.multi_reduction <maximumf>, %24, %cst_18 [0] : vector<16x8x1024xf32> to vector<8x1024xf32>
    %c0_19 = arith.constant 0 : index
    %c0_20 = arith.constant 0 : index
    %26 = vector.load %arg16[%c0_19, %c0_20] : memref<8x1024xf32, #tpu.memory_space<vmem>>, vector<8x1024xf32>
    %27 = arith.maximumf %26, %25 : vector<8x1024xf32>
    %c0_21 = arith.constant 0 : index
    %c0_22 = arith.constant 0 : index
    %28 = vector.load %arg16[%c0_21, %c0_22] : memref<8x1024xf32, #tpu.memory_space<vmem>>, vector<8x1024xf32>
    tpu.vector_store %arg16[%c0_21, %c0_22], %27 {strides = array<i32>} : memref<8x1024xf32, #tpu.memory_space<vmem>>, vector<8x1024xf32>,
    %c0_i32_23 = arith.constant 0 : i32
    %29 = arith.cmpi eq, %arg1, %c0_i32_23 : i32
    %30 = arith.extui %29 : i1 to i32
    %c0_i32_24 = arith.constant 0 : i32
    %31 = arith.cmpi ne, %30, %c0_i32_24 : i32
    scf.if %31 {
      %c0_25 = arith.constant 0 : index
      %c0_26 = arith.constant 0 : index
      %32 = vector.load %arg16[%c0_25, %c0_26] : memref<8x1024xf32, #tpu.memory_space<vmem>>, vector<8x1024xf32>
      %cst_27 = arith.constant dense<0xFF800000> : vector<1024xf32>
      %33 = vector.multi_reduction <maximumf>, %32, %cst_27 [0] : vector<8x1024xf32> to vector<1024xf32>
      %34 = vector.shape_cast %33 : vector<1024xf32> to vector<1x1024xf32>
      %c0_28 = arith.constant 0 : index
      %c0_29 = arith.constant 0 : index
      %35 = vector.load %arg8[%c0_28, %c0_29] : memref<1x1024xf32, #tpu.memory_space<vmem>>, vector<1x1024xf32>
      %36 = arith.addf %34, %35 : vector<1x1024xf32>
      %cst_30 = arith.constant 0.000000e+00 : f32
      %37 = vector.broadcast %cst_30 : f32 to vector<1x1024xf32>
      %38 = arith.maximumf %36, %37 : vector<1x1024xf32>
      %39 = arith.truncf %38 : vector<1x1024xf32> to vector<1x1024xbf16>
      %c0_31 = arith.constant 0 : index
      %c0_32 = arith.constant 0 : index
      %40 = vector.load %arg9[%c0_31, %c0_32] : memref<1024x512xbf16, #tpu.memory_space<vmem>>, vector<1024x512xbf16>
      %cst_33 = arith.constant dense<0.000000e+00> : vector<1x512xf32>
      %41 = tpu.matmul %39, %40, %cst_33 {dimension_numbers = #tpu.dot_dimension_numbers<[1], [0], [0], [1], [0, 0, 1, 1], [], []>} : vector<1x1024xbf16>, vector<1024x512xbf16>, vector<1x512xf32> -> vector<1x512xf32>
      %c0_34 = arith.constant 0 : index
      %c0_35 = arith.constant 0 : index
      %42 = vector.load %arg10[%c0_34, %c0_35] : memref<1x512xf32, #tpu.memory_space<vmem>>, vector<1x512xf32>
      %43 = arith.addf %41, %42 : vector<1x512xf32>
      %cst_36 = arith.constant 0.000000e+00 : f32
      %44 = vector.broadcast %cst_36 : f32 to vector<1x512xf32>
      %45 = arith.maximumf %43, %44 : vector<1x512xf32>
      %46 = arith.truncf %45 : vector<1x512xf32> to vector<1x512xbf16>
      %c0_37 = arith.constant 0 : index
      %c0_38 = arith.constant 0 : index
      %47 = vector.load %arg11[%c0_37, %c0_38] : memref<512x256xbf16, #tpu.memory_space<vmem>>, vector<512x256xbf16>
      %cst_39 = arith.constant dense<0.000000e+00> : vector<1x256xf32>
      %48 = tpu.matmul %46, %47, %cst_39 {dimension_numbers = #tpu.dot_dimension_numbers<[1], [0], [0], [1], [0, 0, 1, 1], [], []>} : vector<1x512xbf16>, vector<512x256xbf16>, vector<1x256xf32> -> vector<1x256xf32>
      %c0_40 = arith.constant 0 : index
      %c0_41 = arith.constant 0 : index
      %49 = vector.load %arg12[%c0_40, %c0_41] : memref<1x256xf32, #tpu.memory_space<vmem>>, vector<1x256xf32>
      %50 = arith.addf %48, %49 : vector<1x256xf32>
      %cst_42 = arith.constant 0.000000e+00 : f32
      %51 = vector.broadcast %cst_42 : f32 to vector<1x256xf32>
      %52 = arith.maximumf %50, %51 : vector<1x256xf32>
      %c0_43 = arith.constant 0 : index
      %c0_44 = arith.constant 0 : index
      %53 = vector.load %arg13[%c0_43, %c0_44] : memref<256x9xf32, #tpu.memory_space<vmem>>, vector<256x9xf32>
      %cst_45 = arith.constant dense<0.000000e+00> : vector<1x9xf32>
      %54 = tpu.matmul %52, %53, %cst_45 {dimension_numbers = #tpu.dot_dimension_numbers<[1], [0], [0], [1], [0, 0, 1, 1], [], []>} : vector<1x256xf32>, vector<256x9xf32>, vector<1x9xf32> -> vector<1x9xf32>
      %c0_46 = arith.constant 0 : index
      %c0_47 = arith.constant 0 : index
      %55 = vector.load %arg14[%c0_46, %c0_47] : memref<1x9xf32, #tpu.memory_space<vmem>>, vector<1x9xf32>
      %56 = arith.addf %54, %55 : vector<1x9xf32>
      %c0_48 = arith.constant 0 : index
      %c0_49 = arith.constant 0 : index
      %c0_50 = arith.constant 0 : index
      %57 = vector.load %arg15[%c0_48, %c0_49, %c0_50] : memref<1x1x9xf32, #tpu.memory_space<vmem>>, vector<1x1x9xf32>
      %58 = vector.shape_cast %57 : vector<1x1x9xf32> to vector<1x9xf32>
      %59 = vector.shape_cast %56 : vector<1x9xf32> to vector<1x1x9xf32>
      tpu.vector_store %arg15[%c0_48, %c0_49, %c0_50], %59 {strides = array<i32>} : memref<1x1x9xf32, #tpu.memory_space<vmem>>, vector<1x1x9xf32>,
    } else {
    }
    return
  }
  func.func @transform_0(%arg0: i32, %arg1: i32) -> (i32, i32, i32) {
    %c0_i32 = arith.constant 0 : i32
    %c0_i32_0 = arith.constant 0 : i32
    return %arg0, %arg1, %c0_i32 : i32, i32, i32
  }
  func.func @transform_1(%arg0: i32, %arg1: i32) -> (i32, i32, i32) {
    %c0_i32 = arith.constant 0 : i32
    %c0_i32_0 = arith.constant 0 : i32
    %c0_i32_1 = arith.constant 0 : i32
    return %arg0, %c0_i32, %c0_i32_0 : i32, i32, i32
  }
  func.func @transform_2(%arg0: i32, %arg1: i32) -> (i32, i32) {
    %c0_i32 = arith.constant 0 : i32
    %c0_i32_0 = arith.constant 0 : i32
    %c0_i32_1 = arith.constant 0 : i32
    return %c0_i32, %c0_i32_0 : i32, i32
  }
  func.func @transform_3(%arg0: i32, %arg1: i32) -> (i32, i32) {
    %c0_i32 = arith.constant 0 : i32
    %c0_i32_0 = arith.constant 0 : i32
    %c0_i32_1 = arith.constant 0 : i32
    return %c0_i32, %c0_i32_0 : i32, i32
  }
  func.func @transform_4(%arg0: i32, %arg1: i32) -> (i32, i32) {
    %c0_i32 = arith.constant 0 : i32
    %c0_i32_0 = arith.constant 0 : i32
    %c0_i32_1 = arith.constant 0 : i32
    return %c0_i32, %c0_i32_0 : i32, i32
  }
  func.func @transform_5(%arg0: i32, %arg1: i32) -> (i32, i32) {
    %c0_i32 = arith.constant 0 : i32
    %c0_i32_0 = arith.constant 0 : i32
    %c0_i32_1 = arith.constant 0 : i32
    return %c0_i32, %c0_i32_0 : i32, i32
  }
  func.func @transform_6(%arg0: i32, %arg1: i32) -> (i32, i32) {
    %c0_i32 = arith.constant 0 : i32
    %c0_i32_0 = arith.constant 0 : i32
    %c0_i32_1 = arith.constant 0 : i32
    return %c0_i32, %c0_i32_0 : i32, i32
  }
  func.func @transform_7(%arg0: i32, %arg1: i32) -> (i32, i32) {
    %c0_i32 = arith.constant 0 : i32
    %c0_i32_0 = arith.constant 0 : i32
    %c0_i32_1 = arith.constant 0 : i32
    return %c0_i32, %c0_i32_0 : i32, i32
  }
  func.func @transform_8(%arg0: i32, %arg1: i32) -> (i32, i32) {
    %c0_i32 = arith.constant 0 : i32
    %c0_i32_0 = arith.constant 0 : i32
    %c0_i32_1 = arith.constant 0 : i32
    return %c0_i32, %c0_i32_0 : i32, i32
  }
  func.func @transform_9(%arg0: i32, %arg1: i32) -> (i32, i32) {
    %c0_i32 = arith.constant 0 : i32
    %c0_i32_0 = arith.constant 0 : i32
    %c0_i32_1 = arith.constant 0 : i32
    return %c0_i32, %c0_i32_0 : i32, i32
  }
  func.func @transform_10(%arg0: i32, %arg1: i32) -> (i32, i32) {
    %c0_i32 = arith.constant 0 : i32
    %c0_i32_0 = arith.constant 0 : i32
    %c0_i32_1 = arith.constant 0 : i32
    return %c0_i32, %c0_i32_0 : i32, i32
  }
  func.func @transform_11(%arg0: i32, %arg1: i32) -> (i32, i32) {
    %c0_i32 = arith.constant 0 : i32
    %c0_i32_0 = arith.constant 0 : i32
    %c0_i32_1 = arith.constant 0 : i32
    return %c0_i32, %c0_i32_0 : i32, i32
  }
  func.func @transform_12(%arg0: i32, %arg1: i32) -> (i32, i32) {
    %c0_i32 = arith.constant 0 : i32
    %c0_i32_0 = arith.constant 0 : i32
    %c0_i32_1 = arith.constant 0 : i32
    return %c0_i32, %c0_i32_0 : i32, i32
  }
  func.func @transform_13(%arg0: i32, %arg1: i32) -> (i32, i32, i32) {
    %c0_i32 = arith.constant 0 : i32
    %c0_i32_0 = arith.constant 0 : i32
    %c0_i32_1 = arith.constant 0 : i32
    return %arg0, %c0_i32, %c0_i32_0 : i32, i32, i32
  }
}

</mosaic_0001>

<bundles_post_ra>
// kernel: tpu_custom_call.1
= control target key start
LH: loop header
LB: loop body
LE: loop exit
PB: predicated region body
PF: predicated region fallthrough
CT: control target
= control target key end

     0   :  { %18 = vsyncpa [#allocation4], 0  ;;  %s6647_s0 = inlined_call_operand.vmem [shape: bf16[2,128,3], index: 0, kind: input, shape index: {}]   ;;  %s6648_s1 = inlined_call_operand.vmem [shape: bf16[2,3,64], index: 1, kind: input, shape index: {}]   ;;  %s6649_s2 = inlined_call_operand.vmem [shape: f32[1,64], index: 2, kind: input, shape index: {}]   ;;  %s6650_s3 = inlined_call_operand.vmem [shape: bf16[64,128], index: 3, kind: input, shape index: {}]   ;;  %s6651_s4 = inlined_call_operand.vmem [shape: f32[1,128], index: 4, kind: input, shape index: {}]   ;;  %s6652_s5 = inlined_call_operand.hbm [shape: bf16[128,1024], index: 5, kind: input, shape index: {}]   ;;  %s6653_s6 = inlined_call_operand.vmem [shape: f32[1,1024], index: 6, kind: input, shape index: {}]   ;;  %s6654_s7 = inlined_call_operand.hbm [shape: bf16[1024,512], index: 7, kind: input, shape index: {}]   ;;  %s6655_s8 = inlined_call_operand.vmem [shape: f32[1,512], index: 8, kind: input, shape index: {}]   ;;  %s6656_s9 = inlined_call_operand.hbm [shape: bf16[512,256], index: 9, kind: input, shape index: {}]   ;;  %s6657_s10 = inlined_call_operand.vmem [shape: f32[1,256], index: 10, kind: input, shape index: {}]   ;;  %s6658_s11 = inlined_call_operand.vmem [shape: f32[256,9], index: 11, kind: input, shape index: {}]   ;;  %s6659_s12 = inlined_call_operand.vmem [shape: f32[1,9], index: 12, kind: input, shape index: {}]   ;;  %s6660_s13 = inlined_call_operand.hbm [shape: f32[2,1,9], index: 13, kind: output, shape index: {}]  }
   0x1   :  { %19 = vsyncpa [#allocation7], 0 }
   0x2   :  { %20 = vsyncpa [#allocation5], 0 }
   0x3   :  { %22 = vsyncpa [#allocation5 + $0x1], 0  ;;  %s6013_s25 = smov 0   ;;  %s6015_s26 = smov 0  }
   0x4   :  { %s6017_s27 = smov 0   ;;  %s6019_s28 = smov 0  }
   0x5   :  { %s6021_s29 = smov 0   ;;  %s6023_s30 = smov 0  }
   0x6 LB: > { %6666 = sst [smem:[#allocation13_spill]] %s5909_s25  ;;  %s4651_s14 = sadd.s32 4294967295, %s5929_s30   ;;  %s5929_s30 = sphi %s6023_s30, %s28_s30   ;;  %s5925_s29 = sphi %s6021_s29, %s6683_s29   ;;  %s5921_s28 = sphi %s6019_s28, %s6686_s28   ;;  %s5917_s27 = sphi %s6017_s27, %s6681_s27   ;;  %s5913_s26 = sphi %s6015_s26, %s6685_s26   ;;  %s5909_s25 = sphi %s6013_s25, %s6684_s25  }
   0x7   : > { %6667 = sst [smem:[#allocation14_spill]] %s5917_s27  ;;  %s4652_s15 = sadd.s32 4294967294, %s5929_s30  }
   0x8   : > { %6668 = sst [smem:[#allocation15_spill]] %s5925_s29  ;;  %s40_s16 = sadd.s32 1, %s5925_s29 }
   0x9   : > { %s332_s17 = sadd.s32 1, %s5917_s27  ;;  %p42_p0 = scmp.ge.s32.totalorder %s40_s16, 2 }
   0xa   : > { %p342_p1 = scmp.ne.s32.totalorder %s5917_s27, %s5913_s26  ;;  %p343_p2 = scmp.eq.s32.totalorder %s4651_s14, 1 }
   0xb   : > { %p348_p3 = scmp.ne.s32.totalorder %s5913_s26, %s5909_s25  ;;  %s6688_s16 = smov (%p42_p0, %s40_s16), 0 }
   0xc   : > { %6669 = sst [smem:[#allocation16_spill]] %s6688_s16  ;;  %p6053_p4 = por %p343_p2, %p342_p1 }
   0xd   : > { %p349_p5 = scmp.eq.s32.totalorder %s4652_s15, 1  ;;  %s329_s19 = ssub.s32 %s5925_s29, %s6688_s16 }
   0xe   : > { %p4653_p6 = scmp.ge.s32.totalorder %s5929_s30, 1  ;;  %p330_p7 = scmp.eq.s32.totalorder %s329_s19, 0 }
   0xf   : > { %p6060_p8 = por %p349_p5, %p348_p3  ;;  %p356_p9 = scmp.lt.s32.totalorder %s5929_s30, 3 }
  0x10   : > { %s6066_s21 = scalar_select %p330_p7, %s5917_s27, %s332_s17  }
  0x11   : > { %s6671_s20 = scalar_select %p6060_p8, 1, 0 }
  0x12   : > { %6673 = sst [smem:[#allocation18_spill]] %s6066_s21  ;;  %p6068_p10 = pnand %p4653_p6, %p356_p9 }
  0x13   : > { %6672 = sst [smem:[#allocation17_spill]] %s6671_s20  ;;  %p6072_p11 = scmp.eq.s32.totalorder %s4651_s14, 0 }
  0x14   : > { %p5195_p12 = pneg %p6068_p10  ;;  %s5931_s24 = smov [#allocation6]  }
  0x15   : > { %s393_s15 = sshll.u32 %s5931_s24, 4  ;;  %s5932_s17 = smov [#allocation3]   ;;  %s394_s15 = int_to_ptr.vmem [resolvable:$true] %s393_s15 }
  0x16   : > { %p6080_p13 = pnand %p6072_p11, %p5195_p12  ;;  %s377_s16 = sshll.u32 %s5932_s17, 4  ;;  %s378_s16 = int_to_ptr.vmem [resolvable:$true] %s377_s16 }
  0x17   : > { %s5778_s14 = scalar_lea.vmem %s394_s15, 32768  ;;  %p5786_p5 = scmp.lt.s32.totalorder %s394_s15, %s394_s15 }
  0x18   : > { %p5769_p0 = pneg %p6080_p13  ;;  %p5779_p1 = scmp.ne.s32.totalorder %s394_s15, %s5778_s14 }
  0x19   : > { %p5787_p6 = scmp.lt.s32.totalorder %s5778_s14, %s5778_s14 }
  0x1a   : > { %p5781_p2 = pnand %p5779_p1, %p5769_p0 }
  0x1b   : > { %p5788_p7 = por %p5787_p6, %p5786_p5 }
  0x1c   : > { %p5782_p3 = pneg %p5781_p2 }
  0x1e   : > { %p5789_p9 = pnand %p5788_p7, %p5782_p3 }
  0x20   : > { %5792 = shalt.err (!%p5789_p9)
}
  0x21   : > { %s5933_s24 = smov 256   ;;  %s5934_s29 = smov 16  }
  0x22   : > { %5201 = dma.hbm_to_vmem [thread:$0]  (!%p6080_p13), %s6654_s7, 32768, %s394_s15, [#allocation7], %s5933_s24, %s5933_s24, %s5934_s29  }
  0x23   : > { %s5804_s27 = scalar_lea.vmem %s378_s16, 8192  ;;  %p5812_p8 = scmp.lt.s32.totalorder %s378_s16, %s378_s16 }
  0x24   : > { %p5805_p12 = scmp.ne.s32.totalorder %s378_s16, %s5804_s27  ;;  %p5813_p5 = scmp.lt.s32.totalorder %s5804_s27, %s5804_s27 }
  0x26   : > { %p5807_p1 = pnand %p5805_p12, %p5769_p0  ;;  %p5814_p3 = por %p5813_p5, %p5812_p8 }
  0x28   : > { %p5808_p2 = pneg %p5807_p1 }
  0x2a   : > { %p5815_p6 = pnand %p5814_p3, %p5808_p2 }
  0x2c   : > { %5818 = shalt.err (!%p5815_p6)
}
  0x2d   : > { %s5935_s14 = smov 512   ;;  %s5936_s20 = smov 32  }
  0x2e   : > { %5198 = dma.hbm_to_vmem [thread:$0]  (!%p6080_p13), %s6652_s5, 8192, %s378_s16, [#allocation4], %s5935_s14, %s5935_s14, %s5936_s20  }
  0x2f   : > { %s5937_s29 = smov [#allocation8]  }
  0x30   : > { %s409_s15 = sshll.u32 %s5937_s29, 4  ;;  %s410_s15 = int_to_ptr.vmem [resolvable:$true] %s409_s15 }
  0x31   : > { %s5830_s24 = scalar_lea.vmem %s410_s15, 8192  ;;  %p5838_p12 = scmp.lt.s32.totalorder %s410_s15, %s410_s15 }
  0x32   : > { %p5831_p7 = scmp.ne.s32.totalorder %s410_s15, %s5830_s24  ;;  %p5839_p1 = scmp.lt.s32.totalorder %s5830_s24, %s5830_s24 }
  0x34   : > { %p5833_p9 = pnand %p5831_p7, %p5769_p0  ;;  %p5840_p2 = por %p5839_p1, %p5838_p12 }
  0x36   : > { %p5834_p8 = pneg %p5833_p9 }
  0x38   : > { %p5841_p5 = pnand %p5840_p2, %p5834_p8 }
  0x3a   : > { %5844 = shalt.err (!%p5841_p5)
}
  0x3b   : > { %s5938_s27 = smov 128   ;;  %s5939_s17 = smov 8  }
  0x3c   : > { %5204 = dma.hbm_to_vmem [thread:$0]  (!%p6080_p13), %s6656_s9, 8192, %s410_s15, [#allocation7], %s5938_s27, %s5938_s27, %s5939_s17  }
  0x3d   : > { %454 = sbr.rel (%p6068_p10) target bundleno = 1577 (0x629), region = 72 }
  0x42   : > { %5896 = dma.done.wait (%p6072_p11), [#allocation4], 8192  }
  0x43   : > { %5898 = vsyncadd (%p6072_p11), [#allocation4], 4294959104 }
  0x44   : > { %5900 = dma.done.wait (%p6072_p11), [#allocation7], 40960  }
  0x45   : > { %5902 = vsyncadd (%p6072_p11), [#allocation7], 4294926336  ;;  %p514_p0 = scmp.lt.s32.totalorder %s5921_s28, 1  ;;  %vm629_vm0 = vcmask 1040384   ;;  %vm630_vm1 = vcmask 1041408   ;;  %v5940_v0 = vmov 65535  }
  0x46   : > { %v631_v1 = vsel %vm629_vm0, 4294967295, %v5940_v0  ;;  %vm604_vm2 = vcmask 23552   ;;  %v5283_v9 = vld [vmem:[%s6650_s3 + $0x18] sm:$0xff]   ;;  %v5284_v14 = vld [vmem:[%s6650_s3 + $0x10] sm:$0xff]   ;;  %v5285_v15 = vld [vmem:[%s6650_s3 + $0x8] sm:$0xff]   ;;  %vm796_vm3 = vcmask 523264  }
  0x47   : > { %s515_s20 = scalar_select %p514_p0, %s5921_s28, 1  ;;  %v632_v2 = vsel %vm630_vm1, %v631_v1, 0  ;;  %5157 = vmatprep.subr.bf16.mxu1 %v5283_v9  ;;  %v5286_v16 = vld [vmem:[%s6650_s3] sm:$0xff]   ;;  %v6148_v19 = vld [vmem:[#allocation3 + $0x1c8] sm:$0xff]  ;;  %vm4524_vm4 = vcmask 65536  }
  0x48   : > { %5158 = vmatpush3.bf16.msra.mxu1 %v5283_v9  ;;  %v998_v17 = vld [vmem:[#allocation3 + $0x1c0] sm:$0xff]  ;;  %v6150_v22 = vld [vmem:[#allocation3 + $0x1e8] sm:$0xff]  ;;  %s5079_s14 = sshll.u32 %s5921_s28, 4  ;;  %s5942_s25 = smov [#allocation9]  }
  0x49   : > { %s5082_s22 = sshll.u32 %s515_s20, 6  ;;  %s4664_s19 = sshll.u32 %s515_s20, 1  ;;  %5159 = vmatprep.subr.bf16.mxu1 %v5284_v14  ;;  %v1002_v18 = vld [vmem:[#allocation3 + $0x1e0] sm:$0xff]  ;;  %v4753_v25 = vcombine.low %v6148_v19, %v6150_v22  ;;  %v4754_v26 = vcombine.high %v6148_v19, %v6150_v22  ;;  %v991_v54 = vld [vmem:[#allocation3 + $0x188] sm:$0xff] }
  0x4a   : > { %s521_s29 = scalar_lea.vmem %s6647_s0, %s5082_s22  ;;  %s526_s27 = scalar_lea.vmem %s6648_s1, %s4664_s19  ;;  %v4751_v20 = vcombine.low %v998_v17, %v1002_v18  ;;  %v4752_v21 = vcombine.high %v998_v17, %v1002_v18  ;;  %v990_v23 = vld [vmem:[#allocation3 + $0x180] sm:$0xff]  ;;  %v995_v55 = vld [vmem:[#allocation3 + $0x1a8] sm:$0xff] }
  0x4b   : > { %v556_v3 = vld [vmem:[%s526_s27] sm:$0x3]  ;;  %v5276_v6 = vld [vmem:[%s521_s29 + $0x8] sm:$0xff]   ;;  %v5277_v7 = vld [vmem:[%s521_s29 + $0x10] sm:$0xff]   ;;  %v4746_v63 = vcombine.high %v991_v54, %v995_v55  ;;  %s511_s20 = sand.u32 1, %s5913_s26   ;;  %s4537_s27 = scalar_lea.hbm %s6660_s13, %s5079_s14 }
  0x4c   : > { %v634_v4 = vand.u32 %v632_v2, %v556_v3  ;;  %v5275_v5 = vld [vmem:[%s521_s29] sm:$0xff]   ;;  %v5278_v8 = vld [vmem:[%s521_s29 + $0x18] sm:$0xff]   ;;  %v5280_v11 = vld [vmem:[%s521_s29 + $0x28] sm:$0xff]   ;;  %5160 = vmatpush3.bf16.msra.mxu1 %v5284_v14  ;;  %s512_s21 = scalar_lea.vmem [#allocation9], %s511_s20  ;;  %s4527_s23 = scalar_lea.sflag [#allocation5], %s511_s20 }
  0x4d   : > { %5141 = vmatprep.mubr.msk.bf16.mxu0 %vm604_vm2, %v5275_v5  ;;  %v5279_v10 = vld [vmem:[%s521_s29 + $0x20] sm:$0xff]   ;;  %v5281_v12 = vld [vmem:[%s521_s29 + $0x30] sm:$0xff]   ;;  %v5282_v13 = vld [vmem:[%s521_s29 + $0x38] sm:$0xff]   ;;  %5161 = vmatprep.subr.bf16.mxu1 %v5285_v15  ;;  %s4539_s29 = sshll.u32 %s512_s21, 4  ;;  %s5849_s16 = sshll.u32 %s5942_s25, 4  ;;  %s4540_s29 = int_to_ptr.vmem [resolvable:$true] %s4539_s29  ;;  %s5850_s16 = int_to_ptr.vmem [resolvable:$false] %s5849_s16 }
  0x4e   : > { %5139 = vmatprep.subr.bf16.mxu0 %v634_v4  ;;  %v994_v24 = vld [vmem:[#allocation3 + $0x1a0] sm:$0xff]  ;;  %v983_v1 = vld [vmem:[#allocation3 + $0x148] sm:$0xff]  ;;  %s5845_s17 = scalar_lea.vmem %s4540_s29, 16  ;;  %s5851_s28 = scalar_lea.vmem %s5850_s16, 32 }
  0x4f   : > { %5140 = vmatpush3.bf16.msra.mxu0 %v634_v4  ;;  %v4744_v27 = vcombine.high %v990_v23, %v994_v24  ;;  %v982_v28 = vld [vmem:[#allocation3 + $0x140] sm:$0xff]  ;;  %v4743_v30 = vcombine.low %v990_v23, %v994_v24  ;;  %v987_v2 = vld [vmem:[#allocation3 + $0x168] sm:$0xff]  ;;  %p5846_p10 = scmp.ne.s32.totalorder %s4540_s29, %s5845_s17  ;;  %p5852_p3 = scmp.lt.s32.totalorder %s4540_s29, %s5850_s16 }
  0x50   : > { %5162 = vmatpush3.bf16.msra.mxu1 %v5285_v15  ;;  %1326 = vmatprep.subr.bf16.mxu0 %v4752_v21  ;;  %v986_v29 = vld [vmem:[#allocation3 + $0x160] sm:$0xff]  ;;  %v4737_v19 = vcombine.low %v983_v1, %v987_v2  ;;  %v967_v23 = vld [vmem:[#allocation3 + $0xc8] sm:$0xff]  ;;  %p5853_p6 = scmp.lt.s32.totalorder %s5851_s28, %s5845_s17 }
  0x51   : > { %5163 = vmatprep.subr.bf16.mxu1 %v5286_v16  ;;  %v4736_v31 = vcombine.high %v982_v28, %v986_v29  ;;  %v974_v32 = vld [vmem:[#allocation3 + $0x100] sm:$0xff]  ;;  %v4735_v34 = vcombine.low %v982_v28, %v986_v29  ;;  %v971_v24 = vld [vmem:[#allocation3 + $0xe8] sm:$0xff]  ;;  %p5847_p11 = pnand %p5846_p10, %p6053_p4 }
  0x52   : > { %5142 = vmatmul.mubr.msk.bf16.vlgmr.msra.gmra.mxu0 %vm604_vm2, %v5276_v6  ;;  %v978_v33 = vld [vmem:[#allocation3 + $0x120] sm:$0xff]  ;;  %p5854_p7 = por %p5853_p6, %p5852_p3 }
  0x53   : > { %5145 = vmatprep.mubr.msk.bf16.mxu0 %vm604_vm2, %v5277_v7  ;;  %1327 = vmatpush1.bf16.msra.mxu0 %v4751_v20  ;;  %v966_v35 = vld [vmem:[#allocation3 + $0xc0] sm:$0xff]  ;;  %v4728_v37 = vcombine.high %v974_v32, %v978_v33  ;;  %v4727_v38 = vcombine.low %v974_v32, %v978_v33  ;;  %v4722_v32 = vcombine.high %v967_v23, %v971_v24  ;;  %p5848_p13 = pneg %p5847_p11 }
  0x54   : > { %5164 = vmatpush3.bf16.msra.mxu1 %v5286_v16  ;;  %1328 = vmatprep.subr.bf16.mxu0 %v4744_v27  ;;  %v970_v36 = vld [vmem:[#allocation3 + $0xe0] sm:$0xff] }
  0x55   : > { %1439 = vmatprep.subr.bf16.mxu1 %v4754_v26  ;;  %v4720_v39 = vcombine.high %v966_v35, %v970_v36  ;;  %v4719_v40 = vcombine.low %v966_v35, %v970_v36  ;;  %v6159_v43 = vld [vmem:[%s6649_s2] ss:$0 sm:$0xff]  ;;  %p5855_p9 = pnand %p5854_p7, %p5848_p13 }
  0x57   : > { %1329 = vmatpush1.bf16.msra.mxu0 %v4743_v30 }
  0x58   : > { %1330 = vmatprep.subr.bf16.mxu0 %v4736_v31 }
  0x5a   : > { %5146 = vmatmul.mubr.msk.bf16.gmra.mxu0 %vm604_vm2, %v5278_v8  ;;  %v4745_v8 = vcombine.low %v991_v54, %v995_v55  ;;  %v963_v55 = vld [vmem:[#allocation3 + $0xa8] sm:$0xff] }
  0x5b   : > { %5149 = vmatprep.mubr.msk.bf16.mxu0 %vm604_vm2, %v5279_v10  ;;  %1331 = vmatpush1.bf16.msra.mxu0 %v4735_v34  ;;  %v4738_v10 = vcombine.high %v983_v1, %v987_v2  ;;  %v942_v2 = vld [vmem:[#allocation3] sm:$0xff] }
  0x5c   : > { %1332 = vmatprep.subr.bf16.mxu0 %v4728_v37 }
  0x5f   : > { %1333 = vmatpush1.bf16.msra.mxu0 %v4727_v38 }
  0x60   : > { %1334 = vmatprep.subr.bf16.mxu0 %v4720_v39  ;;  %v4721_v39 = vcombine.low %v967_v23, %v971_v24 }
  0x62   : > { %5150 = vmatmul.mubr.msk.bf16.gmra.mxu0 %vm604_vm2, %v5280_v11 }
  0x63   : > { %5153 = vmatprep.mubr.msk.bf16.mxu0 %vm604_vm2, %v5281_v12  ;;  %1335 = vmatpush1.bf16.msra.mxu0 %v4719_v40  ;;  %v975_v12 = vld [vmem:[#allocation3 + $0x108] sm:$0xff] }
  0x6a   : > { %5154 = vmatmul.mubr.msk.bf16.gmra.mxu0 %vm604_vm2, %v5282_v13  ;;  %v979_v13 = vld [vmem:[#allocation3 + $0x128] sm:$0xff] }
  0x6b   : > { %v4730_v21 = vcombine.high %v975_v12, %v979_v13  ;;  %v4729_v30 = vcombine.low %v975_v12, %v979_v13  ;;  %v1004_v12 = vld [vmem:[#allocation3 + $0x1f0] sm:$0xff] }
 0x112   : > { %v5143_v41 = vpop.f32.mrf.mxu0 }
 0x113   : > { %v679_v47 = vadd.f32 %v5143_v41, %v6159_v43 }
 0x114   : > { %v670_v42 = vpop.f32.mrf.mxu0 }
 0x115   : > { %v671_v45 = vadd.f32 %v6159_v43, %v670_v42  ;;  %v735_v56 = vmax.f32 %v679_v47, 0.0 }
 0x116   : > { %v5144_v44 = vpop.f32.mrf.mxu0 }
 0x117   : > { %v682_v46 = vadd.f32 %v5144_v44, %v6159_v43  ;;  %v733_v52 = vmax.f32 %v671_v45, 0.0 }
 0x118   : > { %v673_v48 = vpop.f32.mrf.mxu0 }
 0x119   : > { %v674_v49 = vadd.f32 %v6159_v43, %v673_v48  ;;  %v736_v50 = vmax.f32 %v682_v46, 0.0 }
 0x11a   : > { %v5147_v51 = vpop.f32.mrf.mxu0 }
 0x11b   : > { %v734_v53 = vmax.f32 %v674_v49, 0.0  ;;  %v695_v57 = vadd.f32 %v5147_v51, %v6159_v43  ;;  %v750_v61 = vpack.c.bf16 %v736_v50, %v735_v56  ;;  %v958_v51 = vld [vmem:[#allocation3 + $0x80] sm:$0xff] }
 0x11c   : > { %v686_v58 = vpop.f32.mrf.mxu0 }
 0x11d   : > { %v687_v59 = vadd.f32 %v6159_v43, %v686_v58  ;;  %v749_v60 = vpack.c.bf16 %v734_v53, %v733_v52  ;;  %v739_v3 = vmax.f32 %v695_v57, 0.0  ;;  %v962_v52 = vld [vmem:[#allocation3 + $0xa0] sm:$0xff]  ;;  %v959_v53 = vld [vmem:[#allocation3 + $0x88] sm:$0xff] }
 0x11e   : > { %v5148_v62 = vpop.f32.mrf.mxu0  ;;  %v4712_v54 = vcombine.high %v958_v51, %v962_v52  ;;  %v4711_v56 = vcombine.low %v958_v51, %v962_v52  ;;  %v4713_v57 = vcombine.low %v959_v53, %v963_v55  ;;  %v4714_v58 = vcombine.high %v959_v53, %v963_v55  ;;  %v976_v51 = vld [vmem:[#allocation3 + $0x110] sm:$0xff]  ;;  %v981_v55 = vld [vmem:[#allocation3 + $0x138] sm:$0xff] }
 0x11f   : > { %v698_v0 = vadd.f32 %v5148_v62, %v6159_v43  ;;  %5165 = vmatprep.mubr.msk.bf16.mxu1 %vm796_vm3, %v749_v60  ;;  %v737_v5 = vmax.f32 %v687_v59, 0.0  ;;  %v954_v59 = vld [vmem:[#allocation3 + $0x60] sm:$0xff]  ;;  %v951_v60 = vld [vmem:[#allocation3 + $0x48] sm:$0xff]  ;;  %v980_v53 = vld [vmem:[#allocation3 + $0x130] sm:$0xff] }
 0x120   : > { %v689_v4 = vpop.f32.mrf.mxu0  ;;  %5166 = vmatmul.mubr.msk.bf16.vlgmr.msra.gmra.mxu1 %vm796_vm3, %v750_v61  ;;  %1336 = vmatprep.subr.bf16.mxu0 %v4712_v54  ;;  %v955_v62 = vld [vmem:[#allocation3 + $0x68] sm:$0xff]  ;;  %v977_v54 = vld [vmem:[#allocation3 + $0x118] sm:$0xff] }
 0x121   : > { %v740_v6 = vmax.f32 %v698_v0, 0.0  ;;  %v690_v7 = vadd.f32 %v6159_v43, %v689_v4  ;;  %1440 = vmatpush1.bf16.msra.mxu1 %v4753_v25  ;;  %1337 = vmatpush1.bf16.msra.mxu0 %v4711_v56  ;;  %v4705_v0 = vcombine.low %v951_v60, %v955_v62  ;;  %v4706_v1 = vcombine.high %v951_v60, %v955_v62  ;;  %v943_v4 = vld [vmem:[#allocation3 + $0x8] sm:$0xff]  ;;  %v968_v62 = vld [vmem:[#allocation3 + $0xd0] sm:$0xff] }
 0x122   : > { %v5151_v9 = vpop.f32.mrf.mxu0  ;;  %1441 = vmatprep.subr.bf16.mxu1 %v4746_v63  ;;  %v4732_v60 = vcombine.high %v976_v51, %v980_v53 }
 0x123   : > { %v738_v11 = vmax.f32 %v690_v7, 0.0  ;;  %v752_v14 = vpack.c.bf16 %v740_v6, %v739_v3  ;;  %v711_v15 = vadd.f32 %v5151_v9, %v6159_v43  ;;  %v946_v3 = vld [vmem:[#allocation3 + $0x20] sm:$0xff]  ;;  %v947_v6 = vld [vmem:[#allocation3 + $0x28] sm:$0xff] }
 0x124   : > { %v702_v16 = vpop.f32.mrf.mxu0  ;;  %v4695_v7 = vcombine.low %v942_v2, %v946_v3  ;;  %v4698_v9 = vcombine.high %v943_v4, %v947_v6 }
 0x125   : > { %v751_v17 = vpack.c.bf16 %v738_v11, %v737_v5  ;;  %v703_v18 = vadd.f32 %v6159_v43, %v702_v16  ;;  %1442 = vmatpush1.bf16.msra.mxu1 %v4745_v8  ;;  %v743_v25 = vmax.f32 %v711_v15, 0.0  ;;  %v4696_v5 = vcombine.high %v942_v2, %v946_v3  ;;  %v1000_v11 = vld [vmem:[#allocation3 + $0x1d0] sm:$0xff]  ;;  %v1001_v15 = vld [vmem:[#allocation3 + $0x1d8] sm:$0xff] }
 0x126   : > { %v5152_v20 = vpop.f32.mrf.mxu0  ;;  %1443 = vmatprep.subr.bf16.mxu1 %v4738_v10  ;;  %v4697_v8 = vcombine.low %v943_v4, %v947_v6  ;;  %v5941_v10 = vmov 0   ;;  %v4755_v13 = vcombine.low %v1000_v11, %v1004_v12  ;;  %v1005_v16 = vld [vmem:[#allocation3 + $0x1f8] sm:$0xff]  ;;  %v4731_v4 = vcombine.low %v976_v51, %v980_v53 }
 0x127   : > { %5169 = vmatprep.mubr.msk.bf16.mxu1 %vm796_vm3, %v751_v17  ;;  %v714_v22 = vadd.f32 %v5152_v20, %v6159_v43  ;;  %v741_v27 = vmax.f32 %v703_v18, 0.0  ;;  %1358 = vmatprep.mubr.bf16.mxu0 %v5941_v10  ;;  %v4757_v17 = vcombine.low %v1001_v15, %v1005_v16  ;;  %v4758_v18 = vcombine.high %v1001_v15, %v1005_v16  ;;  %v973_v2 = vld [vmem:[#allocation3 + $0xf8] sm:$0xff] }
 0x128   : > { %5170 = vmatmul.mubr.msk.bf16.gmra.mxu1 %vm796_vm3, %v752_v14  ;;  %v705_v26 = vpop.f32.mrf.mxu0  ;;  %v4756_v14 = vcombine.high %v1000_v11, %v1004_v12  ;;  %v964_v12 = vld [vmem:[#allocation3 + $0xb0] sm:$0xff] }
 0x129   : > { %v744_v28 = vmax.f32 %v714_v22, 0.0  ;;  %v706_v29 = vadd.f32 %v6159_v43, %v705_v26  ;;  %1444 = vmatpush1.bf16.msra.mxu1 %v4737_v19 }
 0x12a   : > { %v5155_v31 = vpop.f32.mrf.mxu0  ;;  %1445 = vmatprep.subr.bf16.mxu1 %v4730_v21  ;;  %v6190_v21 = vld [vmem:[%s6651_s4] ss:$0 sm:$0xff] }
 0x12b   : > { %v742_v33 = vmax.f32 %v706_v29, 0.0  ;;  %v754_v34 = vpack.c.bf16 %v744_v28, %v743_v25  ;;  %v727_v35 = vadd.f32 %v5155_v31, %v6159_v43  ;;  %v993_v31 = vld [vmem:[#allocation3 + $0x198] sm:$0xff] }
 0x12c   : > { %v718_v36 = vpop.f32.mrf.mxu0 }
 0x12d   : > { %v753_v37 = vpack.c.bf16 %v742_v33, %v741_v27  ;;  %v719_v38 = vadd.f32 %v6159_v43, %v718_v36  ;;  %1446 = vmatpush1.bf16.msra.mxu1 %v4729_v30  ;;  %v747_v42 = vmax.f32 %v727_v35, 0.0  ;;  %v992_v27 = vld [vmem:[#allocation3 + $0x190] sm:$0xff] }
 0x12e   : > { %v5156_v40 = vpop.f32.mrf.mxu0  ;;  %1447 = vmatprep.subr.bf16.mxu1 %v4722_v32  ;;  %v996_v30 = vld [vmem:[#allocation3 + $0x1b0] sm:$0xff]  ;;  %v997_v32 = vld [vmem:[#allocation3 + $0x1b8] sm:$0xff] }
 0x12f   : > { %5173 = vmatprep.mubr.msk.bf16.mxu1 %vm796_vm3, %v753_v37  ;;  %v730_v41 = vadd.f32 %v5156_v40, %v6159_v43  ;;  %v745_v45 = vmax.f32 %v719_v38, 0.0  ;;  %v984_v36 = vld [vmem:[#allocation3 + $0x150] sm:$0xff]  ;;  %v4748_v38 = vcombine.high %v992_v27, %v996_v30 }
 0x130   : > { %5174 = vmatmul.mubr.msk.bf16.gmra.mxu1 %vm796_vm3, %v754_v34  ;;  %v721_v44 = vpop.f32.mrf.mxu0  ;;  %v988_v40 = vld [vmem:[#allocation3 + $0x170] sm:$0xff] }
 0x131   : > { %v748_v46 = vmax.f32 %v730_v41, 0.0  ;;  %v722_v47 = vadd.f32 %v6159_v43, %v721_v44  ;;  %1448 = vmatpush1.bf16.msra.mxu1 %v4721_v39  ;;  %v950_v43 = vld [vmem:[#allocation3 + $0x40] sm:$0xff]  ;;  %v4750_v39 = vcombine.high %v993_v31, %v997_v32  ;;  %v985_v41 = vld [vmem:[#allocation3 + $0x158] sm:$0xff]  ;;  %v4739_v56 = vcombine.low %v984_v36, %v988_v40 }
 0x132   : > { %1449 = vmatprep.subr.bf16.mxu1 %v4714_v58  ;;  %v4704_v61 = vcombine.high %v950_v43, %v954_v59  ;;  %v4703_v63 = vcombine.low %v950_v43, %v954_v59 }
 0x133   : > { %v746_v48 = vmax.f32 %v722_v47, 0.0  ;;  %v756_v49 = vpack.c.bf16 %v748_v46, %v747_v42  ;;  %v989_v42 = vld [vmem:[#allocation3 + $0x178] sm:$0xff]  ;;  %v4749_v46 = vcombine.low %v993_v31, %v997_v32 }
 0x134   : > { %1338 = vmatprep.subr.bf16.mxu0 %v4704_v61  ;;  %v4741_v43 = vcombine.low %v985_v41, %v989_v42  ;;  %v4734_v61 = vcombine.high %v977_v54, %v981_v55 }
 0x135   : > { %v755_v50 = vpack.c.bf16 %v746_v48, %v745_v45  ;;  %1450 = vmatpush1.bf16.msra.mxu1 %v4713_v57  ;;  %1339 = vmatpush1.bf16.msra.mxu0 %v4703_v63  ;;  %v4747_v45 = vcombine.low %v992_v27, %v996_v30  ;;  %v4740_v48 = vcombine.high %v984_v36, %v988_v40  ;;  %v953_v27 = vld [vmem:[#allocation3 + $0x58] sm:$0xff] }
 0x136   : > { %1451 = vmatprep.subr.bf16.mxu1 %v4706_v1  ;;  %1340 = vmatprep.subr.bf16.mxu0 %v4696_v5  ;;  %v969_v1 = vld [vmem:[#allocation3 + $0xd8] sm:$0xff]  ;;  %v4733_v5 = vcombine.low %v977_v54, %v981_v55 }
 0x137   : > { %5177 = vmatprep.mubr.msk.bf16.mxu1 %vm796_vm3, %v755_v50 }
 0x138   : > { %5178 = vmatmul.mubr.msk.bf16.gmra.mxu1 %vm796_vm3, %v756_v49  ;;  %v4742_v49 = vcombine.high %v985_v41, %v989_v42 }
 0x139   : > { %1452 = vmatpush1.bf16.msra.mxu1 %v4705_v0  ;;  %1341 = vmatpush1.bf16.msra.mxu0 %v4695_v7  ;;  %v972_v0 = vld [vmem:[#allocation3 + $0xf0] sm:$0xff] }
 0x13a   : > { %1453 = vmatprep.subr.bf16.mxu1 %v4698_v9  ;;  %1471 = vmatprep.mubr.bf16.mxu1 %v5941_v10  ;;  %v4724_v7 = vcombine.high %v968_v62, %v972_v0  ;;  %v960_v9 = vld [vmem:[#allocation3 + $0x90] sm:$0xff]  ;;  %v4723_v15 = vcombine.low %v968_v62, %v972_v0 }
 0x13b   : > { %1552 = vmatprep.subr.bf16.mxu0 %v4756_v14  ;;  %v965_v14 = vld [vmem:[#allocation3 + $0xb8] sm:$0xff]  ;;  %v4715_v30 = vcombine.low %v960_v9, %v964_v12 }
 0x13d   : > { %1454 = vmatpush1.bf16.msra.mxu1 %v4697_v8  ;;  %v4726_v8 = vcombine.high %v969_v1, %v973_v2 }
 0x13e   : > { %1665 = vmatprep.subr.bf16.mxu1 %v4758_v18  ;;  %v4725_v18 = vcombine.low %v969_v1, %v973_v2 }
 0x1e0   : > { %v5167_v19 = vpop.f32.mrf.mxu1 }
 0x1e1   : > { %v864_v44 = vadd.f32 %v5167_v19, %v6190_v21 }
 0x1e2   : > { %v855_v20 = vpop.f32.mrf.mxu1 }
 0x1e3   : > { %v856_v23 = vadd.f32 %v6190_v21, %v855_v20  ;;  %v920_v52 = vmax.f32 %v864_v44, 0.0  ;;  %v4716_v20 = vcombine.high %v960_v9, %v964_v12  ;;  %v5290_v9 = vld [vmem:[#allocation6 + $0x2e0] ss:$16 sps:$4 sm:$0xff]  }
 0x1e4   : > { %v5168_v22 = vpop.f32.mrf.mxu1  ;;  %v5293_v12 = vld [vmem:[#allocation6 + $0xc0] ss:$16 sps:$4 sm:$0xff]  }
 0x1e5   : > { %v918_v28 = vmax.f32 %v856_v23, 0.0  ;;  %v867_v34 = vadd.f32 %v5168_v22, %v6190_v21  ;;  %v952_v23 = vld [vmem:[#allocation3 + $0x50] sm:$0xff] }
 0x1e6   : > { %v858_v24 = vpop.f32.mrf.mxu1 }
 0x1e7   : > { %v859_v25 = vadd.f32 %v6190_v21, %v858_v24  ;;  %v921_v47 = vmax.f32 %v867_v34, 0.0  ;;  %v944_v34 = vld [vmem:[#allocation3 + $0x10] sm:$0xff] }
 0x1e8   : > { %v6194_v26 = vpop.f32.mrf.mxu1 }
 0x1e9   : > { %v919_v29 = vmax.f32 %v859_v25, 0.0  ;;  %v6204_v57 = vpack.c.bf16 %v921_v47, %v920_v52  ;;  %v880_v24 = vadd.f32 %v6194_v26, %v6190_v21  ;;  %v956_v25 = vld [vmem:[#allocation3 + $0x70] sm:$0xff] }
 0x1ea   : > { %v871_v33 = vpop.f32.mrf.mxu1  ;;  %v4708_v26 = vcombine.high %v952_v23, %v956_v25  ;;  %v4707_v40 = vcombine.low %v952_v23, %v956_v25  ;;  %v5313_v23 = vld [vmem:[#allocation6 + $0x64] ss:$16 sps:$4 sm:$0xff]   ;;  %v5311_v25 = vld [vmem:[#allocation6 + $0x60] ss:$16 sps:$4 sm:$0xff]  }
 0x1eb   : > { %v6197_v35 = vpack.c.bf16 %v919_v29, %v918_v28  ;;  %v872_v63 = vadd.f32 %v6190_v21, %v871_v33  ;;  %v957_v28 = vld [vmem:[#allocation3 + $0x78] sm:$0xff]  ;;  %v924_v36 = vmax.f32 %v880_v24, 0.0  ;;  %v5316_v24 = vld [vmem:[#allocation6 + $0x264] ss:$16 sps:$4 sm:$0xff]  }
 0x1ec   : > { %v5172_v37 = vpop.f32.mrf.mxu1  ;;  %v4710_v33 = vcombine.high %v953_v27, %v957_v28  ;;  %v4709_v41 = vcombine.low %v953_v27, %v957_v28  ;;  %v5314_v27 = vld [vmem:[#allocation6 + $0x260] ss:$16 sps:$4 sm:$0xff]   ;;  %v5319_v28 = vld [vmem:[#allocation6 + $0x44] ss:$16 sps:$4 sm:$0xff]  }
 0x1ed   : > { %1359 = vmatmul.mubr.bf16.vlgmr.msra.gmra.mxu0 %v6197_v35  ;;  %1472 = vmatmul.mubr.bf16.vlgmr.msra.gmra.mxu1 %v6197_v35  ;;  %v922_v11 = vmax.f32 %v872_v63, 0.0  ;;  %v883_v16 = vadd.f32 %v5172_v37, %v6190_v21  ;;  %v948_v37 = vld [vmem:[#allocation3 + $0x30] sm:$0xff] }
 0x1ee   : > { %1553 = vmatpush1.bf16.msra.mxu0 %v4755_v13  ;;  %1666 = vmatpush1.bf16.msra.mxu1 %v4757_v17  ;;  %v874_v50 = vpop.f32.mrf.mxu1  ;;  %v961_v13 = vld [vmem:[#allocation3 + $0x98] sm:$0xff]  ;;  %v4700_v47 = vcombine.high %v944_v34, %v948_v37  ;;  %v4699_v51 = vcombine.low %v944_v34, %v948_v37  ;;  %v5326_v34 = vld [vmem:[#allocation6 + $0x220] ss:$16 sps:$4 sm:$0xff]   ;;  %v5334_v37 = vld [vmem:[#allocation6 + $0x204] ss:$16 sps:$4 sm:$0xff]  }
 0x1ef   : > { %1368 = vmatprep.mubr.bf16.mxu0 %v5941_v10  ;;  %1481 = vmatprep.mubr.bf16.mxu1 %v5941_v10  ;;  %v875_v58 = vadd.f32 %v6190_v21, %v874_v50  ;;  %v4718_v22 = vcombine.high %v961_v13, %v965_v14  ;;  %v925_v29 = vmax.f32 %v883_v16, 0.0  ;;  %v4717_v31 = vcombine.low %v961_v13, %v965_v14  ;;  %v5296_v13 = vld [vmem:[#allocation6 + $0x2c0] ss:$16 sps:$4 sm:$0xff]   ;;  %v5301_v14 = vld [vmem:[#allocation6 + $0xa4] ss:$16 sps:$4 sm:$0xff]  }
 0x1f0   : > { %1554 = vmatprep.subr.bf16.mxu0 %v4748_v38  ;;  %1667 = vmatprep.subr.bf16.mxu1 %v4750_v39  ;;  %v6207_v59 = vpop.f32.mrf.mxu1  ;;  %v945_v38 = vld [vmem:[#allocation3 + $0x18] sm:$0xff]  ;;  %v5299_v16 = vld [vmem:[#allocation6 + $0xa0] ss:$16 sps:$4 sm:$0xff]  }
 0x1f1   : > { %v923_v3 = vmax.f32 %v875_v58, 0.0  ;;  %v949_v39 = vld [vmem:[#allocation3 + $0x38] sm:$0xff]  ;;  %v6223_v42 = vpack.c.bf16 %v925_v29, %v924_v36  ;;  %v896_v54 = vadd.f32 %v6207_v59, %v6190_v21  ;;  %v5322_v29 = vld [vmem:[#allocation6 + $0x244] ss:$16 sps:$4 sm:$0xff]  }
 0x1f2   : > { %1555 = vmatpush1.bf16.msra.mxu0 %v4747_v45  ;;  %1668 = vmatpush1.bf16.msra.mxu1 %v4749_v46  ;;  %v887_v6 = vpop.f32.mrf.mxu1  ;;  %v4701_v52 = vcombine.low %v945_v38, %v949_v39  ;;  %v5331_v36 = vld [vmem:[#allocation6 + $0x4] ss:$16 sps:$4 sm:$0xff]  }
 0x1f3   : > { %1556 = vmatprep.subr.bf16.mxu0 %v4740_v48  ;;  %1669 = vmatprep.subr.bf16.mxu1 %v4742_v49  ;;  %v6215_v17 = vpack.c.bf16 %v923_v3, %v922_v11  ;;  %v888_v44 = vadd.f32 %v6190_v21, %v887_v6  ;;  %v4702_v48 = vcombine.high %v945_v38, %v949_v39  ;;  %v5298_v11 = vld [vmem:[#allocation6 + $0x2c4] ss:$16 sps:$4 sm:$0xff]   ;;  %v5329_v38 = vld [vmem:[#allocation6] ss:$16 sps:$4 sm:$0xff]  }
 0x1f4   : > { %v5176_v19 = vpop.f32.mrf.mxu1  ;;  %v5332_v39 = vld [vmem:[#allocation6 + $0x200] ss:$16 sps:$4 sm:$0xff]  }
 0x1f5   : > { %1369 = vmatmul.mubr.bf16.gmra.mxu0 %v6204_v57  ;;  %1482 = vmatmul.mubr.bf16.gmra.mxu1 %v6204_v57  ;;  %v926_v49 = vmax.f32 %v888_v44, 0.0  ;;  %v899_v55 = vadd.f32 %v5176_v19, %v6190_v21  ;;  %v5310_v19 = vld [vmem:[#allocation6 + $0x284] ss:$16 sps:$4 sm:$0xff]   ;;  %v5338_v44 = vld [vmem:[#allocation6 + $0x3e0] ss:$16 sps:$4 sm:$0xff]  }
 0x1f6   : > { %1378 = vmatprep.mubr.bf16.mxu0 %v5941_v10  ;;  %1491 = vmatprep.mubr.bf16.mxu1 %v5941_v10  ;;  %v890_v32 = vpop.f32.mrf.mxu1 }
 0x1f7   : > { %1557 = vmatpush1.bf16.msra.mxu0 %v4739_v56  ;;  %1670 = vmatpush1.bf16.msra.mxu1 %v4741_v43  ;;  %v891_v45 = vadd.f32 %v6190_v21, %v890_v32  ;;  %v928_v43 = vmax.f32 %v896_v54, 0.0  ;;  %v5325_v32 = vld [vmem:[#allocation6 + $0x24] ss:$16 sps:$4 sm:$0xff]   ;;  %v5353_v54 = vld [vmem:[#allocation6 + $0x180] ss:$16 sps:$4 sm:$0xff]  }
 0x1f8   : > { %1558 = vmatprep.subr.bf16.mxu0 %v4732_v60  ;;  %1671 = vmatprep.subr.bf16.mxu1 %v4734_v61  ;;  %v5179_v46 = vpop.f32.mrf.mxu1  ;;  %v929_v60 = vmax.f32 %v899_v55, 0.0  ;;  %v5356_v55 = vld [vmem:[#allocation6 + $0x380] ss:$16 sps:$4 sm:$0xff]  }
 0x1f9   : > { %v927_v50 = vmax.f32 %v891_v45, 0.0  ;;  %v912_v2 = vadd.f32 %v5179_v46, %v6190_v21  ;;  %v5343_v45 = vld [vmem:[#allocation6 + $0x1c4] ss:$16 sps:$4 sm:$0xff]  }
 0x1fa   : > { %v903_v53 = vpop.f32.mrf.mxu1  ;;  %v6240_v62 = vpack.c.bf16 %v929_v60, %v928_v43  ;;  %v5346_v46 = vld [vmem:[#allocation6 + $0x3c4] ss:$16 sps:$4 sm:$0xff]   ;;  %v5359_v43 = vld [vmem:[#allocation6 + $0x160] ss:$16 sps:$4 sm:$0xff]  }
 0x1fb   : > { %1559 = vmatpush1.bf16.msra.mxu0 %v4731_v4  ;;  %1672 = vmatpush1.bf16.msra.mxu1 %v4733_v5  ;;  %v6234_v56 = vpack.c.bf16 %v927_v50, %v926_v49  ;;  %v904_v59 = vadd.f32 %v6190_v21, %v903_v53  ;;  %v932_v5 = vmax.f32 %v912_v2, 0.0  ;;  %v5352_v49 = vld [vmem:[#allocation6 + $0x3a4] ss:$16 sps:$4 sm:$0xff]   ;;  %v5347_v50 = vld [vmem:[#allocation6 + $0x1a0] ss:$16 sps:$4 sm:$0xff]  }
 0x1fc   : > { %1560 = vmatprep.subr.bf16.mxu0 %v4724_v7  ;;  %1673 = vmatprep.subr.bf16.mxu1 %v4726_v8  ;;  %v5180_v58 = vpop.f32.mrf.mxu1  ;;  %v5287_v8 = vld [vmem:[#allocation6 + $0xe0] ss:$16 sps:$4 sm:$0xff]   ;;  %v5358_v53 = vld [vmem:[#allocation6 + $0x384] ss:$16 sps:$4 sm:$0xff]  }
 0x1fd   : > { %1379 = vmatmul.mubr.bf16.gmra.mxu0 %v6215_v17  ;;  %1492 = vmatmul.mubr.bf16.gmra.mxu1 %v6215_v17  ;;  %v930_v0 = vmax.f32 %v904_v59, 0.0  ;;  %v915_v3 = vadd.f32 %v5180_v58, %v6190_v21  ;;  %v5364_v58 = vld [vmem:[#allocation6 + $0x364] ss:$16 sps:$4 sm:$0xff]   ;;  %v5362_v60 = vld [vmem:[#allocation6 + $0x360] ss:$16 sps:$4 sm:$0xff]  }
 0x1fe   : > { %1388 = vmatprep.mubr.bf16.mxu0 %v5941_v10  ;;  %1501 = vmatprep.mubr.bf16.mxu1 %v5941_v10  ;;  %v906_v61 = vpop.f32.mrf.mxu1  ;;  %v5365_v59 = vld [vmem:[#allocation6 + $0x140] ss:$16 sps:$4 sm:$0xff]  }
 0x1ff   : > { %1561 = vmatpush1.bf16.msra.mxu0 %v4723_v15  ;;  %1674 = vmatpush1.bf16.msra.mxu1 %v4725_v18  ;;  %v907_v63 = vadd.f32 %v6190_v21, %v906_v61  ;;  %v933_v6 = vmax.f32 %v915_v3, 0.0  ;;  %v5289_v21 = vld [vmem:[#allocation6 + $0xe4] ss:$16 sps:$4 sm:$0xff]   ;;  %v5371_v2 = vld [vmem:[#allocation6 + $0x120] ss:$16 sps:$4 sm:$0xff]  }
 0x200   : > { %1562 = vmatprep.subr.bf16.mxu0 %v4716_v20  ;;  %1675 = vmatprep.subr.bf16.mxu1 %v4718_v22  ;;  %v5304_v15 = vld [vmem:[#allocation6 + $0x2a4] ss:$16 sps:$4 sm:$0xff]   ;;  %v5305_v20 = vld [vmem:[#allocation6 + $0x80] ss:$16 sps:$4 sm:$0xff]  }
 0x201   : > { %v931_v1 = vmax.f32 %v907_v63, 0.0  ;;  %v6256_v7 = vpack.c.bf16 %v933_v6, %v932_v5  ;;  %v5307_v18 = vld [vmem:[#allocation6 + $0x84] ss:$16 sps:$4 sm:$0xff]   ;;  %v5308_v22 = vld [vmem:[#allocation6 + $0x280] ss:$16 sps:$4 sm:$0xff]  }
 0x202   : > { %v5367_v61 = vld [vmem:[#allocation6 + $0x144] ss:$16 sps:$4 sm:$0xff]   ;;  %v5368_v63 = vld [vmem:[#allocation6 + $0x340] ss:$16 sps:$4 sm:$0xff]  }
 0x203   : > { %1563 = vmatpush1.bf16.msra.mxu0 %v4715_v30  ;;  %1676 = vmatpush1.bf16.msra.mxu1 %v4717_v31  ;;  %v6250_v4 = vpack.c.bf16 %v931_v1, %v930_v0  ;;  %v5317_v30 = vld [vmem:[#allocation6 + $0x40] ss:$16 sps:$4 sm:$0xff]   ;;  %v5373_v0 = vld [vmem:[#allocation6 + $0x124] ss:$16 sps:$4 sm:$0xff]  }
 0x204   : > { %1564 = vmatprep.subr.bf16.mxu0 %v4708_v26  ;;  %1677 = vmatprep.subr.bf16.mxu1 %v4710_v33  ;;  %v5320_v31 = vld [vmem:[#allocation6 + $0x240] ss:$16 sps:$4 sm:$0xff]   ;;  %v5328_v26 = vld [vmem:[#allocation6 + $0x224] ss:$16 sps:$4 sm:$0xff]  }
 0x205   : > { %1389 = vmatmul.mubr.bf16.gmra.mxu0 %v6223_v42  ;;  %1502 = vmatmul.mubr.bf16.gmra.mxu1 %v6223_v42  ;;  %v5323_v33 = vld [vmem:[#allocation6 + $0x20] ss:$16 sps:$4 sm:$0xff]   ;;  %v5376_v1 = vld [vmem:[#allocation6 + $0x324] ss:$16 sps:$4 sm:$0xff]  }
 0x206   : > { %1398 = vmatprep.mubr.bf16.mxu0 %v5941_v10  ;;  %1511 = vmatprep.mubr.bf16.mxu1 %v5941_v10  ;;  %v5374_v3 = vld [vmem:[#allocation6 + $0x320] ss:$16 sps:$4 sm:$0xff]   ;;  %v5382_v5 = vld [vmem:[#allocation6 + $0x304] ss:$16 sps:$4 sm:$0xff]  }
 0x207   : > { %1565 = vmatpush1.bf16.msra.mxu0 %v4707_v40  ;;  %1678 = vmatpush1.bf16.msra.mxu1 %v4709_v41  ;;  %v5337_v40 = vld [vmem:[#allocation6 + $0x1e4] ss:$16 sps:$4 sm:$0xff]   ;;  %v5377_v6 = vld [vmem:[#allocation6 + $0x100] ss:$16 sps:$4 sm:$0xff]  }
 0x208   : > { %1566 = vmatprep.subr.bf16.mxu0 %v4700_v47  ;;  %1679 = vmatprep.subr.bf16.mxu1 %v4702_v48  ;;  %v5340_v41 = vld [vmem:[#allocation6 + $0x3e4] ss:$16 sps:$4 sm:$0xff]   ;;  %v5341_v47 = vld [vmem:[#allocation6 + $0x1c0] ss:$16 sps:$4 sm:$0xff]  }
 0x209   : > { %v5344_v48 = vld [vmem:[#allocation6 + $0x3c0] ss:$16 sps:$4 sm:$0xff]  }
 0x20b   : > { %1567 = vmatpush1.bf16.msra.mxu0 %v4699_v51  ;;  %1680 = vmatpush1.bf16.msra.mxu1 %v4701_v52  ;;  %v5350_v51 = vld [vmem:[#allocation6 + $0x3a0] ss:$16 sps:$4 sm:$0xff]   ;;  %v5355_v52 = vld [vmem:[#allocation6 + $0x184] ss:$16 sps:$4 sm:$0xff]  }
 0x20c   : > { %3605 = vmatprep.subr.bf16.mxu0 %v5289_v21  ;;  %v5385_v21 = vld [vmem:[#allocation6 + $0x4e4] ss:$16 sps:$4 sm:$0xff]  }
 0x20d   : > { %1399 = vmatmul.mubr.bf16.gmra.mxu0 %v6234_v56  ;;  %1512 = vmatmul.mubr.bf16.gmra.mxu1 %v6234_v56 }
 0x20e   : > { %1408 = vmatprep.mubr.bf16.mxu0 %v5941_v10  ;;  %1521 = vmatprep.mubr.bf16.mxu1 %v5941_v10 }
 0x215   : > { %1409 = vmatmul.mubr.bf16.gmra.mxu0 %v6240_v62  ;;  %1522 = vmatmul.mubr.bf16.gmra.mxu1 %v6240_v62 }
 0x216   : > { %1418 = vmatprep.mubr.bf16.mxu0 %v5941_v10  ;;  %1531 = vmatprep.mubr.bf16.mxu1 %v5941_v10 }
 0x21d   : > { %1419 = vmatmul.mubr.bf16.gmra.mxu0 %v6250_v4  ;;  %1532 = vmatmul.mubr.bf16.gmra.mxu1 %v6250_v4 }
 0x21e   : > { %1428 = vmatprep.mubr.bf16.mxu0 %v5941_v10  ;;  %1541 = vmatprep.mubr.bf16.mxu1 %v5941_v10 }
 0x225   : > { %1429 = vmatmul.mubr.bf16.gmra.mxu0 %v6256_v7  ;;  %1542 = vmatmul.mubr.bf16.gmra.mxu1 %v6256_v7 }
 0x226   : > { %1584 = vmatprep.mubr.bf16.mxu0 %v5941_v10  ;;  %1697 = vmatprep.mubr.bf16.mxu1 %v5941_v10 }
 0x22d   : > { %1585 = vmatmul.mubr.bf16.vlgmr.msra.gmra.mxu0 %v6197_v35  ;;  %1698 = vmatmul.mubr.bf16.vlgmr.msra.gmra.mxu1 %v6197_v35  ;;  %v5292_v35 = vld [vmem:[#allocation6 + $0x2e4] ss:$16 sps:$4 sm:$0xff]  }
 0x22e   : > { %1594 = vmatprep.mubr.bf16.mxu0 %v5941_v10  ;;  %1707 = vmatprep.mubr.bf16.mxu1 %v5941_v10 }
 0x22f   : > { %3646 = vmatprep.subr.bf16.mxu1 %v5292_v35  ;;  %3606 = vmatpush1.bf16.msra.mxu0 %v5287_v8  ;;  %v5388_v35 = vld [vmem:[#allocation6 + $0x6e4] ss:$16 sps:$4 sm:$0xff]  }
 0x230   : > { %3647 = vmatpush1.bf16.msra.mxu1 %v5290_v9 }
 0x231   : > { %3648 = vmatprep.subr.bf16.mxu1 %v5298_v11 }
 0x234   : > { %3649 = vmatpush1.bf16.msra.mxu1 %v5296_v13 }
 0x235   : > { %1595 = vmatmul.mubr.bf16.gmra.mxu0 %v6204_v57  ;;  %1708 = vmatmul.mubr.bf16.gmra.mxu1 %v6204_v57  ;;  %v5295_v57 = vld [vmem:[#allocation6 + $0xc4] ss:$16 sps:$4 sm:$0xff]  }
 0x236   : > { %1604 = vmatprep.mubr.bf16.mxu0 %v5941_v10  ;;  %1717 = vmatprep.mubr.bf16.mxu1 %v5941_v10 }
 0x237   : > { %3607 = vmatprep.subr.bf16.mxu0 %v5295_v57  ;;  %3650 = vmatprep.subr.bf16.mxu1 %v5304_v15 }
 0x238   : > { %3608 = vmatpush1.bf16.msra.mxu0 %v5293_v12 }
 0x239   : > { %3609 = vmatprep.subr.bf16.mxu0 %v5301_v14 }
 0x23c   : > { %3610 = vmatpush1.bf16.msra.mxu0 %v5299_v16 }
 0x23d   : > { %1605 = vmatmul.mubr.bf16.gmra.mxu0 %v6215_v17  ;;  %1718 = vmatmul.mubr.bf16.gmra.mxu1 %v6215_v17  ;;  %v5302_v17 = vld [vmem:[#allocation6 + $0x2a0] ss:$16 sps:$4 sm:$0xff]  }
 0x23e   : > { %1614 = vmatprep.mubr.bf16.mxu0 %v5941_v10  ;;  %1727 = vmatprep.mubr.bf16.mxu1 %v5941_v10 }
 0x23f   : > { %3651 = vmatpush1.bf16.msra.mxu1 %v5302_v17  ;;  %3611 = vmatprep.subr.bf16.mxu0 %v5307_v18 }
 0x240   : > { %3652 = vmatprep.subr.bf16.mxu1 %v5310_v19  ;;  %3612 = vmatpush1.bf16.msra.mxu0 %v5305_v20 }
 0x241   : > { %3613 = vmatprep.subr.bf16.mxu0 %v5313_v23 }
 0x243   : > { %3653 = vmatpush1.bf16.msra.mxu1 %v5308_v22 }
 0x244   : > { %3654 = vmatprep.subr.bf16.mxu1 %v5316_v24  ;;  %3614 = vmatpush1.bf16.msra.mxu0 %v5311_v25 }
 0x245   : > { %1615 = vmatmul.mubr.bf16.gmra.mxu0 %v6223_v42  ;;  %1728 = vmatmul.mubr.bf16.gmra.mxu1 %v6223_v42  ;;  %v5335_v42 = vld [vmem:[#allocation6 + $0x1e0] ss:$16 sps:$4 sm:$0xff]  }
 0x246   : > { %1624 = vmatprep.mubr.bf16.mxu0 %v5941_v10  ;;  %1737 = vmatprep.mubr.bf16.mxu1 %v5941_v10 }
 0x247   : > { %3655 = vmatpush1.bf16.msra.mxu1 %v5314_v27  ;;  %3615 = vmatprep.subr.bf16.mxu0 %v5319_v28 }
 0x248   : > { %3656 = vmatprep.subr.bf16.mxu1 %v5322_v29  ;;  %3616 = vmatpush1.bf16.msra.mxu0 %v5317_v30 }
 0x249   : > { %3617 = vmatprep.subr.bf16.mxu0 %v5325_v32 }
 0x24b   : > { %3657 = vmatpush1.bf16.msra.mxu1 %v5320_v31 }
 0x24c   : > { %3658 = vmatprep.subr.bf16.mxu1 %v5328_v26  ;;  %3618 = vmatpush1.bf16.msra.mxu0 %v5323_v33 }
 0x24d   : > { %1625 = vmatmul.mubr.bf16.gmra.mxu0 %v6234_v56  ;;  %1738 = vmatmul.mubr.bf16.gmra.mxu1 %v6234_v56  ;;  %v5361_v56 = vld [vmem:[#allocation6 + $0x164] ss:$16 sps:$4 sm:$0xff]  }
 0x24e   : > { %1634 = vmatprep.mubr.bf16.mxu0 %v5941_v10  ;;  %1747 = vmatprep.mubr.bf16.mxu1 %v5941_v10 }
 0x24f   : > { %3659 = vmatpush1.bf16.msra.mxu1 %v5326_v34  ;;  %3619 = vmatprep.subr.bf16.mxu0 %v5331_v36 }
 0x250   : > { %3660 = vmatprep.subr.bf16.mxu1 %v5334_v37  ;;  %3620 = vmatpush1.bf16.msra.mxu0 %v5329_v38 }
 0x251   : > { %3621 = vmatprep.subr.bf16.mxu0 %v5337_v40 }
 0x253   : > { %3661 = vmatpush1.bf16.msra.mxu1 %v5332_v39 }
 0x254   : > { %3662 = vmatprep.subr.bf16.mxu1 %v5340_v41  ;;  %3622 = vmatpush2.bf16.msra.mxu0 %v5335_v42 }
 0x255   : > { %1635 = vmatmul.mubr.bf16.gmra.mxu0 %v6240_v62  ;;  %1748 = vmatmul.mubr.bf16.gmra.mxu1 %v6240_v62  ;;  %v5370_v62 = vld [vmem:[#allocation6 + $0x344] ss:$16 sps:$4 sm:$0xff]  }
 0x256   : > { %1644 = vmatprep.mubr.bf16.mxu0 %v5941_v10  ;;  %1757 = vmatprep.mubr.bf16.mxu1 %v5941_v10 }
 0x257   : > { %3663 = vmatpush2.bf16.msra.mxu1 %v5338_v44  ;;  %3623 = vmatprep.subr.bf16.mxu0 %v5343_v45 }
 0x258   : > { %3664 = vmatprep.subr.bf16.mxu1 %v5346_v46  ;;  %3624 = vmatpush2.bf16.msra.mxu0 %v5341_v47 }
 0x25b   : > { %3665 = vmatpush2.bf16.msra.mxu1 %v5344_v48 }
 0x25c   : > { %3666 = vmatprep.subr.bf16.mxu1 %v5352_v49 }
 0x25d   : > { %1645 = vmatmul.mubr.bf16.gmra.mxu0 %v6250_v4  ;;  %1758 = vmatmul.mubr.bf16.gmra.mxu1 %v6250_v4  ;;  %v5379_v4 = vld [vmem:[#allocation6 + $0x104] ss:$16 sps:$4 sm:$0xff]  }
 0x25e   : > { %1654 = vmatprep.mubr.bf16.mxu0 %v5941_v10  ;;  %1767 = vmatprep.mubr.bf16.mxu1 %v5941_v10  ;;  %v5349_v10 = vld [vmem:[#allocation6 + $0x1a4] ss:$16 sps:$4 sm:$0xff]  }
 0x25f   : > { %3625 = vmatprep.subr.bf16.mxu0 %v5349_v10  ;;  %3667 = vmatpush2.bf16.msra.mxu1 %v5350_v51 }
 0x260   : > { %3626 = vmatpush2.bf16.msra.mxu0 %v5347_v50  ;;  %3668 = vmatprep.subr.bf16.mxu1 %v5358_v53 }
 0x261   : > { %3627 = vmatprep.subr.bf16.mxu0 %v5355_v52 }
 0x263   : > { %3669 = vmatpush2.bf16.msra.mxu1 %v5356_v55 }
 0x264   : > { %3628 = vmatpush2.bf16.msra.mxu0 %v5353_v54  ;;  %3670 = vmatprep.subr.bf16.mxu1 %v5364_v58 }
 0x265   : > { %1655 = vmatmul.mubr.bf16.gmra.mxu0 %v6256_v7  ;;  %1768 = vmatmul.mubr.bf16.gmra.mxu1 %v6256_v7  ;;  %v5380_v7 = vld [vmem:[#allocation6 + $0x300] ss:$16 sps:$4 sm:$0xff]  }
 0x266   : > { %3629 = vmatprep.subr.bf16.mxu0 %v5361_v56 }
 0x267   : > { %3671 = vmatpush2.bf16.msra.mxu1 %v5362_v60 }
 0x268   : > { %3630 = vmatpush2.bf16.msra.mxu0 %v5359_v43  ;;  %3672 = vmatprep.subr.bf16.mxu1 %v5370_v62 }
 0x269   : > { %3631 = vmatprep.subr.bf16.mxu0 %v5367_v61 }
 0x26b   : > { %3673 = vmatpush2.bf16.msra.mxu1 %v5368_v63 }
 0x26c   : > { %3632 = vmatpush2.bf16.msra.mxu0 %v5365_v59  ;;  %3674 = vmatprep.subr.bf16.mxu1 %v5376_v1 }
 0x26d   : > { %3633 = vmatprep.subr.bf16.mxu0 %v5373_v0 }
 0x26f   : > { %3675 = vmatpush2.bf16.msra.mxu1 %v5374_v3 }
 0x270   : > { %3634 = vmatpush2.bf16.msra.mxu0 %v5371_v2  ;;  %3676 = vmatprep.subr.bf16.mxu1 %v5382_v5 }
 0x271   : > { %3635 = vmatprep.subr.bf16.mxu0 %v5379_v4 }
 0x273   : > { %3677 = vmatpush2.bf16.msra.mxu1 %v5380_v7 }
 0x274   : > { %3636 = vmatpush2.bf16.msra.mxu0 %v5377_v6  ;;  %3728 = vmatprep.subr.bf16.mxu1 %v5388_v35 }
 0x275   : > { %3687 = vmatprep.subr.bf16.mxu0 %v5385_v21 }
 0x2ad   : > { %v1360_v8 = vpop.f32.mrf.mxu0  ;;  %v1473_v9 = vpop.f32.mrf.mxu1 }
 0x2af   : > { %v1362_v57 = vpop.f32.mrf.mxu0  ;;  %v1475_v11 = vpop.f32.mrf.mxu1 }
 0x2b1   : > { %v1364_v12 = vpop.f32.mrf.mxu0  ;;  %v1477_v13 = vpop.f32.mrf.mxu1 }
 0x2b2   : > { %v1778_v45 = vmax.f32 %v1360_v8, %v1364_v12  ;;  %v1808_v46 = vmax.f32 %v1473_v9, %v1477_v13 }
 0x2b3   : > { %v1366_v14 = vpop.f32.mrf.mxu0  ;;  %v1479_v15 = vpop.f32.mrf.mxu1 }
 0x2b4   : > { %v1793_v10 = vmax.f32 %v1362_v57, %v1366_v14  ;;  %v1823_v49 = vmax.f32 %v1475_v11, %v1479_v15 }
 0x2b5   : > { %v1370_v16 = vpop.f32.mrf.mxu0  ;;  %v1483_v17 = vpop.f32.mrf.mxu1 }
 0x2b6   : > { %v1779_v50 = vmax.f32 %v1778_v45, %v1370_v16  ;;  %v1809_v51 = vmax.f32 %v1808_v46, %v1483_v17 }
 0x2b7   : > { %v1372_v18 = vpop.f32.mrf.mxu0  ;;  %v1485_v19 = vpop.f32.mrf.mxu1 }
 0x2b8   : > { %v1794_v54 = vmax.f32 %v1793_v10, %v1372_v18  ;;  %v1824_v55 = vmax.f32 %v1823_v49, %v1485_v19 }
 0x2b9   : > { %v1374_v20 = vpop.f32.mrf.mxu0  ;;  %v1487_v22 = vpop.f32.mrf.mxu1 }
 0x2ba   : > { %v1780_v56 = vmax.f32 %v1779_v50, %v1374_v20  ;;  %v1810_v58 = vmax.f32 %v1809_v51, %v1487_v22 }
 0x2bb   : > { %v1376_v23 = vpop.f32.mrf.mxu0  ;;  %v1489_v24 = vpop.f32.mrf.mxu1 }
 0x2bc   : > { %v1795_v61 = vmax.f32 %v1794_v54, %v1376_v23  ;;  %v1825_v62 = vmax.f32 %v1824_v55, %v1489_v24 }
 0x2bd   : > { %v1380_v25 = vpop.f32.mrf.mxu0  ;;  %v1493_v27 = vpop.f32.mrf.mxu1 }
 0x2be   : > { %v1781_v59 = vmax.f32 %v1780_v56, %v1380_v25  ;;  %v1811_v63 = vmax.f32 %v1810_v58, %v1493_v27  ;;  %v1983_v56 = vlaneseq }
 0x2bf   : > { %v1382_v28 = vpop.f32.mrf.mxu0  ;;  %v1495_v29 = vpop.f32.mrf.mxu1 }
 0x2c0   : > { %v1796_v2 = vmax.f32 %v1795_v61, %v1382_v28  ;;  %v1826_v3 = vmax.f32 %v1825_v62, %v1495_v29 }
 0x2c1   : > { %v1384_v30 = vpop.f32.mrf.mxu0  ;;  %v1497_v31 = vpop.f32.mrf.mxu1 }
 0x2c2   : > { %v1782_v4 = vmax.f32 %v1781_v59, %v1384_v30  ;;  %v1812_v5 = vmax.f32 %v1811_v63, %v1497_v31 }
 0x2c3   : > { %v1386_v32 = vpop.f32.mrf.mxu0  ;;  %v1499_v26 = vpop.f32.mrf.mxu1 }
 0x2c4   : > { %v1797_v21 = vmax.f32 %v1796_v2, %v1386_v32  ;;  %v1827_v35 = vmax.f32 %v1826_v3, %v1499_v26  ;;  %v6292_v3 = vshrl.u32 %v1983_v56, 7 }
 0x2c5   : > { %v1390_v33 = vpop.f32.mrf.mxu0  ;;  %v1503_v34 = vpop.f32.mrf.mxu1 }
 0x2c6   : > { %v1783_v8 = vmax.f32 %v1782_v4, %v1390_v33  ;;  %v1813_v9 = vmax.f32 %v1812_v5, %v1503_v34 }
 0x2c7   : > { %v1392_v36 = vpop.f32.mrf.mxu0  ;;  %v1505_v37 = vpop.f32.mrf.mxu1 }
 0x2c8   : > { %v1798_v12 = vmax.f32 %v1797_v21, %v1392_v36  ;;  %v1828_v13 = vmax.f32 %v1827_v35, %v1505_v37 }
 0x2c9   : > { %v1394_v38 = vpop.f32.mrf.mxu0  ;;  %v1507_v39 = vpop.f32.mrf.mxu1 }
 0x2ca   : > { %v1784_v14 = vmax.f32 %v1783_v8, %v1394_v38  ;;  %v1814_v15 = vmax.f32 %v1813_v9, %v1507_v39 }
 0x2cb   : > { %v1396_v40 = vpop.f32.mrf.mxu0  ;;  %v1509_v41 = vpop.f32.mrf.mxu1 }
 0x2cc   : > { %v1799_v18 = vmax.f32 %v1798_v12, %v1396_v40  ;;  %v1829_v19 = vmax.f32 %v1828_v13, %v1509_v41 }
 0x2cd   : > { %v1400_v42 = vpop.f32.mrf.mxu0  ;;  %v1513_v44 = vpop.f32.mrf.mxu1 }
 0x2ce   : > { %v1785_v20 = vmax.f32 %v1784_v14, %v1400_v42  ;;  %v1815_v22 = vmax.f32 %v1814_v15, %v1513_v44  ;;  %v6299_v14 = vsub.s32 0, %v6292_v3  ;;  %v1993_v15 = vsub.s32 2, %v6292_v3 }
 0x2cf   : > { %v1402_v47 = vpop.f32.mrf.mxu0  ;;  %v1515_v48 = vpop.f32.mrf.mxu1 }
 0x2d0   : > { %v1800_v25 = vmax.f32 %v1799_v18, %v1402_v47  ;;  %v1830_v27 = vmax.f32 %v1829_v19, %v1515_v48  ;;  %v6309_v19 = vld [vmem:[%s6653_s6] sm:$0xff] }
 0x2d1   : > { %v1404_v52 = vpop.f32.mrf.mxu0  ;;  %v1517_v53 = vpop.f32.mrf.mxu1 }
 0x2d2   : > { %v1786_v28 = vmax.f32 %v1785_v20, %v1404_v52  ;;  %v1816_v29 = vmax.f32 %v1815_v22, %v1517_v53 }
 0x2d3   : > { %v1406_v43 = vpop.f32.mrf.mxu0  ;;  %v1519_v60 = vpop.f32.mrf.mxu1 }
 0x2d4   : > { %v1801_v32 = vmax.f32 %v1800_v25, %v1406_v43  ;;  %v1831_v26 = vmax.f32 %v1830_v27, %v1519_v60 }
 0x2d5   : > { %v1410_v0 = vpop.f32.mrf.mxu0  ;;  %v1523_v1 = vpop.f32.mrf.mxu1 }
 0x2d6   : > { %v1787_v33 = vmax.f32 %v1786_v28, %v1410_v0  ;;  %v1817_v34 = vmax.f32 %v1816_v29, %v1523_v1 }
 0x2d7   : > { %v1412_v6 = vpop.f32.mrf.mxu0  ;;  %v1525_v7 = vpop.f32.mrf.mxu1 }
 0x2d8   : > { %v1802_v38 = vmax.f32 %v1801_v32, %v1412_v6  ;;  %v1832_v39 = vmax.f32 %v1831_v26, %v1525_v7  ;;  %v1994_v32 = vrot.slane %v6309_v19, %v1993_v15 }
 0x2d9   : > { %v1414_v57 = vpop.f32.mrf.mxu0  ;;  %v1527_v11 = vpop.f32.mrf.mxu1 }
 0x2da   : > { %v1788_v40 = vmax.f32 %v1787_v33, %v1414_v57  ;;  %v1818_v41 = vmax.f32 %v1817_v34, %v1527_v11  ;;  %v6325_v34 = vsub.s32 1, %v6292_v3 }
 0x2db   : > { %v1416_v16 = vpop.f32.mrf.mxu0  ;;  %v1529_v17 = vpop.f32.mrf.mxu1 }
 0x2dc   : > { %v1803_v45 = vmax.f32 %v1802_v38, %v1416_v16  ;;  %v1833_v46 = vmax.f32 %v1832_v39, %v1529_v17 }
 0x2dd   : > { %v1420_v23 = vpop.f32.mrf.mxu0  ;;  %v1533_v24 = vpop.f32.mrf.mxu1 }
 0x2de   : > { %v1789_v47 = vmax.f32 %v1788_v40, %v1420_v23  ;;  %v1819_v48 = vmax.f32 %v1818_v41, %v1533_v24 }
 0x2df   : > { %v1422_v30 = vpop.f32.mrf.mxu0  ;;  %v1535_v31 = vpop.f32.mrf.mxu1 }
 0x2e0   : > { %v1804_v50 = vmax.f32 %v1803_v45, %v1422_v30  ;;  %v1834_v51 = vmax.f32 %v1833_v46, %v1535_v31  ;;  %v1986_v31 = vrot.slane %v6309_v19, %v6299_v14 }
 0x2e1   : > { %v1424_v36 = vpop.f32.mrf.mxu0  ;;  %v1537_v37 = vpop.f32.mrf.mxu1 }
 0x2e2   : > { %v1790_v52 = vmax.f32 %v1789_v47, %v1424_v36  ;;  %v1820_v53 = vmax.f32 %v1819_v48, %v1537_v37  ;;  %v1997_v36 = vsub.s32 3, %v6292_v3 }
 0x2e3   : > { %v1426_v42 = vpop.f32.mrf.mxu0  ;;  %v1539_v44 = vpop.f32.mrf.mxu1 }
 0x2e4   : > { %v1805_v58 = vmax.f32 %v1804_v50, %v1426_v42  ;;  %v1835_v43 = vmax.f32 %v1834_v51, %v1539_v44  ;;  %v1998_v50 = vrot.slane %v6309_v19, %v1997_v36 }
 0x2e5   : > { %v1430_v10 = vpop.f32.mrf.mxu0  ;;  %v1543_v49 = vpop.f32.mrf.mxu1 }
 0x2e6   : > { %v1791_v60 = vmax.f32 %v1790_v52, %v1430_v10  ;;  %v1821_v61 = vmax.f32 %v1820_v53, %v1543_v49  ;;  %v1990_v49 = vrot.slane %v6309_v19, %v6325_v34 }
 0x2e7   : > { %v1432_v54 = vpop.f32.mrf.mxu0  ;;  %v1545_v55 = vpop.f32.mrf.mxu1 }
 0x2e8   : > { %v1806_v63 = vmax.f32 %v1805_v58, %v1432_v54  ;;  %v1836_v0 = vmax.f32 %v1835_v43, %v1545_v55 }
 0x2e9   : > { %v1434_v62 = vpop.f32.mrf.mxu0  ;;  %v1547_v59 = vpop.f32.mrf.mxu1 }
 0x2ea   : > { %v1792_v1 = vmax.f32 %v1791_v60, %v1434_v62  ;;  %v1822_v2 = vmax.f32 %v1821_v61, %v1547_v59 }
 0x2eb   : > { %v1436_v4 = vpop.f32.mrf.mxu0  ;;  %v1549_v5 = vpop.f32.mrf.mxu1 }
 0x2ec   : > { %v1933_v6 = vrot.slane %v1792_v1, 4  ;;  %v1945_v7 = vrot.slane %v1822_v2, 4  ;;  %v1807_v21 = vmax.f32 %v1806_v63, %v1436_v4  ;;  %v1837_v35 = vmax.f32 %v1836_v0, %v1549_v5 }
 0x2ed   : > { %v6294_v8 = vpop.f32.mrf.mxu0  ;;  %v6296_v9 = vpop.f32.mrf.mxu1 }
 0x2ee   : > { %v1934_v57 = vmax.f32 %v1792_v1, %v1933_v6  ;;  %v1946_v11 = vmax.f32 %v1822_v2, %v1945_v7  ;;  %v1939_v12 = vrot.slane %v1807_v21, 4  ;;  %v1951_v13 = vrot.slane %v1837_v35, 4 }
 0x2ef   : > { %v6302_v16 = vpop.f32.mrf.mxu0  ;;  %v6304_v17 = vpop.f32.mrf.mxu1 }
 0x2f0   : > { %v1935_v18 = vrot.slane %v1934_v57, 2  ;;  %v1947_v20 = vrot.slane %v1946_v11, 2  ;;  %v1940_v22 = vmax.f32 %v1807_v21, %v1939_v12  ;;  %v1952_v23 = vmax.f32 %v1837_v35, %v1951_v13  ;;  %v5383_v21 = vld [vmem:[#allocation6 + $0x4e0] ss:$16 sps:$4 sm:$0xff]   ;;  %v5391_v12 = vld [vmem:[#allocation6 + $0x4c4] ss:$16 sps:$4 sm:$0xff]  }
 0x2f1   : > { %v6311_v24 = vpop.f32.mrf.mxu0  ;;  %v6313_v25 = vpop.f32.mrf.mxu1  ;;  %v5386_v35 = vld [vmem:[#allocation6 + $0x6e0] ss:$16 sps:$4 sm:$0xff]   ;;  %v5394_v13 = vld [vmem:[#allocation6 + $0x6c4] ss:$16 sps:$4 sm:$0xff]  }
 0x2f2   : > { %v1936_v27 = vmax.f32 %v1934_v57, %v1935_v18  ;;  %v1948_v28 = vmax.f32 %v1946_v11, %v1947_v20  ;;  %v1941_v29 = vrot.slane %v1940_v22, 2  ;;  %v1953_v30 = vrot.slane %v1952_v23, 2 }
 0x2f3   : > { %v6320_v26 = vpop.f32.mrf.mxu0  ;;  %v6322_v33 = vpop.f32.mrf.mxu1 }
 0x2f4   : > { %v1937_v37 = vrot.slane %v1936_v27, 1  ;;  %v1949_v38 = vrot.slane %v1948_v28, 1  ;;  %v1942_v39 = vmax.f32 %v1940_v22, %v1941_v29  ;;  %v1954_v40 = vmax.f32 %v1952_v23, %v1953_v30  ;;  %v5397_v29 = vld [vmem:[#allocation6 + $0x4a4] ss:$16 sps:$4 sm:$0xff]  }
 0x2f5   : > { %v6328_v41 = vpop.f32.mrf.mxu0  ;;  %v6330_v42 = vpop.f32.mrf.mxu1  ;;  %v5400_v30 = vld [vmem:[#allocation6 + $0x6a4] ss:$16 sps:$4 sm:$0xff]  }
 0x2f6   : > { %v1938_v44 = vmax.f32 %v1936_v27, %v1937_v37  ;;  %v1950_v45 = vmax.f32 %v1948_v28, %v1949_v38  ;;  %v1943_v46 = vrot.slane %v1942_v39, 1  ;;  %v1955_v47 = vrot.slane %v1954_v40, 1  ;;  %v5389_v27 = vld [vmem:[#allocation6 + $0x4c0] ss:$16 sps:$4 sm:$0xff]  }
 0x2f7   : > { %v6332_v48 = vpop.f32.mrf.mxu0  ;;  %v6334_v10 = vpop.f32.mrf.mxu1  ;;  %v5392_v28 = vld [vmem:[#allocation6 + $0x6c0] ss:$16 sps:$4 sm:$0xff]  }
 0x2f8   : > { %v2023_v51 = vadd.f32 %v1986_v31, %v1938_v44  ;;  %v2025_v52 = vadd.f32 %v1994_v32, %v1950_v45  ;;  %v1944_v53 = vmax.f32 %v1942_v39, %v1943_v46  ;;  %v1956_v54 = vmax.f32 %v1954_v40, %v1955_v47  ;;  %v5395_v39 = vld [vmem:[#allocation6 + $0x4a0] ss:$16 sps:$4 sm:$0xff]   ;;  %v5403_v44 = vld [vmem:[#allocation6 + $0x484] ss:$16 sps:$4 sm:$0xff]  }
 0x2f9   : > { %v6341_v55 = vpop.f32.mrf.mxu0  ;;  %v6343_v56 = vpop.f32.mrf.mxu1  ;;  %v5398_v40 = vld [vmem:[#allocation6 + $0x6a0] ss:$16 sps:$4 sm:$0xff]   ;;  %v5406_v45 = vld [vmem:[#allocation6 + $0x684] ss:$16 sps:$4 sm:$0xff]  }
 0x2fa   : > { %v2024_v60 = vadd.f32 %v1990_v49, %v1944_v53  ;;  %v2026_v61 = vadd.f32 %v1998_v50, %v1956_v54  ;;  %v2031_v62 = vmax.f32 %v2023_v51, 0.0  ;;  %v2033_v59 = vmax.f32 %v2025_v52, 0.0  ;;  %v5401_v51 = vld [vmem:[#allocation6 + $0x480] ss:$16 sps:$4 sm:$0xff]   ;;  %v5409_v53 = vld [vmem:[#allocation6 + $0x464] ss:$16 sps:$4 sm:$0xff]  }
 0x2fb   : > { %v6345_v58 = vpop.f32.mrf.mxu0  ;;  %v6347_v43 = vpop.f32.mrf.mxu1  ;;  %v5404_v52 = vld [vmem:[#allocation6 + $0x680] ss:$16 sps:$4 sm:$0xff]   ;;  %v5412_v54 = vld [vmem:[#allocation6 + $0x664] ss:$16 sps:$4 sm:$0xff]  }
 0x2fc   : > { %v2032_v1 = vmax.f32 %v2024_v60, 0.0  ;;  %v2034_v2 = vmax.f32 %v2026_v61, 0.0  ;;  %v6361_v57 = vpack.c.bf16 %v2031_v62, %v2031_v62  ;;  %v6363_v11 = vpack.c.bf16 %v2033_v59, %v2033_v59 }
 0x2fd   : > { %v6349_v63 = vpop.f32.mrf.mxu0  ;;  %v6351_v0 = vpop.f32.mrf.mxu1  ;;  %v1838_v62 = vmax.f32 %v6294_v8, %v6311_v24  ;;  %v1868_v59 = vmax.f32 %v6296_v9, %v6313_v25  ;;  %v5415_v9 = vld [vmem:[#allocation6 + $0x444] ss:$16 sps:$4 sm:$0xff]  }
 0x2fe   : > { %v6357_v6 = vpack.c.bf16 %v2032_v1, %v2032_v1  ;;  %v6359_v7 = vpack.c.bf16 %v2034_v2, %v2034_v2  ;;  %v1853_v1 = vmax.f32 %v6302_v16, %v6320_v26  ;;  %v5418_v24 = vld [vmem:[#allocation6 + $0x644] ss:$16 sps:$4 sm:$0xff]  }
 0x2ff   : > { %v6353_v4 = vpop.f32.mrf.mxu0  ;;  %v6355_v5 = vpop.f32.mrf.mxu1  ;;  %v1869_v8 = vmax.f32 %v1868_v59, %v6330_v42 }
 0x300   : > { %3637 = vmatprep.mubr.bf16.mxu0 %v6357_v6  ;;  %3678 = vmatprep.mubr.bf16.mxu1 %v6359_v7  ;;  %v1854_v16 = vmax.f32 %v1853_v1, %v6332_v48  ;;  %v5416_v48 = vld [vmem:[#allocation6 + $0x640] ss:$16 sps:$4 sm:$0xff]  }
 0x301   : > { %v6367_v18 = vpop.f32.mrf.mxu0  ;;  %v6369_v20 = vpop.f32.mrf.mxu1  ;;  %3638 = vmatmul.mubr.bf16.vlgmr.msra.gmra.mxu0 %v6361_v57  ;;  %3679 = vmatmul.mubr.bf16.vlgmr.msra.gmra.mxu1 %v6363_v11 }
 0x302   : > { %3688 = vmatpush1.bf16.msra.mxu0 %v5383_v21  ;;  %3729 = vmatpush1.bf16.msra.mxu1 %v5386_v35  ;;  %v5407_v35 = vld [vmem:[#allocation6 + $0x460] ss:$16 sps:$4 sm:$0xff]  }
 0x303   : > { %v6373_v22 = vpop.f32.mrf.mxu0  ;;  %v6375_v23 = vpop.f32.mrf.mxu1  ;;  %3689 = vmatprep.subr.bf16.mxu0 %v5391_v12  ;;  %3730 = vmatprep.subr.bf16.mxu1 %v5394_v13  ;;  %v5410_v12 = vld [vmem:[#allocation6 + $0x660] ss:$16 sps:$4 sm:$0xff]   ;;  %v1883_v13 = vmax.f32 %v6304_v17, %v6322_v33  ;;  %v1870_v17 = vmax.f32 %v1869_v8, %v6343_v56  ;;  %v1855_v33 = vmax.f32 %v1854_v16, %v6345_v58  ;;  %v5424_v56 = vld [vmem:[#allocation6 + $0x624] ss:$16 sps:$4 sm:$0xff]  }
 0x304   : > { %v5425_v8 = vld [vmem:[#allocation6 + $0x400] ss:$16 sps:$4 sm:$0xff]  }
 0x305   : > { %v6377_v31 = vpop.f32.mrf.mxu0  ;;  %v6379_v32 = vpop.f32.mrf.mxu1  ;;  %v1856_v58 = vmax.f32 %v1855_v33, %v6353_v4 }
 0x306   : > { %3690 = vmatpush1.bf16.msra.mxu0 %v5389_v27  ;;  %3731 = vmatpush1.bf16.msra.mxu1 %v5392_v28  ;;  %v1839_v27 = vmax.f32 %v1838_v62, %v6328_v41  ;;  %v1884_v28 = vmax.f32 %v1883_v13, %v6334_v10  ;;  %v1871_v10 = vmax.f32 %v1870_v17, %v6351_v0  ;;  %v5422_v62 = vld [vmem:[#allocation6 + $0x620] ss:$16 sps:$4 sm:$0xff]  }
 0x307   : > { %v6381_v37 = vpop.f32.mrf.mxu0  ;;  %v6383_v38 = vpop.f32.mrf.mxu1  ;;  %3691 = vmatprep.subr.bf16.mxu0 %v5397_v29  ;;  %3732 = vmatprep.subr.bf16.mxu1 %v5400_v30  ;;  %v5413_v30 = vld [vmem:[#allocation6 + $0x440] ss:$16 sps:$4 sm:$0xff]  }
 0x308   : > { %v1840_v29 = vmax.f32 %v1839_v27, %v6341_v55  ;;  %v5421_v55 = vld [vmem:[#allocation6 + $0x424] ss:$16 sps:$4 sm:$0xff]  }
 0x309   : > { %v6385_v46 = vpop.f32.mrf.mxu0  ;;  %v6387_v47 = vpop.f32.mrf.mxu1 }
 0x30a   : > { %3692 = vmatpush1.bf16.msra.mxu0 %v5395_v39  ;;  %3733 = vmatpush1.bf16.msra.mxu1 %v5398_v40  ;;  %v1885_v39 = vmax.f32 %v1884_v28, %v6347_v43  ;;  %v1841_v40 = vmax.f32 %v1840_v29, %v6349_v63  ;;  %v1857_v43 = vmax.f32 %v1856_v58, %v6373_v22 }
 0x30b   : > { %v6389_v49 = vpop.f32.mrf.mxu0  ;;  %v6391_v50 = vpop.f32.mrf.mxu1  ;;  %3693 = vmatprep.subr.bf16.mxu0 %v5403_v44  ;;  %3734 = vmatprep.subr.bf16.mxu1 %v5406_v45 }
 0x30d   : > { %v6393_v60 = vpop.f32.mrf.mxu0  ;;  %v6395_v61 = vpop.f32.mrf.mxu1 }
 0x30e   : > { %3694 = vmatpush1.bf16.msra.mxu0 %v5401_v51  ;;  %3735 = vmatpush1.bf16.msra.mxu1 %v5404_v52  ;;  %v1886_v51 = vmax.f32 %v1885_v39, %v6355_v5  ;;  %v1842_v52 = vmax.f32 %v1841_v40, %v6367_v18  ;;  %v5427_v5 = vld [vmem:[#allocation6 + $0x404] ss:$16 sps:$4 sm:$0xff]  }
 0x30f   : > { %v6403_v2 = vpop.f32.mrf.mxu0  ;;  %v6405_v21 = vpop.f32.mrf.mxu1  ;;  %3695 = vmatprep.subr.bf16.mxu0 %v5409_v53  ;;  %3736 = vmatprep.subr.bf16.mxu1 %v5412_v54  ;;  %v1872_v53 = vmax.f32 %v1871_v10, %v6369_v20  ;;  %v5419_v54 = vld [vmem:[#allocation6 + $0x420] ss:$16 sps:$4 sm:$0xff]   ;;  %v5430_v18 = vld [vmem:[#allocation6 + $0x604] ss:$16 sps:$4 sm:$0xff]   ;;  %v1858_v20 = vmax.f32 %v1857_v43, %v6381_v37 }
 0x310   : > { %v1887_v59 = vmax.f32 %v1886_v51, %v6375_v23  ;;  %v1843_v4 = vmax.f32 %v1842_v52, %v6377_v31  ;;  %v5439_v10 = vld [vmem:[#allocation6 + $0x5c4] ss:$16 sps:$4 sm:$0xff]   ;;  %v5437_v43 = vld [vmem:[#allocation6 + $0x5c0] ss:$16 sps:$4 sm:$0xff]  }
 0x311   : > { %v6412_v25 = vpop.f32.mrf.mxu0  ;;  %v6414_v26 = vpop.f32.mrf.mxu1  ;;  %v1873_v1 = vmax.f32 %v1872_v53, %v6379_v32  ;;  %v1859_v23 = vmax.f32 %v1858_v20, %v6389_v49 }
 0x312   : > { %3696 = vmatpush1.bf16.msra.mxu0 %v5407_v35  ;;  %3737 = vmatpush1.bf16.msra.mxu1 %v5410_v12  ;;  %v1888_v12 = vmax.f32 %v1887_v59, %v6383_v38  ;;  %v1844_v13 = vmax.f32 %v1843_v4, %v6385_v46  ;;  %v5433_v38 = vld [vmem:[#allocation6 + $0x5e4] ss:$16 sps:$4 sm:$0xff]  }
 0x313   : > { %v6420_v41 = vpop.f32.mrf.mxu0  ;;  %v6422_v42 = vpop.f32.mrf.mxu1  ;;  %3697 = vmatprep.subr.bf16.mxu0 %v5415_v9  ;;  %3738 = vmatprep.subr.bf16.mxu1 %v5418_v24  ;;  %v1874_v27 = vmax.f32 %v1873_v1, %v6387_v47  ;;  %v5428_v9 = vld [vmem:[#allocation6 + $0x600] ss:$16 sps:$4 sm:$0xff]   ;;  %v5436_v46 = vld [vmem:[#allocation6 + $0x7e4] ss:$16 sps:$4 sm:$0xff]   ;;  %v1860_v47 = vmax.f32 %v1859_v23, %v6403_v2 }
 0x314   : > { %v1889_v24 = vmax.f32 %v1888_v12, %v6391_v50  ;;  %v1845_v37 = vmax.f32 %v1844_v13, %v6393_v60  ;;  %v5448_v59 = vld [vmem:[#allocation6 + $0x7a4] ss:$16 sps:$4 sm:$0xff]   ;;  %v5443_v12 = vld [vmem:[#allocation6 + $0x5a0] ss:$16 sps:$4 sm:$0xff]  }
 0x315   : > { %v1636_v44 = vpop.f32.mrf.mxu0  ;;  %v1749_v45 = vpop.f32.mrf.mxu1  ;;  %v1875_v16 = vmax.f32 %v1874_v27, %v6395_v61  ;;  %v1861_v50 = vmax.f32 %v1860_v47, %v6420_v41  ;;  %v5446_v13 = vld [vmem:[#allocation6 + $0x7a0] ss:$16 sps:$4 sm:$0xff]  }
 0x316   : > { %3698 = vmatpush1.bf16.msra.mxu0 %v5413_v30  ;;  %3739 = vmatpush1.bf16.msra.mxu1 %v5416_v48  ;;  %v1890_v29 = vmax.f32 %v1889_v24, %v6405_v21  ;;  %v1846_v17 = vmax.f32 %v1845_v37, %v6412_v25  ;;  %v5431_v30 = vld [vmem:[#allocation6 + $0x5e0] ss:$16 sps:$4 sm:$0xff]   ;;  %v5442_v21 = vld [vmem:[#allocation6 + $0x7c4] ss:$16 sps:$4 sm:$0xff]  }
 0x317   : > { %v1638_v63 = vpop.f32.mrf.mxu0  ;;  %v1751_v0 = vpop.f32.mrf.mxu1  ;;  %3699 = vmatprep.subr.bf16.mxu0 %v5421_v55  ;;  %3740 = vmatprep.subr.bf16.mxu1 %v5424_v56  ;;  %v1876_v33 = vmax.f32 %v1875_v16, %v6414_v26  ;;  %v5434_v48 = vld [vmem:[#allocation6 + $0x7e0] ss:$16 sps:$4 sm:$0xff]  }
 0x318   : > { %v1891_v39 = vmax.f32 %v1890_v29, %v6422_v42  ;;  %v1847_v40 = vmax.f32 %v1846_v17, %v1636_v44  ;;  %v1862_v55 = vmax.f32 %v1861_v50, %v1638_v63  ;;  %v5452_v29 = vld [vmem:[#allocation6 + $0x780] ss:$16 sps:$4 sm:$0xff]  }
 0x319   : > { %v1640_v35 = vpop.f32.mrf.mxu0  ;;  %v1753_v22 = vpop.f32.mrf.mxu1  ;;  %v1877_v2 = vmax.f32 %v1876_v33, %v1749_v45 }
 0x31a   : > { %3700 = vmatpush1.bf16.msra.mxu0 %v5419_v54  ;;  %3741 = vmatpush1.bf16.msra.mxu1 %v5422_v62  ;;  %v1892_v26 = vmax.f32 %v1891_v39, %v1751_v0  ;;  %v1848_v58 = vmax.f32 %v1847_v40, %v1640_v35  ;;  %v5440_v54 = vld [vmem:[#allocation6 + $0x7c0] ss:$16 sps:$4 sm:$0xff]   ;;  %v5445_v62 = vld [vmem:[#allocation6 + $0x5a4] ss:$16 sps:$4 sm:$0xff]  }
 0x31b   : > { %v1642_v31 = vpop.f32.mrf.mxu0  ;;  %v1755_v32 = vpop.f32.mrf.mxu1  ;;  %3701 = vmatprep.subr.bf16.mxu0 %v5427_v5  ;;  %3742 = vmatprep.subr.bf16.mxu1 %v5430_v18  ;;  %v1878_v41 = vmax.f32 %v1877_v2, %v1753_v22 }
 0x31c   : > { %v1863_v51 = vmax.f32 %v1862_v55, %v1642_v31  ;;  %v1893_v42 = vmax.f32 %v1892_v26, %v1755_v32  ;;  %v5451_v32 = vld [vmem:[#allocation6 + $0x584] ss:$16 sps:$4 sm:$0xff]   ;;  %v2001_v55 = vsub.s32 4, %v6292_v3 }
 0x31d   : > { %v1646_v28 = vpop.f32.mrf.mxu0  ;;  %v1759_v49 = vpop.f32.mrf.mxu1 }
 0x31e   : > { %3702 = vmatpush1.bf16.msra.mxu0 %v5425_v8  ;;  %3743 = vmatpush1.bf16.msra.mxu1 %v5428_v9  ;;  %v1849_v44 = vmax.f32 %v1848_v58, %v1646_v28  ;;  %v1879_v45 = vmax.f32 %v1878_v41, %v1759_v49  ;;  %v5454_v8 = vld [vmem:[#allocation6 + $0x784] ss:$16 sps:$4 sm:$0xff]   ;;  %v5449_v49 = vld [vmem:[#allocation6 + $0x580] ss:$16 sps:$4 sm:$0xff]  }
 0x31f   : > { %v1648_v60 = vpop.f32.mrf.mxu0  ;;  %v1761_v61 = vpop.f32.mrf.mxu1  ;;  %3703 = vmatprep.subr.bf16.mxu0 %v5433_v38  ;;  %3744 = vmatprep.subr.bf16.mxu1 %v5436_v46  ;;  %v5463_v41 = vld [vmem:[#allocation6 + $0x544] ss:$16 sps:$4 sm:$0xff]  }
 0x320   : > { %v1864_v63 = vmax.f32 %v1863_v51, %v1648_v60  ;;  %v1894_v0 = vmax.f32 %v1893_v42, %v1761_v61  ;;  %v5457_v61 = vld [vmem:[#allocation6 + $0x564] ss:$16 sps:$4 sm:$0xff]  }
 0x321   : > { %v1650_v25 = vpop.f32.mrf.mxu0  ;;  %v1763_v56 = vpop.f32.mrf.mxu1  ;;  %v5466_v51 = vld [vmem:[#allocation6 + $0x744] ss:$16 sps:$4 sm:$0xff]  }
 0x322   : > { %3704 = vmatpush2.bf16.msra.mxu0 %v5431_v30  ;;  %3745 = vmatpush2.bf16.msra.mxu1 %v5434_v48  ;;  %v1850_v5 = vmax.f32 %v1849_v44, %v1650_v25  ;;  %v1880_v18 = vmax.f32 %v1879_v45, %v1763_v56  ;;  %v5460_v30 = vld [vmem:[#allocation6 + $0x764] ss:$16 sps:$4 sm:$0xff]  }
 0x323   : > { %v1652_v52 = vpop.f32.mrf.mxu0  ;;  %v1765_v53 = vpop.f32.mrf.mxu1  ;;  %3705 = vmatprep.subr.bf16.mxu0 %v5439_v10  ;;  %3746 = vmatprep.subr.bf16.mxu1 %v5442_v21  ;;  %v5455_v10 = vld [vmem:[#allocation6 + $0x560] ss:$16 sps:$4 sm:$0xff]  }
 0x324   : > { %v1865_v20 = vmax.f32 %v1864_v63, %v1652_v52  ;;  %v1895_v27 = vmax.f32 %v1894_v0, %v1765_v53  ;;  %v5458_v21 = vld [vmem:[#allocation6 + $0x760] ss:$16 sps:$4 sm:$0xff]   ;;  %v2005_v52 = vsub.s32 5, %v6292_v3  ;;  %v2013_v53 = vsub.s32 7, %v6292_v3 }
 0x325   : > { %v1656_v4 = vpop.f32.mrf.mxu0  ;;  %v1769_v1 = vpop.f32.mrf.mxu1  ;;  %v2002_v63 = vrot.slane %v6309_v19, %v2001_v55  ;;  %v5490_v55 = vld [vmem:[#allocation6 + $0x2cc] ss:$16 sps:$4 sm:$0xff]  }
 0x326   : > { %3706 = vmatpush2.bf16.msra.mxu0 %v5437_v43  ;;  %3747 = vmatpush2.bf16.msra.mxu1 %v5440_v54  ;;  %v1851_v23 = vmax.f32 %v1850_v5, %v1656_v4  ;;  %v1881_v31 = vmax.f32 %v1880_v18, %v1769_v1  ;;  %v2009_v43 = vsub.s32 6, %v6292_v3  ;;  %v5469_v18 = vld [vmem:[#allocation6 + $0x524] ss:$16 sps:$4 sm:$0xff]  }
 0x327   : > { %v1658_v35 = vpop.f32.mrf.mxu0  ;;  %v1771_v22 = vpop.f32.mrf.mxu1  ;;  %3707 = vmatprep.subr.bf16.mxu0 %v5445_v62  ;;  %3748 = vmatprep.subr.bf16.mxu1 %v5448_v59  ;;  %v5461_v62 = vld [vmem:[#allocation6 + $0x540] ss:$16 sps:$4 sm:$0xff]  }
 0x328   : > { %v1866_v37 = vmax.f32 %v1865_v20, %v1658_v35  ;;  %v1896_v16 = vmax.f32 %v1895_v27, %v1771_v22  ;;  %v5464_v59 = vld [vmem:[#allocation6 + $0x740] ss:$16 sps:$4 sm:$0xff]   ;;  %v5472_v20 = vld [vmem:[#allocation6 + $0x724] ss:$16 sps:$4 sm:$0xff]   ;;  %v2006_v35 = vrot.slane %v6309_v19, %v2005_v52  ;;  %v2014_v22 = vrot.slane %v6309_v19, %v2013_v53  ;;  %v5499_v52 = vld [vmem:[#allocation6 + $0x8c] ss:$16 sps:$4 sm:$0xff]  }
 0x329   : > { %v1660_v9 = vpop.f32.mrf.mxu0  ;;  %v1773_v24 = vpop.f32.mrf.mxu1  ;;  %v5502_v53 = vld [vmem:[#allocation6 + $0x28c] ss:$16 sps:$4 sm:$0xff]  }
 0x32a   : > { %v1852_v38 = vmax.f32 %v1851_v23, %v1660_v9  ;;  %v1882_v46 = vmax.f32 %v1881_v31, %v1773_v24  ;;  %3708 = vmatpush2.bf16.msra.mxu0 %v5443_v12  ;;  %3749 = vmatpush2.bf16.msra.mxu1 %v5446_v13  ;;  %v2010_v12 = vrot.slane %v6309_v19, %v2009_v43  ;;  %v5473_v19 = vld [vmem:[#allocation6 + $0x500] ss:$16 sps:$4 sm:$0xff]   ;;  %v5497_v43 = vld [vmem:[#allocation6 + $0x88] ss:$16 sps:$4 sm:$0xff]  }
 0x32b   : > { %v1662_v47 = vpop.f32.mrf.mxu0  ;;  %v1775_v28 = vpop.f32.mrf.mxu1  ;;  %3709 = vmatprep.subr.bf16.mxu0 %v5451_v32  ;;  %3750 = vmatprep.subr.bf16.mxu1 %v5454_v8  ;;  %v5467_v32 = vld [vmem:[#allocation6 + $0x520] ss:$16 sps:$4 sm:$0xff]  }
 0x32c   : > { %v1957_v17 = vrot.slane %v1852_v38, 4  ;;  %v1969_v33 = vrot.slane %v1882_v46, 4  ;;  %v1867_v50 = vmax.f32 %v1866_v37, %v1662_v47  ;;  %v1897_v60 = vmax.f32 %v1896_v16, %v1775_v28  ;;  %v5470_v8 = vld [vmem:[#allocation6 + $0x720] ss:$16 sps:$4 sm:$0xff]   ;;  %v5475_v37 = vld [vmem:[#allocation6 + $0x504] ss:$16 sps:$4 sm:$0xff]  }
 0x32d   : > { %v5478_v16 = vld [vmem:[#allocation6 + $0x704] ss:$16 sps:$4 sm:$0xff]  }
 0x32e   : > { %v1958_v48 = vmax.f32 %v1852_v38, %v1957_v17  ;;  %v1970_v39 = vmax.f32 %v1882_v46, %v1969_v33  ;;  %v1963_v40 = vrot.slane %v1867_v50, 4  ;;  %v1975_v2 = vrot.slane %v1897_v60, 4  ;;  %3710 = vmatpush2.bf16.msra.mxu0 %v5449_v49  ;;  %3751 = vmatpush2.bf16.msra.mxu1 %v5452_v29  ;;  %v5476_v49 = vld [vmem:[#allocation6 + $0x700] ss:$16 sps:$4 sm:$0xff]  }
 0x32f   : > { %3711 = vmatprep.subr.bf16.mxu0 %v5457_v61  ;;  %3752 = vmatprep.subr.bf16.mxu1 %v5460_v30  ;;  %v5484_v61 = vld [vmem:[#allocation6 + $0x2ec] ss:$16 sps:$4 sm:$0xff]  }
 0x330   : > { %v1959_v25 = vrot.slane %v1958_v48, 2  ;;  %v1971_v56 = vrot.slane %v1970_v39, 2  ;;  %v1964_v26 = vmax.f32 %v1867_v50, %v1963_v40  ;;  %v1976_v58 = vmax.f32 %v1897_v60, %v1975_v2  ;;  %v5481_v60 = vld [vmem:[#allocation6 + $0xec] ss:$16 sps:$4 sm:$0xff]   ;;  %v5482_v40 = vld [vmem:[#allocation6 + $0x2e8] ss:$16 sps:$4 sm:$0xff]  }
 0x332   : > { %v1960_v54 = vmax.f32 %v1958_v48, %v1959_v25  ;;  %v1972_v42 = vmax.f32 %v1970_v39, %v1971_v56  ;;  %v1965_v44 = vrot.slane %v1964_v26, 2  ;;  %v1977_v45 = vrot.slane %v1976_v58, 2  ;;  %3712 = vmatpush2.bf16.msra.mxu0 %v5455_v10  ;;  %3753 = vmatpush2.bf16.msra.mxu1 %v5458_v21  ;;  %v5479_v39 = vld [vmem:[#allocation6 + $0xe8] ss:$16 sps:$4 sm:$0xff]   ;;  %v5487_v21 = vld [vmem:[#allocation6 + $0xcc] ss:$16 sps:$4 sm:$0xff]  }
 0x333   : > { %3713 = vmatprep.subr.bf16.mxu0 %v5463_v41  ;;  %3754 = vmatprep.subr.bf16.mxu1 %v5466_v51  ;;  %v5485_v25 = vld [vmem:[#allocation6 + $0xc8] ss:$16 sps:$4 sm:$0xff]  }
 0x334   : > { %v1961_v4 = vrot.slane %v1960_v54, 1  ;;  %v1973_v1 = vrot.slane %v1972_v42, 1  ;;  %v1966_v0 = vmax.f32 %v1964_v26, %v1965_v44  ;;  %v1978_v5 = vmax.f32 %v1976_v58, %v1977_v45  ;;  %v5488_v56 = vld [vmem:[#allocation6 + $0x2c8] ss:$16 sps:$4 sm:$0xff]   ;;  %v5493_v26 = vld [vmem:[#allocation6 + $0xac] ss:$16 sps:$4 sm:$0xff]  }
 0x335   : > { %v5496_v58 = vld [vmem:[#allocation6 + $0x2ac] ss:$16 sps:$4 sm:$0xff]   ;;  %v5491_v41 = vld [vmem:[#allocation6 + $0xa8] ss:$16 sps:$4 sm:$0xff]  }
 0x336   : > { %v1962_v13 = vmax.f32 %v1960_v54, %v1961_v4  ;;  %v1974_v27 = vmax.f32 %v1972_v42, %v1973_v1  ;;  %v1967_v23 = vrot.slane %v1966_v0, 1  ;;  %v1979_v31 = vrot.slane %v1978_v5, 1  ;;  %3714 = vmatpush2.bf16.msra.mxu0 %v5461_v62  ;;  %3755 = vmatpush2.bf16.msra.mxu1 %v5464_v59  ;;  %v5494_v51 = vld [vmem:[#allocation6 + $0x2a8] ss:$16 sps:$4 sm:$0xff]   ;;  %v5511_v45 = vld [vmem:[#allocation6 + $0x4c] ss:$16 sps:$4 sm:$0xff]  }
 0x337   : > { %3715 = vmatprep.subr.bf16.mxu0 %v5469_v18  ;;  %3756 = vmatprep.subr.bf16.mxu1 %v5472_v20  ;;  %v5500_v54 = vld [vmem:[#allocation6 + $0x288] ss:$16 sps:$4 sm:$0xff]   ;;  %v5514_v62 = vld [vmem:[#allocation6 + $0x24c] ss:$16 sps:$4 sm:$0xff]  }
 0x338   : > { %v1968_v9 = vmax.f32 %v1966_v0, %v1967_v23  ;;  %v1980_v24 = vmax.f32 %v1978_v5, %v1979_v31  ;;  %v2027_v38 = vadd.f32 %v2002_v63, %v1962_v13  ;;  %v2029_v46 = vadd.f32 %v2010_v12, %v1974_v27  ;;  %v5503_v42 = vld [vmem:[#allocation6 + $0x68] ss:$16 sps:$4 sm:$0xff]   ;;  %v5517_v4 = vld [vmem:[#allocation6 + $0x2c] ss:$16 sps:$4 sm:$0xff]  }
 0x339   : > { %v5506_v44 = vld [vmem:[#allocation6 + $0x268] ss:$16 sps:$4 sm:$0xff]   ;;  %v5520_v1 = vld [vmem:[#allocation6 + $0x22c] ss:$16 sps:$4 sm:$0xff]  }
 0x33a   : > { %v2028_v47 = vadd.f32 %v2006_v35, %v1968_v9  ;;  %v2030_v28 = vadd.f32 %v2014_v22, %v1980_v24  ;;  %3716 = vmatpush2.bf16.msra.mxu0 %v5467_v32  ;;  %3757 = vmatpush2.bf16.msra.mxu1 %v5470_v8  ;;  %v2035_v33 = vmax.f32 %v2027_v38, 0.0  ;;  %v2037_v50 = vmax.f32 %v2029_v46, 0.0  ;;  %v5509_v59 = vld [vmem:[#allocation6 + $0x48] ss:$16 sps:$4 sm:$0xff]   ;;  %v5523_v18 = vld [vmem:[#allocation6 + $0xc] ss:$16 sps:$4 sm:$0xff]  }
 0x33b   : > { %3717 = vmatprep.subr.bf16.mxu0 %v5475_v37  ;;  %3758 = vmatprep.subr.bf16.mxu1 %v5478_v16  ;;  %v5512_v63 = vld [vmem:[#allocation6 + $0x248] ss:$16 sps:$4 sm:$0xff]   ;;  %v5526_v20 = vld [vmem:[#allocation6 + $0x20c] ss:$16 sps:$4 sm:$0xff]  }
 0x33c   : > { %v2036_v29 = vmax.f32 %v2028_v47, 0.0  ;;  %v2038_v17 = vmax.f32 %v2030_v28, 0.0  ;;  %v6463_v2 = vpack.c.bf16 %v2035_v33, %v2035_v33  ;;  %v6465_v10 = vpack.c.bf16 %v2037_v50, %v2037_v50  ;;  %v5515_v0 = vld [vmem:[#allocation6 + $0x28] ss:$16 sps:$4 sm:$0xff]   ;;  %v5529_v12 = vld [vmem:[#allocation6 + $0x1ec] ss:$16 sps:$4 sm:$0xff]  }
 0x33d   : > { %v5518_v5 = vld [vmem:[#allocation6 + $0x228] ss:$16 sps:$4 sm:$0xff]   ;;  %v5532_v13 = vld [vmem:[#allocation6 + $0x3ec] ss:$16 sps:$4 sm:$0xff]  }
 0x33e   : > { %v6457_v30 = vpack.c.bf16 %v2036_v29, %v2036_v29  ;;  %v6459_v48 = vpack.c.bf16 %v2038_v17, %v2038_v17  ;;  %3718 = vmatpush2.bf16.msra.mxu0 %v5473_v19  ;;  %3759 = vmatpush2.bf16.msra.mxu1 %v5476_v49  ;;  %v5521_v35 = vld [vmem:[#allocation6 + $0x8] ss:$16 sps:$4 sm:$0xff]   ;;  %v5535_v31 = vld [vmem:[#allocation6 + $0x1cc] ss:$16 sps:$4 sm:$0xff]  }
 0x33f   : > { %3769 = vmatprep.subr.bf16.mxu0 %v5481_v60  ;;  %3810 = vmatprep.subr.bf16.mxu1 %v5484_v61  ;;  %v5524_v22 = vld [vmem:[#allocation6 + $0x208] ss:$16 sps:$4 sm:$0xff]   ;;  %v5538_v32 = vld [vmem:[#allocation6 + $0x3cc] ss:$16 sps:$4 sm:$0xff]  }
 0x340   : > { %3719 = vmatprep.mubr.bf16.mxu0 %v6457_v30  ;;  %3760 = vmatprep.mubr.bf16.mxu1 %v6459_v48  ;;  %v5527_v27 = vld [vmem:[#allocation6 + $0x1e8] ss:$16 sps:$4 sm:$0xff]   ;;  %v5541_v24 = vld [vmem:[#allocation6 + $0x1ac] ss:$16 sps:$4 sm:$0xff]  }
 0x341   : > { %3720 = vmatmul.mubr.bf16.vlgmr.msra.gmra.mxu0 %v6463_v2  ;;  %3761 = vmatmul.mubr.bf16.vlgmr.msra.gmra.mxu1 %v6465_v10  ;;  %v5530_v23 = vld [vmem:[#allocation6 + $0x3e8] ss:$16 sps:$4 sm:$0xff]   ;;  %v5544_v37 = vld [vmem:[#allocation6 + $0x3ac] ss:$16 sps:$4 sm:$0xff]  }
 0x342   : > { %3770 = vmatpush1.bf16.msra.mxu0 %v5479_v39  ;;  %3811 = vmatpush1.bf16.msra.mxu1 %v5482_v40  ;;  %v5533_v8 = vld [vmem:[#allocation6 + $0x1c8] ss:$16 sps:$4 sm:$0xff]   ;;  %v5547_v46 = vld [vmem:[#allocation6 + $0x18c] ss:$16 sps:$4 sm:$0xff]  }
 0x343   : > { %3801 = vmatprep.mubr.bf16.mxu0 %v6357_v6  ;;  %3842 = vmatprep.mubr.bf16.mxu1 %v6359_v7  ;;  %v5505_v6 = vld [vmem:[#allocation6 + $0x6c] ss:$16 sps:$4 sm:$0xff]   ;;  %v5536_v9 = vld [vmem:[#allocation6 + $0x3c8] ss:$16 sps:$4 sm:$0xff]  }
 0x344   : > { %3771 = vmatprep.subr.bf16.mxu0 %v5487_v21  ;;  %3812 = vmatprep.subr.bf16.mxu1 %v5490_v55  ;;  %v5508_v7 = vld [vmem:[#allocation6 + $0x26c] ss:$16 sps:$4 sm:$0xff]   ;;  %v5539_v16 = vld [vmem:[#allocation6 + $0x1a8] ss:$16 sps:$4 sm:$0xff]  }
 0x345   : > { %v5542_v38 = vld [vmem:[#allocation6 + $0x3a8] ss:$16 sps:$4 sm:$0xff]   ;;  %v5550_v47 = vld [vmem:[#allocation6 + $0x38c] ss:$16 sps:$4 sm:$0xff]  }
 0x346   : > { %3772 = vmatpush1.bf16.msra.mxu0 %v5485_v25  ;;  %3813 = vmatpush1.bf16.msra.mxu1 %v5488_v56  ;;  %v5545_v28 = vld [vmem:[#allocation6 + $0x188] ss:$16 sps:$4 sm:$0xff]   ;;  %v5553_v49 = vld [vmem:[#allocation6 + $0x16c] ss:$16 sps:$4 sm:$0xff]  }
 0x347   : > { %3773 = vmatprep.subr.bf16.mxu0 %v5493_v26  ;;  %3814 = vmatprep.subr.bf16.mxu1 %v5496_v58  ;;  %v5548_v19 = vld [vmem:[#allocation6 + $0x388] ss:$16 sps:$4 sm:$0xff]   ;;  %v5556_v29 = vld [vmem:[#allocation6 + $0x36c] ss:$16 sps:$4 sm:$0xff]  }
 0x348   : > { %v5551_v17 = vld [vmem:[#allocation6 + $0x168] ss:$16 sps:$4 sm:$0xff]   ;;  %v5559_v50 = vld [vmem:[#allocation6 + $0x14c] ss:$16 sps:$4 sm:$0xff]  }
 0x349   : > { %v5554_v33 = vld [vmem:[#allocation6 + $0x368] ss:$16 sps:$4 sm:$0xff]   ;;  %v5562_v60 = vld [vmem:[#allocation6 + $0x34c] ss:$16 sps:$4 sm:$0xff]  }
 0x34a   : > { %3774 = vmatpush1.bf16.msra.mxu0 %v5491_v41  ;;  %3815 = vmatpush1.bf16.msra.mxu1 %v5494_v51  ;;  %v5557_v61 = vld [vmem:[#allocation6 + $0x148] ss:$16 sps:$4 sm:$0xff]   ;;  %v5565_v40 = vld [vmem:[#allocation6 + $0x12c] ss:$16 sps:$4 sm:$0xff]  }
 0x34b   : > { %3775 = vmatprep.subr.bf16.mxu0 %v5499_v52  ;;  %3816 = vmatprep.subr.bf16.mxu1 %v5502_v53  ;;  %v5560_v39 = vld [vmem:[#allocation6 + $0x348] ss:$16 sps:$4 sm:$0xff]   ;;  %v5568_v21 = vld [vmem:[#allocation6 + $0x32c] ss:$16 sps:$4 sm:$0xff]  }
 0x34c   : > { %v5563_v55 = vld [vmem:[#allocation6 + $0x128] ss:$16 sps:$4 sm:$0xff]   ;;  %v5571_v56 = vld [vmem:[#allocation6 + $0x10c] ss:$16 sps:$4 sm:$0xff]  }
 0x34d   : > { %v5566_v25 = vld [vmem:[#allocation6 + $0x328] ss:$16 sps:$4 sm:$0xff]   ;;  %v5574_v26 = vld [vmem:[#allocation6 + $0x30c] ss:$16 sps:$4 sm:$0xff]  }
 0x34e   : > { %3776 = vmatpush1.bf16.msra.mxu0 %v5497_v43  ;;  %3817 = vmatpush1.bf16.msra.mxu1 %v5500_v54  ;;  %v5569_v58 = vld [vmem:[#allocation6 + $0x108] ss:$16 sps:$4 sm:$0xff]   ;;  %v5577_v51 = vld [vmem:[#allocation6 + $0x4ec] ss:$16 sps:$4 sm:$0xff]  }
 0x34f   : > { %3777 = vmatprep.subr.bf16.mxu0 %v5505_v6  ;;  %3818 = vmatprep.subr.bf16.mxu1 %v5508_v7  ;;  %v5572_v41 = vld [vmem:[#allocation6 + $0x308] ss:$16 sps:$4 sm:$0xff]   ;;  %v5580_v52 = vld [vmem:[#allocation6 + $0x6ec] ss:$16 sps:$4 sm:$0xff]  }
 0x350   : > { %v5575_v53 = vld [vmem:[#allocation6 + $0x4e8] ss:$16 sps:$4 sm:$0xff]   ;;  %v5583_v54 = vld [vmem:[#allocation6 + $0x4cc] ss:$16 sps:$4 sm:$0xff]  }
 0x351   : > { %v5578_v43 = vld [vmem:[#allocation6 + $0x6e8] ss:$16 sps:$4 sm:$0xff]   ;;  %v5586_v6 = vld [vmem:[#allocation6 + $0x6cc] ss:$16 sps:$4 sm:$0xff]  }
 0x352   : > { %3778 = vmatpush1.bf16.msra.mxu0 %v5503_v42  ;;  %3819 = vmatpush1.bf16.msra.mxu1 %v5506_v44  ;;  %v5581_v7 = vld [vmem:[#allocation6 + $0x4c8] ss:$16 sps:$4 sm:$0xff]   ;;  %v5589_v44 = vld [vmem:[#allocation6 + $0x4ac] ss:$16 sps:$4 sm:$0xff]  }
 0x353   : > { %3779 = vmatprep.subr.bf16.mxu0 %v5511_v45  ;;  %3820 = vmatprep.subr.bf16.mxu1 %v5514_v62  ;;  %v5584_v42 = vld [vmem:[#allocation6 + $0x6c8] ss:$16 sps:$4 sm:$0xff]   ;;  %v5592_v45 = vld [vmem:[#allocation6 + $0x6ac] ss:$16 sps:$4 sm:$0xff]  }
 0x354   : > { %v5587_v62 = vld [vmem:[#allocation6 + $0x4a8] ss:$16 sps:$4 sm:$0xff]  }
 0x356   : > { %3780 = vmatpush1.bf16.msra.mxu0 %v5509_v59  ;;  %3821 = vmatpush1.bf16.msra.mxu1 %v5512_v63  ;;  %v5590_v59 = vld [vmem:[#allocation6 + $0x6a8] ss:$16 sps:$4 sm:$0xff]  }
 0x357   : > { %3781 = vmatprep.subr.bf16.mxu0 %v5517_v4  ;;  %3822 = vmatprep.subr.bf16.mxu1 %v5520_v1  ;;  %v5593_v63 = vld [vmem:[#allocation6 + $0x488] ss:$16 sps:$4 sm:$0xff]   ;;  %v5601_v4 = vld [vmem:[#allocation6 + $0x46c] ss:$16 sps:$4 sm:$0xff]  }
 0x358   : > { %v5599_v1 = vld [vmem:[#allocation6 + $0x468] ss:$16 sps:$4 sm:$0xff]  }
 0x35a   : > { %3782 = vmatpush1.bf16.msra.mxu0 %v5515_v0  ;;  %3823 = vmatpush1.bf16.msra.mxu1 %v5518_v5  ;;  %v5602_v0 = vld [vmem:[#allocation6 + $0x668] ss:$16 sps:$4 sm:$0xff]   ;;  %v5607_v5 = vld [vmem:[#allocation6 + $0x44c] ss:$16 sps:$4 sm:$0xff]  }
 0x35b   : > { %3783 = vmatprep.subr.bf16.mxu0 %v5523_v18  ;;  %3824 = vmatprep.subr.bf16.mxu1 %v5526_v20  ;;  %v5610_v18 = vld [vmem:[#allocation6 + $0x64c] ss:$16 sps:$4 sm:$0xff]   ;;  %v5605_v20 = vld [vmem:[#allocation6 + $0x448] ss:$16 sps:$4 sm:$0xff]  }
 0x35e   : > { %3784 = vmatpush1.bf16.msra.mxu0 %v5521_v35  ;;  %3825 = vmatpush1.bf16.msra.mxu1 %v5524_v22  ;;  %v5608_v35 = vld [vmem:[#allocation6 + $0x648] ss:$16 sps:$4 sm:$0xff]   ;;  %v5613_v22 = vld [vmem:[#allocation6 + $0x42c] ss:$16 sps:$4 sm:$0xff]  }
 0x35f   : > { %3785 = vmatprep.subr.bf16.mxu0 %v5529_v12  ;;  %3826 = vmatprep.subr.bf16.mxu1 %v5532_v13  ;;  %v5616_v12 = vld [vmem:[#allocation6 + $0x62c] ss:$16 sps:$4 sm:$0xff]   ;;  %v5611_v13 = vld [vmem:[#allocation6 + $0x428] ss:$16 sps:$4 sm:$0xff]  }
 0x362   : > { %3786 = vmatpush2.bf16.msra.mxu0 %v5527_v27  ;;  %3827 = vmatpush2.bf16.msra.mxu1 %v5530_v23  ;;  %v5614_v27 = vld [vmem:[#allocation6 + $0x628] ss:$16 sps:$4 sm:$0xff]   ;;  %v5619_v23 = vld [vmem:[#allocation6 + $0x40c] ss:$16 sps:$4 sm:$0xff]  }
 0x363   : > { %3787 = vmatprep.subr.bf16.mxu0 %v5535_v31  ;;  %3828 = vmatprep.subr.bf16.mxu1 %v5538_v32  ;;  %v5622_v31 = vld [vmem:[#allocation6 + $0x60c] ss:$16 sps:$4 sm:$0xff]   ;;  %v5617_v32 = vld [vmem:[#allocation6 + $0x408] ss:$16 sps:$4 sm:$0xff]  }
 0x366   : > { %3788 = vmatpush2.bf16.msra.mxu0 %v5533_v8  ;;  %3829 = vmatpush2.bf16.msra.mxu1 %v5536_v9  ;;  %v5620_v8 = vld [vmem:[#allocation6 + $0x608] ss:$16 sps:$4 sm:$0xff]   ;;  %v5625_v9 = vld [vmem:[#allocation6 + $0x5ec] ss:$16 sps:$4 sm:$0xff]  }
 0x367   : > { %3789 = vmatprep.subr.bf16.mxu0 %v5541_v24  ;;  %3830 = vmatprep.subr.bf16.mxu1 %v5544_v37  ;;  %v5628_v24 = vld [vmem:[#allocation6 + $0x7ec] ss:$16 sps:$4 sm:$0xff]   ;;  %v5623_v37 = vld [vmem:[#allocation6 + $0x5e8] ss:$16 sps:$4 sm:$0xff]  }
 0x36a   : > { %3790 = vmatpush2.bf16.msra.mxu0 %v5539_v16  ;;  %3831 = vmatpush2.bf16.msra.mxu1 %v5542_v38  ;;  %v5626_v16 = vld [vmem:[#allocation6 + $0x7e8] ss:$16 sps:$4 sm:$0xff]   ;;  %v5631_v38 = vld [vmem:[#allocation6 + $0x5cc] ss:$16 sps:$4 sm:$0xff]  }
 0x36b   : > { %3791 = vmatprep.subr.bf16.mxu0 %v5547_v46  ;;  %3832 = vmatprep.subr.bf16.mxu1 %v5550_v47  ;;  %v5634_v46 = vld [vmem:[#allocation6 + $0x7cc] ss:$16 sps:$4 sm:$0xff]   ;;  %v5629_v47 = vld [vmem:[#allocation6 + $0x5c8] ss:$16 sps:$4 sm:$0xff]  }
 0x36e   : > { %3792 = vmatpush2.bf16.msra.mxu0 %v5545_v28  ;;  %3833 = vmatpush2.bf16.msra.mxu1 %v5548_v19  ;;  %v5632_v28 = vld [vmem:[#allocation6 + $0x7c8] ss:$16 sps:$4 sm:$0xff]   ;;  %v5637_v19 = vld [vmem:[#allocation6 + $0x5ac] ss:$16 sps:$4 sm:$0xff]  }
 0x36f   : > { %3793 = vmatprep.subr.bf16.mxu0 %v5553_v49  ;;  %3834 = vmatprep.subr.bf16.mxu1 %v5556_v29  ;;  %v5640_v49 = vld [vmem:[#allocation6 + $0x7ac] ss:$16 sps:$4 sm:$0xff]   ;;  %v5635_v29 = vld [vmem:[#allocation6 + $0x5a8] ss:$16 sps:$4 sm:$0xff]  }
 0x372   : > { %3794 = vmatpush2.bf16.msra.mxu0 %v5551_v17  ;;  %3835 = vmatpush2.bf16.msra.mxu1 %v5554_v33  ;;  %v5638_v17 = vld [vmem:[#allocation6 + $0x7a8] ss:$16 sps:$4 sm:$0xff]   ;;  %v5643_v33 = vld [vmem:[#allocation6 + $0x58c] ss:$16 sps:$4 sm:$0xff]  }
 0x373   : > { %3795 = vmatprep.subr.bf16.mxu0 %v5559_v50  ;;  %3836 = vmatprep.subr.bf16.mxu1 %v5562_v60  ;;  %v5646_v50 = vld [vmem:[#allocation6 + $0x78c] ss:$16 sps:$4 sm:$0xff]   ;;  %v5641_v60 = vld [vmem:[#allocation6 + $0x588] ss:$16 sps:$4 sm:$0xff]  }
 0x376   : > { %3796 = vmatpush2.bf16.msra.mxu0 %v5557_v61  ;;  %3837 = vmatpush2.bf16.msra.mxu1 %v5560_v39  ;;  %v5644_v61 = vld [vmem:[#allocation6 + $0x788] ss:$16 sps:$4 sm:$0xff]   ;;  %v5649_v39 = vld [vmem:[#allocation6 + $0x56c] ss:$16 sps:$4 sm:$0xff]  }
 0x377   : > { %3797 = vmatprep.subr.bf16.mxu0 %v5565_v40  ;;  %3838 = vmatprep.subr.bf16.mxu1 %v5568_v21  ;;  %v5652_v40 = vld [vmem:[#allocation6 + $0x76c] ss:$16 sps:$4 sm:$0xff]   ;;  %v5647_v21 = vld [vmem:[#allocation6 + $0x568] ss:$16 sps:$4 sm:$0xff]  }
 0x37a   : > { %3798 = vmatpush2.bf16.msra.mxu0 %v5563_v55  ;;  %3839 = vmatpush2.bf16.msra.mxu1 %v5566_v25  ;;  %v5650_v55 = vld [vmem:[#allocation6 + $0x768] ss:$16 sps:$4 sm:$0xff]   ;;  %v5655_v25 = vld [vmem:[#allocation6 + $0x54c] ss:$16 sps:$4 sm:$0xff]  }
 0x37b   : > { %3799 = vmatprep.subr.bf16.mxu0 %v5571_v56  ;;  %3840 = vmatprep.subr.bf16.mxu1 %v5574_v26  ;;  %v5658_v56 = vld [vmem:[#allocation6 + $0x74c] ss:$16 sps:$4 sm:$0xff]   ;;  %v5653_v26 = vld [vmem:[#allocation6 + $0x548] ss:$16 sps:$4 sm:$0xff]  }
 0x37e   : > { %3800 = vmatpush2.bf16.msra.mxu0 %v5569_v58  ;;  %3841 = vmatpush2.bf16.msra.mxu1 %v5572_v41  ;;  %v5656_v58 = vld [vmem:[#allocation6 + $0x748] ss:$16 sps:$4 sm:$0xff]   ;;  %v5661_v41 = vld [vmem:[#allocation6 + $0x52c] ss:$16 sps:$4 sm:$0xff]  }
 0x37f   : > { %3851 = vmatprep.subr.bf16.mxu0 %v5577_v51  ;;  %3892 = vmatprep.subr.bf16.mxu1 %v5580_v52  ;;  %v5664_v51 = vld [vmem:[#allocation6 + $0x72c] ss:$16 sps:$4 sm:$0xff]   ;;  %v5659_v52 = vld [vmem:[#allocation6 + $0x528] ss:$16 sps:$4 sm:$0xff]  }
 0x381   : > { %3802 = vmatmul.mubr.bf16.vlgmr.msra.gmra.mxu0 %v6361_v57  ;;  %3843 = vmatmul.mubr.bf16.vlgmr.msra.gmra.mxu1 %v6363_v11  ;;  %v5595_v57 = vld [vmem:[#allocation6 + $0x48c] ss:$16 sps:$4 sm:$0xff]  }
 0x382   : > { %3852 = vmatpush1.bf16.msra.mxu0 %v5575_v53  ;;  %3883 = vmatprep.mubr.bf16.mxu0 %v6457_v30  ;;  %v5598_v11 = vld [vmem:[#allocation6 + $0x68c] ss:$16 sps:$4 sm:$0xff]   ;;  %v5596_v30 = vld [vmem:[#allocation6 + $0x688] ss:$16 sps:$4 sm:$0xff]  }
 0x383   : > { %3893 = vmatpush1.bf16.msra.mxu1 %v5578_v43  ;;  %3924 = vmatprep.mubr.bf16.mxu1 %v6459_v48  ;;  %v5604_v48 = vld [vmem:[#allocation6 + $0x66c] ss:$16 sps:$4 sm:$0xff]   ;;  %v5662_v53 = vld [vmem:[#allocation6 + $0x728] ss:$16 sps:$4 sm:$0xff]  }
 0x384   : > { %3853 = vmatprep.subr.bf16.mxu0 %v5583_v54  ;;  %3894 = vmatprep.subr.bf16.mxu1 %v5586_v6  ;;  %v5667_v43 = vld [vmem:[#allocation6 + $0x50c] ss:$16 sps:$4 sm:$0xff]   ;;  %v5665_v6 = vld [vmem:[#allocation6 + $0x508] ss:$16 sps:$4 sm:$0xff]  }
 0x385   : > { %v5670_v54 = vld [vmem:[#allocation6 + $0x70c] ss:$16 sps:$4 sm:$0xff]  }
 0x386   : > { %3854 = vmatpush1.bf16.msra.mxu0 %v5581_v7  ;;  %v5668_v7 = vld [vmem:[#allocation6 + $0x708] ss:$16 sps:$4 sm:$0xff]  }
 0x387   : > { %3895 = vmatpush1.bf16.msra.mxu1 %v5584_v42  ;;  %3855 = vmatprep.subr.bf16.mxu0 %v5589_v44  ;;  %v5673_v42 = vld [vmem:[#allocation8 + $0x74] ss:$8 sps:$4 sm:$0xff]   ;;  %v5671_v44 = vld [vmem:[#allocation8 + $0x70] ss:$8 sps:$4 sm:$0xff]  }
 0x388   : > { %3896 = vmatprep.subr.bf16.mxu1 %v5592_v45  ;;  %v5676_v45 = vld [vmem:[#allocation8 + $0x64] ss:$8 sps:$4 sm:$0xff]  }
 0x38a   : > { %3856 = vmatpush1.bf16.msra.mxu0 %v5587_v62 }
 0x38b   : > { %3897 = vmatpush1.bf16.msra.mxu1 %v5590_v59  ;;  %3857 = vmatprep.subr.bf16.mxu0 %v5595_v57  ;;  %v5674_v57 = vld [vmem:[#allocation8 + $0x60] ss:$8 sps:$4 sm:$0xff]  }
 0x38c   : > { %3898 = vmatprep.subr.bf16.mxu1 %v5598_v11 }
 0x38e   : > { %3858 = vmatpush1.bf16.msra.mxu0 %v5593_v63 }
 0x38f   : > { %3899 = vmatpush1.bf16.msra.mxu1 %v5596_v30  ;;  %3859 = vmatprep.subr.bf16.mxu0 %v5601_v4  ;;  %v5679_v30 = vld [vmem:[#allocation8 + $0x54] ss:$8 sps:$4 sm:$0xff]  }
 0x390   : > { %3900 = vmatprep.subr.bf16.mxu1 %v5604_v48 }
 0x392   : > { %3860 = vmatpush1.bf16.msra.mxu0 %v5599_v1  ;;  %v5677_v1 = vld [vmem:[#allocation8 + $0x50] ss:$8 sps:$4 sm:$0xff]  }
 0x393   : > { %3901 = vmatpush1.bf16.msra.mxu1 %v5602_v0  ;;  %3861 = vmatprep.subr.bf16.mxu0 %v5607_v5  ;;  %v5682_v5 = vld [vmem:[#allocation8 + $0x44] ss:$8 sps:$4 sm:$0xff]  }
 0x394   : > { %3902 = vmatprep.subr.bf16.mxu1 %v5610_v18  ;;  %v5719_v18 = vld [vmem:[#allocation8 + $0x170] ss:$8 sps:$4 sm:$0xff]  }
 0x396   : > { %3862 = vmatpush1.bf16.msra.mxu0 %v5605_v20  ;;  %v5721_v20 = vld [vmem:[#allocation8 + $0x174] ss:$8 sps:$4 sm:$0xff]  }
 0x397   : > { %3903 = vmatpush1.bf16.msra.mxu1 %v5608_v35  ;;  %3863 = vmatprep.subr.bf16.mxu0 %v5613_v22  ;;  %v5724_v35 = vld [vmem:[#allocation8 + $0x164] ss:$8 sps:$4 sm:$0xff]   ;;  %v5722_v22 = vld [vmem:[#allocation8 + $0x160] ss:$8 sps:$4 sm:$0xff]  }
 0x398   : > { %3904 = vmatprep.subr.bf16.mxu1 %v5616_v12  ;;  %v5685_v12 = vld [vmem:[#allocation8 + $0x34] ss:$8 sps:$4 sm:$0xff]  }
 0x39a   : > { %3864 = vmatpush1.bf16.msra.mxu0 %v5611_v13  ;;  %v5727_v13 = vld [vmem:[#allocation8 + $0x154] ss:$8 sps:$4 sm:$0xff]  }
 0x39b   : > { %3905 = vmatpush1.bf16.msra.mxu1 %v5614_v27  ;;  %3865 = vmatprep.subr.bf16.mxu0 %v5619_v23  ;;  %v5683_v27 = vld [vmem:[#allocation8 + $0x30] ss:$8 sps:$4 sm:$0xff]  }
 0x39c   : > { %3906 = vmatprep.subr.bf16.mxu1 %v5622_v31  ;;  %v5725_v23 = vld [vmem:[#allocation8 + $0x150] ss:$8 sps:$4 sm:$0xff]   ;;  %v5688_v31 = vld [vmem:[#allocation8 + $0x24] ss:$8 sps:$4 sm:$0xff]  }
 0x39e   : > { %3866 = vmatpush1.bf16.msra.mxu0 %v5617_v32  ;;  %v5730_v32 = vld [vmem:[#allocation8 + $0x144] ss:$8 sps:$4 sm:$0xff]  }
 0x39f   : > { %3907 = vmatpush1.bf16.msra.mxu1 %v5620_v8  ;;  %3867 = vmatprep.subr.bf16.mxu0 %v5625_v9  ;;  %v5686_v8 = vld [vmem:[#allocation8 + $0x20] ss:$8 sps:$4 sm:$0xff]  }
 0x3a0   : > { %3908 = vmatprep.subr.bf16.mxu1 %v5628_v24  ;;  %v5728_v9 = vld [vmem:[#allocation8 + $0x140] ss:$8 sps:$4 sm:$0xff]   ;;  %v5691_v24 = vld [vmem:[#allocation8 + $0x14] ss:$8 sps:$4 sm:$0xff]  }
 0x3a2   : > { %3868 = vmatpush2.bf16.msra.mxu0 %v5623_v37  ;;  %v5733_v37 = vld [vmem:[#allocation8 + $0x134] ss:$8 sps:$4 sm:$0xff]  }
 0x3a3   : > { %3909 = vmatpush2.bf16.msra.mxu1 %v5626_v16  ;;  %3869 = vmatprep.subr.bf16.mxu0 %v5631_v38  ;;  %v5689_v16 = vld [vmem:[#allocation8 + $0x10] ss:$8 sps:$4 sm:$0xff]  }
 0x3a4   : > { %3910 = vmatprep.subr.bf16.mxu1 %v5634_v46  ;;  %v5731_v38 = vld [vmem:[#allocation8 + $0x130] ss:$8 sps:$4 sm:$0xff]   ;;  %v5694_v46 = vld [vmem:[#allocation8 + $0x4] ss:$8 sps:$4 sm:$0xff]  }
 0x3a6   : > { %3870 = vmatpush2.bf16.msra.mxu0 %v5629_v47  ;;  %v5736_v47 = vld [vmem:[#allocation8 + $0x124] ss:$8 sps:$4 sm:$0xff]  }
 0x3a7   : > { %3911 = vmatpush2.bf16.msra.mxu1 %v5632_v28  ;;  %3871 = vmatprep.subr.bf16.mxu0 %v5637_v19  ;;  %v5692_v28 = vld [vmem:[#allocation8] ss:$8 sps:$4 sm:$0xff]  }
 0x3a8   : > { %3912 = vmatprep.subr.bf16.mxu1 %v5640_v49  ;;  %v5734_v19 = vld [vmem:[#allocation8 + $0x120] ss:$8 sps:$4 sm:$0xff]   ;;  %v5697_v49 = vld [vmem:[#allocation8 + $0xf4] ss:$8 sps:$4 sm:$0xff]  }
 0x3aa   : > { %3872 = vmatpush2.bf16.msra.mxu0 %v5635_v29  ;;  %v5739_v29 = vld [vmem:[#allocation8 + $0x114] ss:$8 sps:$4 sm:$0xff]  }
 0x3ab   : > { %3913 = vmatpush2.bf16.msra.mxu1 %v5638_v17  ;;  %3873 = vmatprep.subr.bf16.mxu0 %v5643_v33  ;;  %v5695_v17 = vld [vmem:[#allocation8 + $0xf0] ss:$8 sps:$4 sm:$0xff]  }
 0x3ac   : > { %3914 = vmatprep.subr.bf16.mxu1 %v5646_v50  ;;  %v5737_v33 = vld [vmem:[#allocation8 + $0x110] ss:$8 sps:$4 sm:$0xff]   ;;  %v5700_v50 = vld [vmem:[#allocation8 + $0xe4] ss:$8 sps:$4 sm:$0xff]  }
 0x3ae   : > { %3874 = vmatpush2.bf16.msra.mxu0 %v5641_v60  ;;  %v5742_v60 = vld [vmem:[#allocation8 + $0x104] ss:$8 sps:$4 sm:$0xff]  }
 0x3af   : > { %3915 = vmatpush2.bf16.msra.mxu1 %v5644_v61  ;;  %3875 = vmatprep.subr.bf16.mxu0 %v5649_v39  ;;  %v5698_v61 = vld [vmem:[#allocation8 + $0xe0] ss:$8 sps:$4 sm:$0xff]  }
 0x3b0   : > { %3916 = vmatprep.subr.bf16.mxu1 %v5652_v40  ;;  %v5740_v39 = vld [vmem:[#allocation8 + $0x100] ss:$8 sps:$4 sm:$0xff]   ;;  %v5703_v40 = vld [vmem:[#allocation8 + $0xd4] ss:$8 sps:$4 sm:$0xff]  }
 0x3b2   : > { %3876 = vmatpush2.bf16.msra.mxu0 %v5647_v21  ;;  %v5745_v21 = vld [vmem:[#allocation8 + $0x1f4] ss:$8 sps:$4 sm:$0xff]  }
 0x3b3   : > { %3917 = vmatpush2.bf16.msra.mxu1 %v5650_v55  ;;  %3877 = vmatprep.subr.bf16.mxu0 %v5655_v25  ;;  %v5701_v55 = vld [vmem:[#allocation8 + $0xd0] ss:$8 sps:$4 sm:$0xff]  }
 0x3b4   : > { %3918 = vmatprep.subr.bf16.mxu1 %v5658_v56  ;;  %v5743_v25 = vld [vmem:[#allocation8 + $0x1f0] ss:$8 sps:$4 sm:$0xff]   ;;  %v5706_v56 = vld [vmem:[#allocation8 + $0xc4] ss:$8 sps:$4 sm:$0xff]  }
 0x3b6   : > { %3878 = vmatpush2.bf16.msra.mxu0 %v5653_v26  ;;  %v5748_v26 = vld [vmem:[#allocation8 + $0x1e4] ss:$8 sps:$4 sm:$0xff]  }
 0x3b7   : > { %3919 = vmatpush2.bf16.msra.mxu1 %v5656_v58  ;;  %3879 = vmatprep.subr.bf16.mxu0 %v5661_v41  ;;  %v5704_v58 = vld [vmem:[#allocation8 + $0xc0] ss:$8 sps:$4 sm:$0xff]  }
 0x3b8   : > { %3920 = vmatprep.subr.bf16.mxu1 %v5664_v51  ;;  %v5746_v41 = vld [vmem:[#allocation8 + $0x1e0] ss:$8 sps:$4 sm:$0xff]   ;;  %v5709_v51 = vld [vmem:[#allocation8 + $0xb4] ss:$8 sps:$4 sm:$0xff]  }
 0x3ba   : > { %3880 = vmatpush2.bf16.msra.mxu0 %v5659_v52  ;;  %v5751_v52 = vld [vmem:[#allocation8 + $0x1d4] ss:$8 sps:$4 sm:$0xff]  }
 0x3bb   : > { %3921 = vmatpush2.bf16.msra.mxu1 %v5662_v53  ;;  %3881 = vmatprep.subr.bf16.mxu0 %v5667_v43  ;;  %v5707_v53 = vld [vmem:[#allocation8 + $0xb0] ss:$8 sps:$4 sm:$0xff]  }
 0x3bc   : > { %3922 = vmatprep.subr.bf16.mxu1 %v5670_v54  ;;  %v5749_v43 = vld [vmem:[#allocation8 + $0x1d0] ss:$8 sps:$4 sm:$0xff]   ;;  %v5712_v54 = vld [vmem:[#allocation8 + $0xa4] ss:$8 sps:$4 sm:$0xff]  }
 0x3be   : > { %3882 = vmatpush2.bf16.msra.mxu0 %v5665_v6  ;;  %v5754_v6 = vld [vmem:[#allocation8 + $0x1c4] ss:$8 sps:$4 sm:$0xff]  }
 0x3bf   : > { %3923 = vmatpush2.bf16.msra.mxu1 %v5668_v7  ;;  %4337 = vmatprep.subr.bf16.mxu0 %v5673_v42  ;;  %v5710_v7 = vld [vmem:[#allocation8 + $0xa0] ss:$8 sps:$4 sm:$0xff]  }
 0x3c0   : > { %4378 = vmatprep.subr.bf16.mxu1 %v5721_v20  ;;  %v5752_v42 = vld [vmem:[#allocation8 + $0x1c0] ss:$8 sps:$4 sm:$0xff]  }
 0x3c1   : > { %3884 = vmatmul.mubr.bf16.vlgmr.msra.gmra.mxu0 %v6463_v2  ;;  %v6476_v62 = vpop.f32.mrf.mxu0  ;;  %v6478_v59 = vpop.f32.mrf.mxu1 }
 0x3c2   : > { %3925 = vmatmul.mubr.bf16.vlgmr.msra.gmra.mxu1 %v6465_v10  ;;  %4338 = vmatpush1.bf16.msra.mxu0 %v5671_v44  ;;  %v5680_v10 = vld [vmem:[#allocation8 + $0x40] ss:$8 sps:$4 sm:$0xff]   ;;  %v5715_v44 = vld [vmem:[#allocation8 + $0x94] ss:$8 sps:$4 sm:$0xff]  }
 0x3c3   : > { %v6481_v11 = vpop.f32.mrf.mxu0  ;;  %v6483_v63 = vpop.f32.mrf.mxu1  ;;  %4339 = vmatprep.subr.bf16.mxu0 %v5676_v45  ;;  %4379 = vmatpush1.bf16.msra.mxu1 %v5719_v18  ;;  %v5757_v45 = vld [vmem:[#allocation8 + $0x1b4] ss:$8 sps:$4 sm:$0xff]  }
 0x3c4   : > { %4380 = vmatprep.subr.bf16.mxu1 %v5724_v35  ;;  %v5760_v35 = vld [vmem:[#allocation8 + $0x1a4] ss:$8 sps:$4 sm:$0xff]  }
 0x3c5   : > { %v3643_v4 = vpop.f32.mrf.mxu0  ;;  %v3684_v48 = vpop.f32.mrf.mxu1 }
 0x3c6   : > { %4340 = vmatpush1.bf16.msra.mxu0 %v5674_v57  ;;  %v6488_v57 = vld [vmem:[%s6655_s8] sm:$0xf]  ;;  %v5755_v4 = vld [vmem:[#allocation8 + $0x1b0] ss:$8 sps:$4 sm:$0xff]   ;;  %v5718_v48 = vld [vmem:[#allocation8 + $0x84] ss:$8 sps:$4 sm:$0xff]  }
 0x3c7   : > { %v3644_v0 = vpop.f32.mrf.mxu0  ;;  %v3685_v2 = vpop.f32.mrf.mxu1  ;;  %4341 = vmatprep.subr.bf16.mxu0 %v5679_v30  ;;  %4381 = vmatpush1.bf16.msra.mxu1 %v5722_v22  ;;  %v5713_v30 = vld [vmem:[#allocation8 + $0x90] ss:$8 sps:$4 sm:$0xff]  }
 0x3c8   : > { %4382 = vmatprep.subr.bf16.mxu1 %v5727_v13  ;;  %v3592_v0 = vrot.slane %v6488_v57, %v6325_v34  ;;  %v5716_v2 = vld [vmem:[#allocation8 + $0x80] ss:$8 sps:$4 sm:$0xff]  }
 0x3ca   : > { %4342 = vmatpush1.bf16.msra.mxu0 %v5677_v1  ;;  %v3588_v1 = vrot.slane %v6488_v57, %v6299_v14  ;;  %v3642_v18 = vadd.f32 %v6481_v11, %v3592_v0  ;;  %v5761_v11 = vld [vmem:[#allocation8 + $0x190] ss:$8 sps:$4 sm:$0xff]   ;;  %v4441_v0 = vld [vmem:[%s6658_s11 + $0xa0] sm:$0xff] }
 0x3cb   : > { %4343 = vmatprep.subr.bf16.mxu0 %v5682_v5  ;;  %4383 = vmatpush1.bf16.msra.mxu1 %v5725_v23 }
 0x3cc   : > { %4384 = vmatprep.subr.bf16.mxu1 %v5730_v32  ;;  %v3640_v5 = vadd.f32 %v6476_v62, %v3588_v1  ;;  %v3683_v13 = vadd.f32 %v6483_v63, %v3642_v18  ;;  %v5764_v63 = vld [vmem:[#allocation8 + $0x180] ss:$8 sps:$4 sm:$0xff]   ;;  %v3600_v18 = vrot.slane %v6488_v57, %v1997_v36 }
 0x3cd   : > { %v4426_v1 = vld [vmem:[%s6658_s11 + $0x28] sm:$0xff] }
 0x3ce   : > { %4344 = vmatpush1.bf16.msra.mxu0 %v5680_v10  ;;  %v3681_v20 = vadd.f32 %v6478_v59, %v3640_v5  ;;  %v3596_v5 = vrot.slane %v6488_v57, %v1993_v15 }
 0x3cf   : > { %4345 = vmatprep.subr.bf16.mxu0 %v5685_v12  ;;  %4385 = vmatpush1.bf16.msra.mxu1 %v5728_v9  ;;  %v5758_v12 = vld [vmem:[#allocation8 + $0x1a0] ss:$8 sps:$4 sm:$0xff]   ;;  %v5763_v9 = vld [vmem:[#allocation8 + $0x194] ss:$8 sps:$4 sm:$0xff]  }
 0x3d0   : > { %4386 = vmatprep.subr.bf16.mxu1 %v5733_v37 }
 0x3d2   : > { %4346 = vmatpush1.bf16.msra.mxu0 %v5683_v27 }
 0x3d3   : > { %4347 = vmatprep.subr.bf16.mxu0 %v5688_v31  ;;  %4387 = vmatpush1.bf16.msra.mxu1 %v5731_v38 }
 0x3d4   : > { %4388 = vmatprep.subr.bf16.mxu1 %v5736_v47  ;;  %v5766_v47 = vld [vmem:[#allocation8 + $0x184] ss:$8 sps:$4 sm:$0xff]  }
 0x3d6   : > { %4348 = vmatpush1.bf16.msra.mxu0 %v5686_v8 }
 0x3d7   : > { %4349 = vmatprep.subr.bf16.mxu0 %v5691_v24  ;;  %4389 = vmatpush1.bf16.msra.mxu1 %v5734_v19 }
 0x3d8   : > { %4390 = vmatprep.subr.bf16.mxu1 %v5739_v29 }
 0x3da   : > { %4350 = vmatpush1.bf16.msra.mxu0 %v5689_v16 }
 0x3db   : > { %4351 = vmatprep.subr.bf16.mxu0 %v5694_v46  ;;  %4391 = vmatpush1.bf16.msra.mxu1 %v5737_v33 }
 0x3dc   : > { %4392 = vmatprep.subr.bf16.mxu1 %v5742_v60 }
 0x3de   : > { %4352 = vmatpush1.bf16.msra.mxu0 %v5692_v28 }
 0x3df   : > { %4353 = vmatprep.subr.bf16.mxu0 %v5697_v49  ;;  %4393 = vmatpush1.bf16.msra.mxu1 %v5740_v39 }
 0x3e0   : > { %4394 = vmatprep.subr.bf16.mxu1 %v5745_v21  ;;  %v4436_v21 = vld [vmem:[%s6658_s11 + $0x78] sm:$0xff] }
 0x3e2   : > { %4354 = vmatpush2.bf16.msra.mxu0 %v5695_v17 }
 0x3e3   : > { %4355 = vmatprep.subr.bf16.mxu0 %v5700_v50  ;;  %4395 = vmatpush2.bf16.msra.mxu1 %v5743_v25  ;;  %v4435_v25 = vld [vmem:[%s6658_s11 + $0x70] sm:$0xff] }
 0x3e4   : > { %4396 = vmatprep.subr.bf16.mxu1 %v5748_v26  ;;  %v4434_v26 = vld [vmem:[%s6658_s11 + $0x68] sm:$0xff] }
 0x3e6   : > { %4356 = vmatpush2.bf16.msra.mxu0 %v5698_v61 }
 0x3e7   : > { %4357 = vmatprep.subr.bf16.mxu0 %v5703_v40  ;;  %4397 = vmatpush2.bf16.msra.mxu1 %v5746_v41  ;;  %v4452_v40 = vld [vmem:[%s6658_s11 + $0xf8] sm:$0xff]  ;;  %v4433_v41 = vld [vmem:[%s6658_s11 + $0x60] sm:$0xff] }
 0x3e8   : > { %4398 = vmatprep.subr.bf16.mxu1 %v5751_v52  ;;  %v4432_v52 = vld [vmem:[%s6658_s11 + $0x58] sm:$0xff] }
 0x3ea   : > { %4358 = vmatpush2.bf16.msra.mxu0 %v5701_v55  ;;  %v4451_v55 = vld [vmem:[%s6658_s11 + $0xf0] sm:$0xff] }
 0x3eb   : > { %4359 = vmatprep.subr.bf16.mxu0 %v5706_v56  ;;  %4399 = vmatpush2.bf16.msra.mxu1 %v5749_v43  ;;  %v4450_v56 = vld [vmem:[%s6658_s11 + $0xe8] sm:$0xff]  ;;  %v4431_v43 = vld [vmem:[%s6658_s11 + $0x50] sm:$0xff] }
 0x3ec   : > { %4400 = vmatprep.subr.bf16.mxu1 %v5754_v6  ;;  %v4430_v6 = vld [vmem:[%s6658_s11 + $0x48] sm:$0xff] }
 0x3ee   : > { %4360 = vmatpush2.bf16.msra.mxu0 %v5704_v58  ;;  %v4449_v58 = vld [vmem:[%s6658_s11 + $0xe0] sm:$0xff] }
 0x3ef   : > { %4361 = vmatprep.subr.bf16.mxu0 %v5709_v51  ;;  %4401 = vmatpush2.bf16.msra.mxu1 %v5752_v42  ;;  %v4448_v51 = vld [vmem:[%s6658_s11 + $0xd8] sm:$0xff]  ;;  %v4429_v42 = vld [vmem:[%s6658_s11 + $0x40] sm:$0xff] }
 0x3f0   : > { %4402 = vmatprep.subr.bf16.mxu1 %v5757_v45  ;;  %v4428_v45 = vld [vmem:[%s6658_s11 + $0x38] sm:$0xff] }
 0x3f2   : > { %4362 = vmatpush2.bf16.msra.mxu0 %v5707_v53  ;;  %v4447_v53 = vld [vmem:[%s6658_s11 + $0xd0] sm:$0xff] }
 0x3f3   : > { %4363 = vmatprep.subr.bf16.mxu0 %v5712_v54  ;;  %4403 = vmatpush2.bf16.msra.mxu1 %v5755_v4  ;;  %v4446_v54 = vld [vmem:[%s6658_s11 + $0xc8] sm:$0xff]  ;;  %v4427_v4 = vld [vmem:[%s6658_s11 + $0x30] sm:$0xff] }
 0x3f4   : > { %4404 = vmatprep.subr.bf16.mxu1 %v5760_v35 }
 0x3f6   : > { %4364 = vmatpush2.bf16.msra.mxu0 %v5710_v7  ;;  %v4445_v7 = vld [vmem:[%s6658_s11 + $0xc0] sm:$0xff] }
 0x3f7   : > { %4365 = vmatprep.subr.bf16.mxu0 %v5715_v44  ;;  %4405 = vmatpush2.bf16.msra.mxu1 %v5758_v12  ;;  %v4444_v44 = vld [vmem:[%s6658_s11 + $0xb8] sm:$0xff] }
 0x3f8   : > { %4406 = vmatprep.subr.bf16.mxu1 %v5763_v9 }
 0x3fa   : > { %4366 = vmatpush2.bf16.msra.mxu0 %v5713_v30  ;;  %v4443_v30 = vld [vmem:[%s6658_s11 + $0xb0] sm:$0xff] }
 0x3fb   : > { %4367 = vmatprep.subr.bf16.mxu0 %v5718_v48  ;;  %4407 = vmatpush2.bf16.msra.mxu1 %v5761_v11  ;;  %v4442_v48 = vld [vmem:[%s6658_s11 + $0xa8] sm:$0xff] }
 0x3fc   : > { %4408 = vmatprep.subr.bf16.mxu1 %v5766_v47  ;;  %v4439_v47 = vld [vmem:[%s6658_s11 + $0x90] sm:$0xff] }
 0x3fe   : > { %4368 = vmatpush2.bf16.msra.mxu0 %v5716_v2  ;;  %v4425_v2 = vld [vmem:[%s6658_s11 + $0x20] sm:$0xff] }
 0x3ff   : > { %4409 = vmatpush2.bf16.msra.mxu1 %v5764_v63  ;;  %5104 = vmatprep.subr.mxu0 %v4452_v40  ;;  %v4423_v63 = vld [vmem:[%s6658_s11 + $0x10] sm:$0xff] }
 0x401   : > { %v3721_v10 = vpop.f32.mrf.mxu0  ;;  %v3762_v22 = vpop.f32.mrf.mxu1 }
 0x402   : > { %v3722_v27 = vadd.f32 %v3721_v10, %v3681_v20 }
 0x403   : > { %v3723_v23 = vpop.f32.mrf.mxu0  ;;  %v3764_v31 = vpop.f32.mrf.mxu1 }
 0x404   : > { %v3763_v32 = vadd.f32 %v3762_v22, %v3722_v27  ;;  %v3724_v8 = vadd.f32 %v3723_v23, %v3683_v13 }
 0x405   : > { %v3725_v62 = vpop.f32.mrf.mxu0  ;;  %v3766_v24 = vpop.f32.mrf.mxu1 }
 0x406   : > { %v3765_v37 = vadd.f32 %v3764_v31, %v3724_v8  ;;  %v3933_v59 = vmax.f32 %v3763_v32, 0.0 }
 0x407   : > { %v3726_v16 = vpop.f32.mrf.mxu0  ;;  %v3767_v38 = vpop.f32.mrf.mxu1 }
 0x408   : > { %v3934_v46 = vmax.f32 %v3765_v37, 0.0  ;;  %v3937_v19 = vpack.c.bf16 %v3933_v59, %v3933_v59  ;;  %v4440_v16 = vld [vmem:[%s6658_s11 + $0x98] sm:$0xff] }
 0x409   : > { %v4424_v38 = vld [vmem:[%s6658_s11 + $0x18] sm:$0xff] }
 0x40a   : > { %v3938_v28 = vpack.c.bf16 %v3934_v46, %v3934_v46 }
 0x40c   : > { %4369 = vmatprep.mubr.bf16.mxu0 %v3938_v28 }
 0x40d   : > { %4370 = vmatmul.mubr.bf16.vlgmr.msra.gmra.mxu0 %v3937_v19  ;;  %v4438_v19 = vld [vmem:[%s6658_s11 + $0x88] sm:$0xff] }
 0x40e   : > { %5105 = vmatpush3.msra.mxu0 %v4436_v21 }
 0x40f   : > { %5106 = vmatprep.subr.mxu0 %v4451_v55 }
 0x410   : > { %5107 = vmatpush3.msra.mxu0 %v4435_v25 }
 0x411   : > { %5108 = vmatprep.subr.mxu0 %v4450_v56 }
 0x412   : > { %5109 = vmatpush3.msra.mxu0 %v4434_v26 }
 0x413   : > { %5110 = vmatprep.subr.mxu0 %v4449_v58 }
 0x414   : > { %5111 = vmatpush3.msra.mxu0 %v4433_v41 }
 0x415   : > { %5112 = vmatprep.subr.mxu0 %v4448_v51 }
 0x416   : > { %5113 = vmatpush3.msra.mxu0 %v4432_v52 }
 0x417   : > { %5114 = vmatprep.subr.mxu0 %v4447_v53 }
 0x418   : > { %5115 = vmatpush3.msra.mxu0 %v4431_v43 }
 0x419   : > { %5116 = vmatprep.subr.mxu0 %v4446_v54 }
 0x41a   : > { %5117 = vmatpush3.msra.mxu0 %v4430_v6 }
 0x41b   : > { %5118 = vmatprep.subr.mxu0 %v4445_v7 }
 0x41c   : > { %5119 = vmatpush3.msra.mxu0 %v4429_v42 }
 0x41d   : > { %5120 = vmatprep.subr.mxu0 %v4444_v44 }
 0x41e   : > { %5121 = vmatpush3.msra.mxu0 %v4428_v45 }
 0x41f   : > { %5122 = vmatprep.subr.mxu0 %v4443_v30 }
 0x420   : > { %5123 = vmatpush3.msra.mxu0 %v4427_v4 }
 0x421   : > { %5124 = vmatprep.subr.mxu0 %v4442_v48 }
 0x422   : > { %5125 = vmatpush3.msra.mxu0 %v4426_v1 }
 0x423   : > { %5126 = vmatprep.subr.mxu0 %v4441_v0 }
 0x424   : > { %5127 = vmatpush3.msra.mxu0 %v4425_v2 }
 0x425   : > { %5128 = vmatprep.subr.mxu0 %v4440_v16 }
 0x426   : > { %5129 = vmatpush3.msra.mxu0 %v4424_v38 }
 0x427   : > { %5130 = vmatprep.subr.mxu0 %v4439_v47 }
 0x428   : > { %5131 = vmatpush3.msra.mxu0 %v4423_v63 }
 0x429   : > { %5132 = vmatprep.subr.mxu0 %v4438_v19 }
 0x441   : > { %v3803_v49 = vpop.f32.mrf.mxu0  ;;  %v3844_v29 = vpop.f32.mrf.mxu1 }
 0x442   : > { %v3804_v20 = vadd.f32 %v3803_v49, %v3596_v5  ;;  %v4422_v49 = vld [vmem:[%s6658_s11 + $0x8] sm:$0xff] }
 0x443   : > { %v3805_v17 = vpop.f32.mrf.mxu0  ;;  %v3846_v33 = vpop.f32.mrf.mxu1  ;;  %5133 = vmatpush3.msra.mxu0 %v4422_v49 }
 0x444   : > { %v3806_v35 = vadd.f32 %v3805_v17, %v3600_v18  ;;  %v3845_v10 = vadd.f32 %v3844_v29, %v3804_v20  ;;  %v4437_v17 = vld [vmem:[%s6658_s11 + $0x80] sm:$0xff] }
 0x445   : > { %v3807_v50 = vpop.f32.mrf.mxu0  ;;  %v3848_v60 = vpop.f32.mrf.mxu1  ;;  %5134 = vmatprep.subr.mxu0 %v4437_v17 }
 0x446   : > { %v3847_v12 = vadd.f32 %v3846_v33, %v3806_v35  ;;  %v4421_v33 = vld [vmem:[%s6658_s11] sm:$0xff] }
 0x447   : > { %v3808_v61 = vpop.f32.mrf.mxu0  ;;  %v3849_v39 = vpop.f32.mrf.mxu1  ;;  %5135 = vmatpush3.msra.mxu0 %v4421_v33  ;;  %v4005_v50 = vld [vmem:[%s6657_s10] sm:$0x3] }
 0x448   : > { %v4330_v60 = vrot.slane %v4005_v50, %v6299_v14  ;;  %v4334_v61 = vrot.slane %v4005_v50, %v6325_v34  ;;  %v4453_v14 = vld [vmem:[%s6659_s12] sm:$0x1] }
 0x481   : > { %v3885_v22 = vpop.f32.mrf.mxu0 }
 0x482   : > { %v3886_v13 = vadd.f32 %v3885_v22, %v3845_v10  ;;  %v3926_v27 = vpop.f32.mrf.mxu1 }
 0x483   : > { %v3887_v23 = vpop.f32.mrf.mxu0 }
 0x484   : > { %v3927_v31 = vadd.f32 %v3926_v27, %v3886_v13  ;;  %v3888_v32 = vadd.f32 %v3887_v23, %v3847_v12  ;;  %v3928_v8 = vpop.f32.mrf.mxu1 }
 0x485   : > { %v3889_v9 = vpop.f32.mrf.mxu0 }
 0x486   : > { %v3929_v62 = vadd.f32 %v3928_v8, %v3888_v32  ;;  %v3930_v24 = vpop.f32.mrf.mxu1  ;;  %v3935_v11 = vmax.f32 %v3927_v31, 0.0 }
 0x487   : > { %v3890_v15 = vpop.f32.mrf.mxu0 }
 0x488   : > { %v3936_v37 = vmax.f32 %v3929_v62, 0.0  ;;  %v3931_v3 = vpop.f32.mrf.mxu1  ;;  %v3939_v36 = vpack.c.bf16 %v3935_v11, %v3935_v11 }
 0x48a   : > { %v3940_v59 = vpack.c.bf16 %v3936_v37, %v3936_v37 }
 0x48c   : > { %4410 = vmatprep.mubr.bf16.mxu1 %v3940_v59 }
 0x48d   : > { %4411 = vmatmul.mubr.bf16.vlgmr.msra.gmra.mxu1 %v3939_v36 }
 0x4cd   : > { %v4371_v57 = vpop.f32.mrf.mxu0 }
 0x4ce   : > { %v4372_v39 = vadd.f32 %v4371_v57, %v4330_v60 }
 0x4cf   : > { %v4373_v46 = vpop.f32.mrf.mxu0 }
 0x4d0   : > { %v4374_v21 = vadd.f32 %v4373_v46, %v4334_v61 }
 0x4d1   : > { %v4375_v28 = vpop.f32.mrf.mxu0 }
 0x4d3   : > { %v4376_v29 = vpop.f32.mrf.mxu0 }
 0x54d   : > { %v4412_v40 = vpop.f32.mrf.mxu1 }
 0x54e   : > { %v4413_v55 = vadd.f32 %v4412_v40, %v4372_v39 }
 0x54f   : > { %v4414_v25 = vpop.f32.mrf.mxu1 }
 0x550   : > { %v4415_v56 = vadd.f32 %v4414_v25, %v4374_v21  ;;  %v4419_v41 = vmax.f32 %v4413_v55, 0.0 }
 0x551   : > { %v4416_v26 = vpop.f32.mrf.mxu1 }
 0x552   : > { %v4420_v58 = vmax.f32 %v4415_v56, 0.0 }
 0x553   : > { %v4417_v51 = vpop.f32.mrf.mxu1 }
 0x554   : > { %4518 = vmatprep.mubr.f32.mxu0 %v4420_v58 }
 0x555   : > { %4519 = vmatmul.mubr.f32.vlgmr.msra.gmra.mxu0 %v4419_v41 }
 0x615   : > { %v5136_v52 = vpop.f32.mrf.mxu0 }
 0x617   : > { %v5137_v34 = vpop.f32.mrf.mxu0 }
 0x618   : > { %v5138_v53 = vadd.f32 %v5137_v34, %v5136_v52 }
 0x61a   : > { %v4521_v43 = vadd.f32 %v5138_v53, %v4453_v14 }
 0x61c   : > { %4525 = vst.msk [vmem:[%s512_s21] sm:$0x1] %vm4524_vm4, %v4521_v43 }
 0x61d   : > { %5858 = shalt.err (!%p5855_p9)
}
 0x61e   : > { %s5859_s22 = scalar_lea.hbm %s4537_s27, 16  ;;  %s5863_s14 = scalar_lea.hbm %s6660_s13, 32 }
 0x61f   : > { %p5860_p8 = scmp.ne.s32.totalorder %s4537_s27, %s5859_s22  ;;  %p5864_p2 = scmp.lt.s32.totalorder %s4537_s27, %s6660_s13 }
 0x620   : > { %p5865_p5 = scmp.lt.s32.totalorder %s5863_s14, %s5859_s22 }
 0x621   : > { %p5861_p12 = pnand %p5860_p8, %p6053_p4 }
 0x622   : > { %p5866_p0 = por %p5865_p5, %p5864_p2 }
 0x623   : > { %p5862_p1 = pneg %p5861_p12 }
 0x625   : > { %p5867_p10 = pnand %p5866_p0, %p5862_p1 }
 0x627   : > { %5870 = shalt.err (!%p5867_p10)
}
 0x628   : > { %5193 = dma.vmem_to_hbm [thread:$0]  (%p6053_p4), %s4540_s29, 16, %s4537_s27, %s4527_s23  }
 0x629 PF: > { %s6677_s24 = sld [smem:[#allocation13_spill]]  ;;  %p5215_p11 = scmp.ge.s32.totalorder %s5929_s30, 2 }
 0x62a   : > { %s6678_s17 = sld [smem:[#allocation17_spill]] }
 0x62f   : > { %s4551_s25 = sand.u32 1, %s6677_s24  }
 0x630   : > { %p6679_p13 = scmp.ne.s32.totalorder %s6678_s17, 0  ;;  %s4552_s16 = scalar_lea.sflag [#allocation5], %s4551_s25 }
 0x632   : > { %p5206_p3 = pnand %p5215_p11, %p6679_p13 }
 0x634   : > { %p5207_p6 = pneg %p5206_p3 }
 0x636   : > { %5904 = dma.done.wait (%p5207_p6), %s4552_s16, 16  }
 0x637   : > { %5906 = vsyncadd (%p5207_p6), %s4552_s16, 4294967280  ;;  %s28_s30 = sadd.s32 1, %s5929_s30   ;;  %s6680_s28 = sld [smem:[#allocation14_spill]] }
 0x638   : > { %p25_p7 = scmp.ge.s32.totalorder %s28_s30, 4   ;;  %s6681_s27 = sld [smem:[#allocation18_spill]] }
 0x639   : > { %s6682_s18 = sld [smem:[#allocation15_spill]]  ;;  %s6684_s25 = smov %s5913_s26 }
 0x63a   : > { %s6683_s29 = sld [smem:[#allocation16_spill]] }
 0x63b   :  { %27 = sbr.rel (!%p25_p7) target bundleno = 6 (0x6), region = 131 }
 0x63d   : > { %s6685_s26 = smov %s6680_s28 }
 0x63f   : > { %s6686_s28 = smov %s6682_s18 }
 0x640   :  { %4556 = vsyncpa [#allocation4], 1 }
 0x641   :  { %4558 = vsyncpa [#allocation4 + $0x1], 1 }
 0x642   :  { %4559 = vsyncpa [#allocation7], 1 }
 0x643   :  { %4560 = vsyncpa [#allocation5], 1 }
 0x644   :  { %4562 = vsyncpa [#allocation5 + $0x1], 1 }

</bundles_post_ra>
